<compile_context>
chip_gen: v6e
topology: v6e:2x2x1
jax: 0.10.0
libtpu: 0.0.40
codegen_flags: <defaults>
</compile_context>

<pallas_src>
import functools

import jax
import jax.numpy as jnp
from jax import lax
from jax.experimental import pallas as pl
from jax.experimental.pallas import tpu as pltpu


def _round_up(x, m):
    return ((x + m - 1) // m) * m


def _avg_classifier_kernel(ids_ref,      # (BT, L) int32
                           mask_ref,     # (BT, L) f32
                           emb_ref,      # (VP, D) f32   (vocab padded to 128)
                           w1_ref,       # (D, H)  bf16
                           b1_ref,       # (1, H)  f32
                           w2_ref,       # (H, TP) bf16  (topics padded to 128, pad cols = 0)
                           b2_ref,       # (1, TP) f32   (pad cols = -1e30)
                           logits_ref,   # (BT, TP) f32 out
                           probs_ref,    # (BT, TP) f32 out
                           *, seq_len, vocab_pad):
    bt = ids_ref.shape[0]

    # ---- token counts: counts[b, v] = #{l : ids[b, l] == v}.
    # One vector compare+add per position (seq_len is small & static); the
    # sequence SUM of embeddings is then a single MXU matmul counts @ emb.
    iota_v = lax.broadcasted_iota(jnp.int32, (bt, vocab_pad), 1)
    counts = jnp.zeros((bt, vocab_pad), jnp.float32)
    for l in range(seq_len):
        tok = ids_ref[:, l:l + 1]                       # (BT, 1) int32
        counts = counts + (iota_v == tok).astype(jnp.float32)

    summed = jnp.dot(counts, emb_ref[...],
                     preferred_element_type=jnp.float32)  # (BT, D), exact f32

    # torch semantics: unmasked sum over the sequence / sum(mask).
    lens = jnp.sum(mask_ref[...], axis=1, keepdims=True)  # (BT, 1)
    avg = summed * (1.0 / jnp.maximum(lens, 1.0))          # clamp guards all-pad rows

    # ---- Dense + ReLU (clamp(min=0)) and logits layer: bf16 in, f32 accumulate
    h = jnp.dot(avg.astype(jnp.bfloat16), w1_ref[...],
                preferred_element_type=jnp.float32) + b1_ref[...]
    h = jnp.maximum(h, 0.0)
    logits = jnp.dot(h.astype(jnp.bfloat16), w2_ref[...],
                     preferred_element_type=jnp.float32) + b2_ref[...]
    logits_ref[...] = logits                               # lane-dense (TP) store

    # ---- softmax over topics (padded columns hold -1e30 -> exp == 0) ----
    m = jnp.max(logits, axis=-1, keepdims=True)
    e = jnp.exp(logits - m)
    s = jnp.sum(e, axis=-1, keepdims=True)
    probs_ref[...] = e * pl.reciprocal(s, approx=True)


def prepare_params(embedding_table, w1, b1, w2, b2):
    """One-time parameter preprocessing (padding + dtype casts).

    Hoisted out of the per-call wrapper per the perf review.  Weights are kept
    transposed vs torch.nn.Linear: w1 (D, H), w2 (H, T); kernel computes x@W+b.
    """
    V, D = embedding_table.shape
    H = w1.shape[1]
    T = w2.shape[1]
    VP = _round_up(V, 128)     # lane-dense vocab axis for the counts matmul
    TP = _round_up(T, 128)     # lane-dense topic axis for the output stores

    emb_p = jnp.zeros((VP, D), jnp.float32).at[:V, :].set(
        embedding_table.astype(jnp.float32))
    w1_bf = w1.astype(jnp.bfloat16)                                    # (D, H)
    b1_r = b1.reshape(1, H).astype(jnp.float32)
    w2_p = jnp.zeros((H, TP), jnp.bfloat16).at[:, :T].set(w2.astype(jnp.bfloat16))
    b2_p = jnp.full((1, TP), -1e30, jnp.float32).at[0, :T].set(b2.astype(jnp.float32))
    return dict(emb=emb_p, w1=w1_bf, b1=b1_r, w2=w2_p, b2=b2_p, n_topics=T)


def average_classifier_forward(inp, mask, params, *, block_b=128):
    """Pallas TPU forward for AverageClassifier.

    inp:  (B, L) int32 token ids
    mask: (B, L) float validity mask
    params: output of prepare_params().
    Returns (logits, probs), both (B, n_topics) float32.
    """
    B, L = inp.shape
    emb, w1, b1, w2, b2 = params["emb"], params["w1"], params["b1"], params["w2"], params["b2"]
    T = params["n_topics"]
    VP, D = emb.shape
    H = w1.shape[1]
    TP = w2.shape[1]

    # Batch tile: multiple of 8 sublanes; pad the batch up to a tile multiple.
    block_b = max(8, min(block_b, _round_up(B, 8)))
    Bp = _round_up(B, block_b)
    ids = inp.astype(jnp.int32)
    msk = mask.astype(jnp.float32)
    if Bp != B:
        ids = jnp.pad(ids, ((0, Bp - B), (0, 0)))
        msk = jnp.pad(msk, ((0, Bp - B), (0, 0)))

    kernel = functools.partial(_avg_classifier_kernel, seq_len=L, vocab_pad=VP)
    resident = lambda i: (0, 0)   # block index never changes -> single-buffered

    logits_p, probs_p = pl.pallas_call(
        kernel,
        out_shape=(
            jax.ShapeDtypeStruct((Bp, TP), jnp.float32),
            jax.ShapeDtypeStruct((Bp, TP), jnp.float32),
        ),
        grid_spec=pltpu.PrefetchScalarGridSpec(
            num_scalar_prefetch=0,
            grid=(Bp // block_b,),
            in_specs=[
                pl.BlockSpec((block_b, L), lambda i: (i, 0)),                      # ids
                pl.BlockSpec((block_b, L), lambda i: (i, 0)),                      # mask
                pl.BlockSpec((VP, D), resident, pipeline_mode=pl.Buffered(1)),     # emb
                pl.BlockSpec((D, H), resident, pipeline_mode=pl.Buffered(1)),      # w1
                pl.BlockSpec((1, H), resident, pipeline_mode=pl.Buffered(1)),      # b1
                pl.BlockSpec((H, TP), resident, pipeline_mode=pl.Buffered(1)),     # w2
                pl.BlockSpec((1, TP), resident, pipeline_mode=pl.Buffered(1)),     # b2
            ],
            out_specs=(
                pl.BlockSpec((block_b, TP), lambda i: (i, 0)),
                pl.BlockSpec((block_b, TP), lambda i: (i, 0)),
            ),
        ),
        compiler_params=pltpu.CompilerParams(
            dimension_semantics=("parallel",),   # batch tiles shard across TCs on v7x
        ),
    )(ids, msk, emb, w1, b1, w2, b2)

    return logits_p[:B, :T], probs_p[:B, :T]


def _xavier_uniform(key, shape, gain):
    fan_in, fan_out = shape
    bound = gain * jnp.sqrt(6.0 / (fan_in + fan_out))
    return jax.random.uniform(key, shape, jnp.float32, -bound, bound)


if __name__ == "__main__":
    # Small, deterministic shapes consistent with the module's forward.
    vocab_size = 100
    embedding_dim = 32
    max_sent_length = 8
    hidden = 1024
    n_topics = 16
    batch = 256          # two batch tiles of 128 -> MXU-width M, 2 grid steps

    root = jax.random.PRNGKey(0)
    k_emb, k_w1, k_b1, k_w2, k_b2, k_inp, k_len = jax.random.split(root, 7)

    # Parameters (deterministic, synthetic).
    embedding_table = jax.random.normal(k_emb, (vocab_size, embedding_dim), jnp.float32)
    relu_gain = jnp.sqrt(2.0)   # xavier_uniform with relu gain, as in create_graph
    w1 = _xavier_uniform(k_w1, (embedding_dim, hidden), relu_gain)
    b1 = jax.random.uniform(k_b1, (hidden,), jnp.float32, -0.01, 0.01)
    w2 = _xavier_uniform(k_w2, (hidden, n_topics), 1.0)
    b2 = jax.random.uniform(k_b2, (n_topics,), jnp.float32, -0.01, 0.01)

    # Inputs: token ids and a left-aligned validity mask.
    inp = jax.random.randint(k_inp, (batch, max_sent_length), 0, vocab_size, jnp.int32)
    lengths = jax.random.randint(k_len, (batch,), 1, max_sent_length + 1, jnp.int32)
    mask = (jnp.arange(max_sent_length)[None, :] < lengths[:, None]).astype(jnp.float32)

    params = prepare_params(embedding_table, w1, b1, w2, b2)   # one-time prep
    logits, probs = average_classifier_forward(inp, mask, params, block_b=128)
    jax.block_until_ready((logits, probs))

    # Reference check against plain JAX (exact torch semantics, f32 throughout).
    embeds_ref = jnp.take(embedding_table, inp, axis=0)
    avg_ref = jnp.sum(embeds_ref, axis=1) / jnp.sum(mask, axis=1, keepdims=True)
    h_ref = jnp.maximum(avg_ref @ w1 + b1, 0.0)
    logits_ref = h_ref @ w2 + b2
    probs_ref = jax.nn.softmax(logits_ref, axis=1)

    assert logits.shape == (batch, n_topics) and probs.shape == (batch, n_topics)
    # Tolerances cover bf16 matmul inputs (f32 accumulation) and the EUP
    # approximate-reciprocal softmax denominator.
    assert jnp.allclose(logits, logits_ref, atol=2e-2, rtol=2e-2), \
        float(jnp.max(jnp.abs(logits - logits_ref)))
    assert jnp.allclose(probs, probs_ref, atol=5e-3, rtol=5e-2), \
        float(jnp.max(jnp.abs(probs - probs_ref)))

    print("KERNEL_OK")
</pallas_src>

<mosaic_0001>
module attributes {stable_mosaic.version = 11 : i64} {
  func.func @_avg_classifier_kernel(%arg0: i32, %arg1: memref<128x8xi32, #tpu.memory_space<vmem>>, %arg2: memref<128x8xf32, #tpu.memory_space<vmem>>, %arg3: memref<128x32xf32, #tpu.memory_space<vmem>>, %arg4: memref<32x1024xbf16, #tpu.memory_space<vmem>>, %arg5: memref<1x1024xf32, #tpu.memory_space<vmem>>, %arg6: memref<1024x128xbf16, #tpu.memory_space<vmem>>, %arg7: memref<1x128xf32, #tpu.memory_space<vmem>>, %arg8: memref<128x128xf32, #tpu.memory_space<vmem>>, %arg9: memref<128x128xf32, #tpu.memory_space<vmem>>) attributes {dimension_semantics = [#tpu.dimension_semantics<parallel>], iteration_bounds = array<i64: 2>, scalar_prefetch = 0 : i64, scratch_operands = 0 : i64, tpu.core_type = #tpu.core_type<tc>, window_params = [{transform_indices = @transform_0, window_bounds = array<i64: 128, 8>}, {transform_indices = @transform_1, window_bounds = array<i64: 128, 8>}, {pipeline_mode = #tpu.pipeline_mode<synchronous>, transform_indices = @transform_2, window_bounds = array<i64: 128, 32>}, {pipeline_mode = #tpu.pipeline_mode<synchronous>, transform_indices = @transform_3, window_bounds = array<i64: 32, 1024>}, {pipeline_mode = #tpu.pipeline_mode<synchronous>, transform_indices = @transform_4, window_bounds = array<i64: 1, 1024>}, {pipeline_mode = #tpu.pipeline_mode<synchronous>, transform_indices = @transform_5, window_bounds = array<i64: 1024, 128>}, {pipeline_mode = #tpu.pipeline_mode<synchronous>, transform_indices = @transform_6, window_bounds = array<i64: 1, 128>}, {transform_indices = @transform_7, window_bounds = array<i64: 128, 128>}, {transform_indices = @transform_8, window_bounds = array<i64: 128, 128>}]} {
    %0 = tpu.iota {dimensions = array<i32: 1>} : vector<128x128xi32>
    %cst = arith.constant 0.000000e+00 : f32
    %1 = vector.broadcast %cst : f32 to vector<128x128xf32>
    %c0 = arith.constant 0 : index
    %c0_0 = arith.constant 0 : index
    %2 = vector.load %arg1[%c0, %c0_0] : memref<128x8xi32, #tpu.memory_space<vmem>>, vector<128x1xi32>
    %3 = vector.broadcast %2 : vector<128x1xi32> to vector<128x128xi32>
    %4 = arith.cmpi eq, %0, %3 : vector<128x128xi32>
    %5 = arith.extui %4 : vector<128x128xi1> to vector<128x128xi32>
    %6 = arith.sitofp %5 : vector<128x128xi32> to vector<128x128xf32>
    %7 = arith.addf %1, %6 : vector<128x128xf32>
    %c0_1 = arith.constant 0 : index
    %c1 = arith.constant 1 : index
    %8 = vector.load %arg1[%c0_1, %c1] : memref<128x8xi32, #tpu.memory_space<vmem>>, vector<128x1xi32>
    %9 = vector.broadcast %8 : vector<128x1xi32> to vector<128x128xi32>
    %10 = arith.cmpi eq, %0, %9 : vector<128x128xi32>
    %11 = arith.extui %10 : vector<128x128xi1> to vector<128x128xi32>
    %12 = arith.sitofp %11 : vector<128x128xi32> to vector<128x128xf32>
    %13 = arith.addf %7, %12 : vector<128x128xf32>
    %c0_2 = arith.constant 0 : index
    %c2 = arith.constant 2 : index
    %14 = vector.load %arg1[%c0_2, %c2] : memref<128x8xi32, #tpu.memory_space<vmem>>, vector<128x1xi32>
    %15 = vector.broadcast %14 : vector<128x1xi32> to vector<128x128xi32>
    %16 = arith.cmpi eq, %0, %15 : vector<128x128xi32>
    %17 = arith.extui %16 : vector<128x128xi1> to vector<128x128xi32>
    %18 = arith.sitofp %17 : vector<128x128xi32> to vector<128x128xf32>
    %19 = arith.addf %13, %18 : vector<128x128xf32>
    %c0_3 = arith.constant 0 : index
    %c3 = arith.constant 3 : index
    %20 = vector.load %arg1[%c0_3, %c3] : memref<128x8xi32, #tpu.memory_space<vmem>>, vector<128x1xi32>
    %21 = vector.broadcast %20 : vector<128x1xi32> to vector<128x128xi32>
    %22 = arith.cmpi eq, %0, %21 : vector<128x128xi32>
    %23 = arith.extui %22 : vector<128x128xi1> to vector<128x128xi32>
    %24 = arith.sitofp %23 : vector<128x128xi32> to vector<128x128xf32>
    %25 = arith.addf %19, %24 : vector<128x128xf32>
    %c0_4 = arith.constant 0 : index
    %c4 = arith.constant 4 : index
    %26 = vector.load %arg1[%c0_4, %c4] : memref<128x8xi32, #tpu.memory_space<vmem>>, vector<128x1xi32>
    %27 = vector.broadcast %26 : vector<128x1xi32> to vector<128x128xi32>
    %28 = arith.cmpi eq, %0, %27 : vector<128x128xi32>
    %29 = arith.extui %28 : vector<128x128xi1> to vector<128x128xi32>
    %30 = arith.sitofp %29 : vector<128x128xi32> to vector<128x128xf32>
    %31 = arith.addf %25, %30 : vector<128x128xf32>
    %c0_5 = arith.constant 0 : index
    %c5 = arith.constant 5 : index
    %32 = vector.load %arg1[%c0_5, %c5] : memref<128x8xi32, #tpu.memory_space<vmem>>, vector<128x1xi32>
    %33 = vector.broadcast %32 : vector<128x1xi32> to vector<128x128xi32>
    %34 = arith.cmpi eq, %0, %33 : vector<128x128xi32>
    %35 = arith.extui %34 : vector<128x128xi1> to vector<128x128xi32>
    %36 = arith.sitofp %35 : vector<128x128xi32> to vector<128x128xf32>
    %37 = arith.addf %31, %36 : vector<128x128xf32>
    %c0_6 = arith.constant 0 : index
    %c6 = arith.constant 6 : index
    %38 = vector.load %arg1[%c0_6, %c6] : memref<128x8xi32, #tpu.memory_space<vmem>>, vector<128x1xi32>
    %39 = vector.broadcast %38 : vector<128x1xi32> to vector<128x128xi32>
    %40 = arith.cmpi eq, %0, %39 : vector<128x128xi32>
    %41 = arith.extui %40 : vector<128x128xi1> to vector<128x128xi32>
    %42 = arith.sitofp %41 : vector<128x128xi32> to vector<128x128xf32>
    %43 = arith.addf %37, %42 : vector<128x128xf32>
    %c0_7 = arith.constant 0 : index
    %c7 = arith.constant 7 : index
    %44 = vector.load %arg1[%c0_7, %c7] : memref<128x8xi32, #tpu.memory_space<vmem>>, vector<128x1xi32>
    %45 = vector.broadcast %44 : vector<128x1xi32> to vector<128x128xi32>
    %46 = arith.cmpi eq, %0, %45 : vector<128x128xi32>
    %47 = arith.extui %46 : vector<128x128xi1> to vector<128x128xi32>
    %48 = arith.sitofp %47 : vector<128x128xi32> to vector<128x128xf32>
    %49 = arith.addf %43, %48 : vector<128x128xf32>
    %c0_8 = arith.constant 0 : index
    %c0_9 = arith.constant 0 : index
    %50 = vector.load %arg3[%c0_8, %c0_9] : memref<128x32xf32, #tpu.memory_space<vmem>>, vector<128x32xf32>
    %cst_10 = arith.constant dense<0.000000e+00> : vector<128x32xf32>
    %51 = tpu.matmul %49, %50, %cst_10 {dimension_numbers = #tpu.dot_dimension_numbers<[1], [0], [0], [1], [0, 0, 1, 1], [], []>} : vector<128x128xf32>, vector<128x32xf32>, vector<128x32xf32> -> vector<128x32xf32>
    %c0_11 = arith.constant 0 : index
    %c0_12 = arith.constant 0 : index
    %52 = vector.load %arg2[%c0_11, %c0_12] : memref<128x8xf32, #tpu.memory_space<vmem>>, vector<128x8xf32>
    %cst_13 = arith.constant dense<0.000000e+00> : vector<128xf32>
    %53 = vector.multi_reduction <add>, %52, %cst_13 [1] : vector<128x8xf32> to vector<128xf32>
    %54 = vector.shape_cast %53 : vector<128xf32> to vector<128x1xf32>
    %cst_14 = arith.constant 1.000000e+00 : f32
    %55 = vector.broadcast %cst_14 : f32 to vector<128x1xf32>
    %56 = arith.maximumf %54, %55 : vector<128x1xf32>
    %cst_15 = arith.constant 1.000000e+00 : f32
    %57 = vector.broadcast %cst_15 : f32 to vector<128x1xf32>
    %58 = arith.divf %57, %56 : vector<128x1xf32>
    %59 = vector.broadcast %58 : vector<128x1xf32> to vector<128x32xf32>
    %60 = arith.mulf %51, %59 : vector<128x32xf32>
    %61 = arith.truncf %60 : vector<128x32xf32> to vector<128x32xbf16>
    %c0_16 = arith.constant 0 : index
    %c0_17 = arith.constant 0 : index
    %62 = vector.load %arg4[%c0_16, %c0_17] : memref<32x1024xbf16, #tpu.memory_space<vmem>>, vector<32x1024xbf16>
    %cst_18 = arith.constant dense<0.000000e+00> : vector<128x1024xf32>
    %63 = tpu.matmul %61, %62, %cst_18 {dimension_numbers = #tpu.dot_dimension_numbers<[1], [0], [0], [1], [0, 0, 1, 1], [], []>} : vector<128x32xbf16>, vector<32x1024xbf16>, vector<128x1024xf32> -> vector<128x1024xf32>
    %c0_19 = arith.constant 0 : index
    %c0_20 = arith.constant 0 : index
    %64 = vector.load %arg5[%c0_19, %c0_20] : memref<1x1024xf32, #tpu.memory_space<vmem>>, vector<1x1024xf32>
    %65 = vector.broadcast %64 : vector<1x1024xf32> to vector<128x1024xf32>
    %66 = arith.addf %63, %65 : vector<128x1024xf32>
    %cst_21 = arith.constant 0.000000e+00 : f32
    %67 = vector.broadcast %cst_21 : f32 to vector<128x1024xf32>
    %68 = arith.maximumf %66, %67 : vector<128x1024xf32>
    %69 = arith.truncf %68 : vector<128x1024xf32> to vector<128x1024xbf16>
    %c0_22 = arith.constant 0 : index
    %c0_23 = arith.constant 0 : index
    %70 = vector.load %arg6[%c0_22, %c0_23] : memref<1024x128xbf16, #tpu.memory_space<vmem>>, vector<1024x128xbf16>
    %cst_24 = arith.constant dense<0.000000e+00> : vector<128x128xf32>
    %71 = tpu.matmul %69, %70, %cst_24 {dimension_numbers = #tpu.dot_dimension_numbers<[1], [0], [0], [1], [0, 0, 1, 1], [], []>} : vector<128x1024xbf16>, vector<1024x128xbf16>, vector<128x128xf32> -> vector<128x128xf32>
    %c0_25 = arith.constant 0 : index
    %c0_26 = arith.constant 0 : index
    %72 = vector.load %arg7[%c0_25, %c0_26] : memref<1x128xf32, #tpu.memory_space<vmem>>, vector<1x128xf32>
    %73 = vector.broadcast %72 : vector<1x128xf32> to vector<128x128xf32>
    %74 = arith.addf %71, %73 : vector<128x128xf32>
    %c0_27 = arith.constant 0 : index
    %c0_28 = arith.constant 0 : index
    %75 = vector.load %arg8[%c0_27, %c0_28] : memref<128x128xf32, #tpu.memory_space<vmem>>, vector<128x128xf32>
    tpu.vector_store %arg8[%c0_27, %c0_28], %74 {strides = array<i32>} : memref<128x128xf32, #tpu.memory_space<vmem>>, vector<128x128xf32>,
    %cst_29 = arith.constant dense<0xFF800000> : vector<128xf32>
    %76 = vector.multi_reduction <maximumf>, %74, %cst_29 [1] : vector<128x128xf32> to vector<128xf32>
    %77 = vector.shape_cast %76 : vector<128xf32> to vector<128x1xf32>
    %78 = vector.broadcast %77 : vector<128x1xf32> to vector<128x128xf32>
    %79 = arith.subf %74, %78 : vector<128x128xf32>
    %80 = math.exp %79 : vector<128x128xf32>
    %cst_30 = arith.constant dense<0.000000e+00> : vector<128xf32>
    %81 = vector.multi_reduction <add>, %80, %cst_30 [1] : vector<128x128xf32> to vector<128xf32>
    %82 = vector.shape_cast %81 : vector<128xf32> to vector<128x1xf32>
    %83 = tpu.reciprocal %82 {approx = true} : vector<128x1xf32> -> vector<128x1xf32>
    %84 = vector.broadcast %83 : vector<128x1xf32> to vector<128x128xf32>
    %85 = arith.mulf %80, %84 : vector<128x128xf32>
    %c0_31 = arith.constant 0 : index
    %c0_32 = arith.constant 0 : index
    %86 = vector.load %arg9[%c0_31, %c0_32] : memref<128x128xf32, #tpu.memory_space<vmem>>, vector<128x128xf32>
    tpu.vector_store %arg9[%c0_31, %c0_32], %85 {strides = array<i32>} : memref<128x128xf32, #tpu.memory_space<vmem>>, vector<128x128xf32>,
    return
  }
  func.func @transform_0(%arg0: i32) -> (i32, i32) {
    %c0_i32 = arith.constant 0 : i32
    %c0_i32_0 = arith.constant 0 : i32
    return %arg0, %c0_i32 : i32, i32
  }
  func.func @transform_1(%arg0: i32) -> (i32, i32) {
    %c0_i32 = arith.constant 0 : i32
    %c0_i32_0 = arith.constant 0 : i32
    return %arg0, %c0_i32 : i32, i32
  }
  func.func @transform_2(%arg0: i32) -> (i32, i32) {
    %c0_i32 = arith.constant 0 : i32
    %c0_i32_0 = arith.constant 0 : i32
    %c0_i32_1 = arith.constant 0 : i32
    return %c0_i32, %c0_i32_0 : i32, i32
  }
  func.func @transform_3(%arg0: i32) -> (i32, i32) {
    %c0_i32 = arith.constant 0 : i32
    %c0_i32_0 = arith.constant 0 : i32
    %c0_i32_1 = arith.constant 0 : i32
    return %c0_i32, %c0_i32_0 : i32, i32
  }
  func.func @transform_4(%arg0: i32) -> (i32, i32) {
    %c0_i32 = arith.constant 0 : i32
    %c0_i32_0 = arith.constant 0 : i32
    %c0_i32_1 = arith.constant 0 : i32
    return %c0_i32, %c0_i32_0 : i32, i32
  }
  func.func @transform_5(%arg0: i32) -> (i32, i32) {
    %c0_i32 = arith.constant 0 : i32
    %c0_i32_0 = arith.constant 0 : i32
    %c0_i32_1 = arith.constant 0 : i32
    return %c0_i32, %c0_i32_0 : i32, i32
  }
  func.func @transform_6(%arg0: i32) -> (i32, i32) {
    %c0_i32 = arith.constant 0 : i32
    %c0_i32_0 = arith.constant 0 : i32
    %c0_i32_1 = arith.constant 0 : i32
    return %c0_i32, %c0_i32_0 : i32, i32
  }
  func.func @transform_7(%arg0: i32) -> (i32, i32) {
    %c0_i32 = arith.constant 0 : i32
    %c0_i32_0 = arith.constant 0 : i32
    return %arg0, %c0_i32 : i32, i32
  }
  func.func @transform_8(%arg0: i32) -> (i32, i32) {
    %c0_i32 = arith.constant 0 : i32
    %c0_i32_0 = arith.constant 0 : i32
    return %arg0, %c0_i32 : i32, i32
  }
}

</mosaic_0001>

<bundles_post_ra>
// kernel: tpu_custom_call.1
= control target key start
LH: loop header
LB: loop body
LE: loop exit
PB: predicated region body
PF: predicated region fallthrough
CT: control target
= control target key end

     0   :  { %14 = vsyncpa [#allocation3], 0  ;;  %s6729_s0 = inlined_call_operand.vmem [shape: s32[256,8], index: 0, kind: input, shape index: {}]   ;;  %s6730_s1 = inlined_call_operand.vmem [shape: f32[256,8], index: 1, kind: input, shape index: {}]   ;;  %s6731_s2 = inlined_call_operand.vmem [shape: f32[128,32], index: 2, kind: input, shape index: {}]   ;;  %s6732_s3 = inlined_call_operand.vmem [shape: bf16[32,1024], index: 3, kind: input, shape index: {}]   ;;  %s6733_s4 = inlined_call_operand.vmem [shape: f32[1,1024], index: 4, kind: input, shape index: {}]   ;;  %s6734_s5 = inlined_call_operand.vmem [shape: bf16[1024,128], index: 5, kind: input, shape index: {}]   ;;  %s6735_s6 = inlined_call_operand.vmem [shape: f32[1,128], index: 6, kind: input, shape index: {}]   ;;  %s6736_s7 = inlined_call_operand.hbm [shape: f32[256,128], index: 7, kind: output, shape index: {0}]   ;;  %s6737_s8 = inlined_call_operand.hbm [shape: f32[256,128], index: 8, kind: output, shape index: {1}]  }
   0x1   :  { %16 = vsyncpa [#allocation3 + $0x1], 0 }
   0x2   :  { %17 = vsyncpa [#allocation5], 0 }
   0x3   :  { %19 = vsyncpa [#allocation5 + $0x1], 0  ;;  %s4643_s27 = smov 0   ;;  %s4645_s28 = smov 0  }
   0x4   :  { %s4647_s29 = smov 0   ;;  %s4649_s30 = smov 0  }
   0x5 LB: > { %s4664_s9 = sadd.s32 4294967295, %s4583_s30   ;;  %s3585_s10 = sadd.s32 4294967294, %s4583_s30   ;;  %s4583_s30 = sphi %s4649_s30, %s6818_s30   ;;  %s4579_s29 = sphi %s4647_s29, %s6817_s29   ;;  %s4575_s28 = sphi %s4645_s28, %s6816_s28   ;;  %s4571_s27 = sphi %s4643_s27, %s6815_s27  }
   0x6   : > { %s4668_s11 = sadd.s32 1, %s4583_s30   ;;  %s189_s12 = sadd.s32 1, %s4579_s29 }
   0x7   : > { %s186_s13 = ssub.s32 %s4583_s30, %s4668_s11  ;;  %p199_p0 = scmp.ne.s32.totalorder %s4579_s29, %s4575_s28 }
   0x8   : > { %p187_p1 = scmp.eq.s32.totalorder %s186_s13, 0  ;;  %p200_p2 = scmp.eq.s32.totalorder %s4664_s9, 1 }
   0x9   : > { %p205_p3 = scmp.ne.s32.totalorder %s4575_s28, %s4571_s27  ;;  %p206_p4 = scmp.eq.s32.totalorder %s3585_s10, 1 }
   0xa   : > { %s4679_s14 = scalar_select %p187_p1, %s4579_s29, %s189_s12  }
   0xb   : > { %p4681_p5 = por %p200_p2, %p199_p0  ;;  %p4685_p6 = por %p206_p4, %p205_p3 }
   0xc   : > { %p3588_p7 = scmp.ge.s32.totalorder %s4583_s30, 1  ;;  %p283_p8 = scmp.lt.s32.totalorder %s4583_s30, 3 }
   0xe   : > { %p284_p9 = pnand %p3588_p7, %p283_p8 }
  0x10   : > { %287 = sbr.rel (%p284_p9) target bundleno = 1570 (0x622), region = 48 }
  0x15   : > { %s3591_s17 = sshll.u32 %s4664_s9, 4  ;;  %v6740_v0 = vmov 3   ;;  %v6753_v1 = vmov 0   ;;  %v6751_v5 = vmov 1   ;;  %v6748_v7 = vmov 4   ;;  %v1271_v22 = vld [vmem:[%s6731_s2 + $0x78] sm:$0xff] }
  0x16   : > { %4262 = vset.pattern.permute.xlu0 %v6740_v0  ;;  %4249 = vset.pattern.permute.xlu1 %v6753_v1  ;;  %p328_p10 = scmp.lt.s32.totalorder %s3591_s17, 31  ;;  %v6746_v8 = vmov 2   ;;  %v6744_v12 = vmov 6   ;;  %v6738_v14 = vmov 5   ;;  %v6742_v18 = vmov 7   ;;  %v1270_v23 = vld [vmem:[%s6731_s2 + $0x70] sm:$0xff] }
  0x17   : > { %1749 = vmatprep.mubr.bf16.mxu1 %v6753_v1  ;;  %4134 = vmatprep.subr.mxu0 %v1271_v22  ;;  %v1269_v24 = vld [vmem:[%s6731_s2 + $0x68] sm:$0xff]  ;;  %v1268_v25 = vld [vmem:[%s6731_s2 + $0x60] sm:$0xff]  ;;  %v1267_v26 = vld [vmem:[%s6731_s2 + $0x58] sm:$0xff]  ;;  %vm1433_vm0 = vcmask 64512   ;;  %s6379_s22 = sand.u32 1, %s4575_s28   ;;  %s6756_s25 = sshll.u32 %s4664_s9, 11 }
  0x18   : > { %s6820_s17 = smov (!%p328_p10, %s3591_s17), 31  ;;  %4135 = vmatpush3.msra.mxu0 %v1271_v22  ;;  %v1266_v27 = vld [vmem:[%s6731_s2 + $0x50] sm:$0xff]  ;;  %v1265_v31 = vld [vmem:[%s6731_s2 + $0x48] sm:$0xff]  ;;  %v1264_v32 = vld [vmem:[%s6731_s2 + $0x40] sm:$0xff]  ;;  %s6757_s23 = sshll.u32 %s6379_s22, 7 }
  0x19   : > { %s3592_s18 = sshll.u32 %s6820_s17, 3  ;;  %4136 = vmatprep.subr.mxu0 %v1270_v23  ;;  %v1263_v36 = vld [vmem:[%s6731_s2 + $0x38] sm:$0xff]  ;;  %v1262_v37 = vld [vmem:[%s6731_s2 + $0x30] sm:$0xff]  ;;  %v1261_v40 = vld [vmem:[%s6731_s2 + $0x28] sm:$0xff]  ;;  %s6398_s24 = scalar_lea.vmem [#allocation2], %s6757_s23 }
  0x1a   : > { %s4703_s21 = scalar_lea.vmem %s6729_s0, %s3592_s18  ;;  %4137 = vmatpush3.msra.mxu0 %v1270_v23  ;;  %v1260_v42 = vld [vmem:[%s6731_s2 + $0x20] sm:$0xff]  ;;  %v1259_v44 = vld [vmem:[%s6731_s2 + $0x18] sm:$0xff]  ;;  %v1258_v46 = vld [vmem:[%s6731_s2 + $0x10] sm:$0xff]  ;;  %s5027_s26 = scalar_lea.vmem %s6730_s1, %s3592_s18 }
  0x1b   : > { %v4706_v2 = vld [vmem:[%s4703_s21 + $0x18] sm:$0xff]  ;;  %v4709_v3 = vld [vmem:[%s4703_s21 + $0x8] sm:$0xff]  ;;  %v4714_v4 = vld [vmem:[%s4703_s21 + $0x20] sm:$0xff]  ;;  %4138 = vmatprep.subr.mxu0 %v1269_v24  ;;  %s3463_s17 = sshll.u32 %s6398_s24, 4  ;;  %s3445_s10 = scalar_lea.sflag [#allocation3], %s6379_s22  ;;  %s6614_s17 = int_to_ptr.vmem [resolvable:$true] %s3463_s17 }
  0x1c   : > { %706 = vperm.xlu0 %4262, %v4706_v2   ;;  %364 = vperm.xlu1 %4249, %v4709_v3   ;;  %v4719_v6 = vld [vmem:[%s4703_s21] sm:$0xff]  ;;  %v4727_v9 = vld [vmem:[%s4703_s21 + $0x30] sm:$0xff]  ;;  %v4733_v10 = vld [vmem:[%s4703_s21 + $0x48] sm:$0xff]  ;;  %s4493_s12 = scalar_lea.vmem %s6614_s17, 2048  ;;  %s4594_s13 = smov [#allocation2]  }
  0x1d   : > { %v4741_v11 = vld [vmem:[%s4703_s21 + $0x10] sm:$0xff]  ;;  %v4748_v13 = vld [vmem:[%s4703_s21 + $0x38] sm:$0xff]  ;;  %v4753_v15 = vld [vmem:[%s4703_s21 + $0x40] sm:$0xff]  ;;  %4139 = vmatpush3.msra.mxu0 %v1269_v24  ;;  %p4494_p11 = scmp.ne.s32.totalorder %s6614_s17, %s4493_s12  ;;  %s4497_s19 = sshll.u32 %s4594_s13, 4  ;;  %s4498_s19 = int_to_ptr.vmem [resolvable:$false] %s4497_s19 }
  0x1e   : > { %v4769_v16 = vld [vmem:[%s4703_s21 + $0x60] sm:$0xff]  ;;  %v4775_v17 = vld [vmem:[%s4703_s21 + $0x68] sm:$0xff]  ;;  %v4797_v20 = vld [vmem:[%s4703_s21 + $0x58] sm:$0xff]  ;;  %4140 = vmatprep.subr.mxu0 %v1268_v25  ;;  %s4499_s20 = scalar_lea.vmem %s4498_s19, 4096  ;;  %p4500_p0 = scmp.lt.s32.totalorder %s6614_s17, %s4498_s19 }
  0x1f   : > { %v4787_v19 = vld [vmem:[%s4703_s21 + $0x28] sm:$0xff]  ;;  %v4813_v21 = vld [vmem:[%s4703_s21 + $0x50] sm:$0xff]  ;;  %4141 = vmatpush3.msra.mxu0 %v1268_v25  ;;  %v4865_v33 = vld [vmem:[%s4703_s21 + $0x78] sm:$0xff]  ;;  %p4495_p12 = pnand %p4494_p11, %p4681_p5  ;;  %p4501_p1 = scmp.lt.s32.totalorder %s4499_s20, %s4493_s12 }
  0x20   : > { %709 = vperm.xlu0 %4262, %v4714_v4   ;;  %4250 = vset.pattern.permute.xlu1 %v6751_v5  ;;  %v4852_v29 = vld [vmem:[%s4703_s21 + $0x70] sm:$0xff]  ;;  %v1257_v48 = vld [vmem:[%s6731_s2 + $0x8] sm:$0xff]  ;;  %v1256_v50 = vld [vmem:[%s6731_s2] sm:$0xff] }
  0x21   : > { %476 = vperm.xlu1 %4250, %v4709_v3   ;;  %4142 = vmatprep.subr.mxu0 %v1267_v26  ;;  %p4496_p13 = pneg %p4495_p12  ;;  %p4502_p2 = por %p4501_p1, %p4500_p0 }
  0x22   : > { %4143 = vmatpush3.msra.mxu0 %v1267_v26 }
  0x23   : > { %4144 = vmatprep.subr.mxu0 %v1266_v27  ;;  %p4503_p3 = pnand %p4502_p2, %p4496_p13 }
  0x24   : > { %4270 = vset.pattern.permute.xlu0 %v6748_v7  ;;  %4145 = vmatpush3.msra.mxu0 %v1266_v27 }
  0x25   : > { %4251 = vset.pattern.permute.xlu1 %v6746_v8  ;;  %809 = vperm.xlu0 %4270, %v4719_v6  }
  0x26   : > { %585 = vperm.xlu1 %4251, %v4719_v6   ;;  %4146 = vmatprep.subr.mxu0 %v1265_v31 }
  0x27   : > { %4147 = vmatpush3.msra.mxu0 %v1265_v31 }
  0x28   : > { %4148 = vmatprep.subr.mxu0 %v1264_v32 }
  0x29   : > { %818 = vperm.xlu0 %4270, %v4706_v2   ;;  %4149 = vmatpush3.msra.mxu0 %v1264_v32 }
  0x2a   : > { %4252 = vset.pattern.permute.xlu1 %v6740_v0  ;;  %4150 = vmatprep.subr.mxu0 %v1263_v36 }
  0x2b   : > { %697 = vperm.xlu1 %4252, %v4719_v6   ;;  %4151 = vmatpush3.msra.mxu0 %v1263_v36 }
  0x2c   : > { %4152 = vmatprep.subr.mxu0 %v1262_v37 }
  0x2d   : > { %827 = vperm.xlu0 %4270, %v4727_v9   ;;  %4153 = vmatpush3.msra.mxu0 %v1262_v37 }
  0x2e   : > { %4154 = vmatprep.subr.mxu0 %v1261_v40 }
  0x2f   : > { %700 = vperm.xlu1 %4252, %v4709_v3   ;;  %4155 = vmatpush3.msra.mxu0 %v1261_v40 }
  0x30   : > { %4156 = vmatprep.subr.mxu0 %v1260_v42 }
  0x31   : > { %836 = vperm.xlu0 %4270, %v4733_v10   ;;  %4157 = vmatpush3.msra.mxu0 %v1260_v42 }
  0x32   : > { %4158 = vmatprep.subr.mxu0 %v1259_v44 }
  0x33   : > { %4253 = vset.pattern.permute.xlu1 %v6748_v7  ;;  %4159 = vmatpush3.msra.mxu0 %v1259_v44 }
  0x34   : > { %812 = vperm.xlu1 %4253, %v4709_v3   ;;  %4160 = vmatprep.subr.mxu0 %v1258_v46 }
  0x35   : > { %4291 = vset.pattern.permute.xlu0 %v6744_v12  ;;  %4161 = vmatpush3.msra.mxu0 %v1258_v46  ;;  %v1418_v46 = vld [vmem:[%s5027_s26 + $0x8] sm:$0xff] }
  0x36   : > { %1036 = vperm.xlu0 %4291, %v4709_v3   ;;  %4162 = vmatprep.subr.mxu0 %v1257_v48 }
  0x37   : > { %4163 = vmatpush3.msra.mxu0 %v1257_v48  ;;  %v1437_v48 = vsel %vm1433_vm0, %v1418_v46, 0.0 }
  0x38   : > { %4254 = vset.pattern.permute.xlu1 %v6753_v1  ;;  %4164 = vmatprep.subr.mxu0 %v1256_v50 }
  0x39   : > { %367 = vperm.xlu1 %4254, %v4741_v11   ;;  %4165 = vmatpush3.msra.mxu0 %v1256_v50  ;;  %v6750_v50 = vlaneseq }
  0x3a   : > { %1039 = vperm.xlu0 %4291, %v4741_v11  }
  0x3d   : > { %4255 = vset.pattern.permute.xlu1 %v6738_v14 }
  0x3e   : > { %1054 = vperm.xlu0 %4291, %v4748_v13   ;;  %921 = vperm.xlu1 %4255, %v4719_v6  }
  0x42   : > { %1057 = vperm.xlu0 %4291, %v4753_v15   ;;  %4256 = vset.pattern.permute.xlu1 %v6753_v1 }
  0x43   : > { %370 = vperm.xlu1 %4256, %v4706_v2  }
  0x46   : > { %4297 = vset.pattern.permute.xlu0 %v6753_v1 }
  0x47   : > { %361 = vperm.xlu0 %4297, %v4719_v6   ;;  %4257 = vset.pattern.permute.xlu1 %v6738_v14 }
  0x48   : > { %924 = vperm.xlu1 %4257, %v4709_v3  }
  0x4b   : > { %379 = vperm.xlu0 %4297, %v4727_v9  }
  0x4c   : > { %4258 = vset.pattern.permute.xlu1 %v6744_v12 }
  0x4d   : > { %1033 = vperm.xlu1 %4258, %v4719_v6  }
  0x4f   : > { %382 = vperm.xlu0 %4297, %v4748_v13  }
  0x51   : > { %4259 = vset.pattern.permute.xlu1 %v6746_v8 }
  0x52   : > { %594 = vperm.xlu1 %4259, %v4706_v2  }
  0x53   : > { %397 = vperm.xlu0 %4297, %v4769_v16  }
  0x56   : > { %4260 = vset.pattern.permute.xlu1 %v6740_v0 }
  0x57   : > { %400 = vperm.xlu0 %4297, %v4775_v17   ;;  %703 = vperm.xlu1 %4260, %v4741_v11  }
  0x5b   : > { %4304 = vset.pattern.permute.xlu0 %v6738_v14  ;;  %4261 = vset.pattern.permute.xlu1 %v6742_v18 }
  0x5c   : > { %927 = vperm.xlu0 %4304, %v4741_v11   ;;  %1145 = vperm.xlu1 %4261, %v4719_v6  }
  0x60   : > { %930 = vperm.xlu0 %4304, %v4706_v2   ;;  %1148 = vperm.xlu1 %4261, %v4709_v3  }
  0x64   : > { %936 = vperm.xlu0 %4304, %v4787_v19   ;;  %4263 = vset.pattern.permute.xlu1 %v6748_v7 }
  0x65   : > { %815 = vperm.xlu1 %4263, %v4741_v11  }
  0x68   : > { %945 = vperm.xlu0 %4304, %v4753_v15  }
  0x69   : > { %4264 = vset.pattern.permute.xlu1 %v6753_v1 }
  0x6a   : > { %373 = vperm.xlu1 %4264, %v4714_v4  }
  0x6c   : > { %948 = vperm.xlu0 %4304, %v4733_v10  }
  0x6e   : > { %4265 = vset.pattern.permute.xlu1 %v6751_v5 }
  0x6f   : > { %485 = vperm.xlu1 %4265, %v4714_v4  }
  0x70   : > { %954 = vperm.xlu0 %4304, %v4797_v20  }
  0x73   : > { %4266 = vset.pattern.permute.xlu1 %v6753_v1 }
  0x74   : > { %4306 = vset.pattern.permute.xlu0 %v6742_v18  ;;  %376 = vperm.xlu1 %4266, %v4787_v19  }
  0x75   : > { %1154 = vperm.xlu0 %4306, %v4706_v2  }
  0x78   : > { %4267 = vset.pattern.permute.xlu1 %v6751_v5 }
  0x79   : > { %1157 = vperm.xlu0 %4306, %v4714_v4   ;;  %488 = vperm.xlu1 %4267, %v4787_v19  }
  0x7d   : > { %1172 = vperm.xlu0 %4306, %v4733_v10   ;;  %4268 = vset.pattern.permute.xlu1 %v6746_v8 }
  0x7e   : > { %597 = vperm.xlu1 %4268, %v4714_v4  }
  0x81   : > { %1175 = vperm.xlu0 %4306, %v4813_v21  }
  0x82   : > { %600 = vperm.xlu1 %4268, %v4787_v19  }
  0x85   : > { %4310 = vset.pattern.permute.xlu0 %v6751_v5 }
  0x86   : > { %473 = vperm.xlu0 %4310, %v4719_v6   ;;  %4269 = vset.pattern.permute.xlu1 %v6744_v12 }
  0x87   : > { %1042 = vperm.xlu1 %4269, %v4706_v2  }
  0x8a   : > { %479 = vperm.xlu0 %4310, %v4741_v11  }
  0x8b   : > { %4271 = vset.pattern.permute.xlu1 %v6742_v18 }
  0x8c   : > { %1151 = vperm.xlu1 %4271, %v4741_v11  }
  0x8e   : > { %482 = vperm.xlu0 %4310, %v4706_v2  }
  0x90   : > { %4272 = vset.pattern.permute.xlu1 %v6740_v0 }
  0x91   : > { %712 = vperm.xlu1 %4272, %v4787_v19  }
  0x92   : > { %497 = vperm.xlu0 %4310, %v4753_v15  }
  0x95   : > { %4273 = vset.pattern.permute.xlu1 %v6748_v7 }
  0x96   : > { %500 = vperm.xlu0 %4310, %v4733_v10   ;;  %821 = vperm.xlu1 %4273, %v4714_v4  }
  0x97   : > { %v4849_v28 = vpop.permute.xlu1 %364  ;;  %v4854_v30 = vpop.permute.xlu0 %706 }
  0x9a   : > { %515 = vperm.xlu0 %4310, %v4852_v29   ;;  %824 = vperm.xlu1 %4273, %v4787_v19  }
  0x9b   : > { %v4867_v34 = vpop.permute.xlu0 %709 }
  0x9c   : > { %v4869_v35 = vpop.permute.xlu1 %476 }
  0x9e   : > { %518 = vperm.xlu0 %4310, %v4865_v33   ;;  %4274 = vset.pattern.permute.xlu1 %v6751_v5 }
  0x9f   : > { %491 = vperm.xlu1 %4274, %v4727_v9  }
  0xa0   : > { %v4880_v38 = vpop.permute.xlu0 %809 }
  0xa1   : > { %v4882_v39 = vpop.permute.xlu1 %585 }
  0xa2   : > { %4316 = vset.pattern.permute.xlu0 %v6746_v8 }
  0xa3   : > { %588 = vperm.xlu0 %4316, %v4709_v3   ;;  %4275 = vset.pattern.permute.xlu1 %v6738_v14 }
  0xa4   : > { %933 = vperm.xlu1 %4275, %v4714_v4   ;;  %v4891_v41 = vpop.permute.xlu0 %818 }
  0xa6   : > { %v4896_v43 = vpop.permute.xlu1 %697 }
  0xa7   : > { %591 = vperm.xlu0 %4316, %v4741_v11  }
  0xa8   : > { %4276 = vset.pattern.permute.xlu1 %v6751_v5  ;;  %v4903_v45 = vpop.permute.xlu0 %827 }
  0xa9   : > { %494 = vperm.xlu1 %4276, %v4748_v13  }
  0xaa   : > { %v4909_v47 = vpop.permute.xlu1 %700 }
  0xab   : > { %606 = vperm.xlu0 %4316, %v4748_v13  }
  0xac   : > { %v4915_v49 = vpop.permute.xlu0 %836 }
  0xad   : > { %4277 = vset.pattern.permute.xlu1 %v6746_v8 }
  0xae   : > { %603 = vperm.xlu1 %4277, %v4727_v9  }
  0xaf   : > { %v4922_v51 = vpop.permute.xlu1 %812  ;;  %609 = vperm.xlu0 %4316, %v4753_v15  }
  0xb1   : > { %v4925_v52 = vpop.permute.xlu0 %1036 }
  0xb2   : > { %4278 = vset.pattern.permute.xlu1 %v6744_v12 }
  0xb3   : > { %1045 = vperm.xlu1 %4278, %v4714_v4   ;;  %624 = vperm.xlu0 %4316, %v4775_v17  }
  0xb4   : > { %v4930_v53 = vpop.permute.xlu1 %367 }
  0xb5   : > { %v4932_v54 = vpop.permute.xlu0 %1039 }
  0xb7   : > { %1048 = vperm.xlu1 %4278, %v4787_v19   ;;  %627 = vperm.xlu0 %4316, %v4852_v29  }
  0xb9   : > { %v4936_v55 = vpop.permute.xlu1 %921  ;;  %v4938_v56 = vpop.permute.xlu0 %1054 }
  0xbb   : > { %4279 = vset.pattern.permute.xlu1 %v6740_v0  ;;  %4318 = vset.pattern.permute.xlu0 %v6740_v0 }
  0xbc   : > { %715 = vperm.xlu1 %4279, %v4727_v9   ;;  %724 = vperm.xlu0 %4318, %v4733_v10  }
  0xbd   : > { %v4944_v57 = vpop.permute.xlu0 %1057 }
  0xbe   : > { %6760 = vst [vmem:[#allocation8_spill] sm:$0xff] %v4944_v57  ;;  %v4946_v58 = vpop.permute.xlu1 %370 }
  0xc0   : > { %718 = vperm.xlu1 %4279, %v4748_v13   ;;  %727 = vperm.xlu0 %4318, %v4813_v21  }
  0xc2   : > { %v4950_v59 = vpop.permute.xlu0 %361 }
  0xc3   : > { %v4952_v60 = vpop.permute.xlu1 %924 }
  0xc4   : > { %4280 = vset.pattern.permute.xlu1 %v6742_v18  ;;  %742 = vperm.xlu0 %4318, %v4865_v33  }
  0xc5   : > { %1160 = vperm.xlu1 %4280, %v4787_v19  }
  0xc6   : > { %v4957_v61 = vpop.permute.xlu0 %379 }
  0xc8   : > { %v4959_v62 = vpop.permute.xlu1 %1033  ;;  %4323 = vset.pattern.permute.xlu0 %v6748_v7 }
  0xc9   : > { %4281 = vset.pattern.permute.xlu1 %v6748_v7  ;;  %845 = vperm.xlu0 %4323, %v4769_v16  }
  0xca   : > { %830 = vperm.xlu1 %4281, %v4748_v13   ;;  %v4965_v63 = vpop.permute.xlu0 %382 }
  0xcd   : > { %v4967_v2 = vpop.permute.xlu1 %594  ;;  %854 = vperm.xlu0 %4323, %v4865_v33  }
  0xce   : > { %4282 = vset.pattern.permute.xlu1 %v6753_v1  ;;  %v4971_v3 = vpop.permute.xlu0 %397 }
  0xcf   : > { %6761 = vst [vmem:[#allocation9_spill] sm:$0xff] %v4971_v3  ;;  %385 = vperm.xlu1 %4282, %v4753_v15  }
  0xd1   : > { %4325 = vset.pattern.permute.xlu0 %v6744_v12 }
  0xd2   : > { %v4975_v4 = vpop.permute.xlu1 %703  ;;  %v4977_v6 = vpop.permute.xlu0 %400  ;;  %1072 = vperm.xlu0 %4325, %v4775_v17  }
  0xd3   : > { %6762 = vst [vmem:[#allocation10_spill] sm:$0xff] %v4977_v6  ;;  %4283 = vset.pattern.permute.xlu1 %v6738_v14 }
  0xd4   : > { %939 = vperm.xlu1 %4283, %v4727_v9  }
  0xd6   : > { %1075 = vperm.xlu0 %4325, %v4852_v29  }
  0xd7   : > { %v4983_v11 = vpop.permute.xlu1 %1145  ;;  %v4985_v19 = vpop.permute.xlu0 %927 }
  0xd8   : > { %4284 = vset.pattern.permute.xlu1 %v6753_v1 }
  0xd9   : > { %388 = vperm.xlu1 %4284, %v4733_v10  }
  0xda   : > { %4329 = vset.pattern.permute.xlu0 %v6742_v18 }
  0xdb   : > { %v4990_v22 = vpop.permute.xlu1 %1148  ;;  %v4992_v23 = vpop.permute.xlu0 %930  ;;  %1190 = vperm.xlu0 %4329, %v4865_v33  }
  0xdd   : > { %4285 = vset.pattern.permute.xlu1 %v6738_v14 }
  0xde   : > { %942 = vperm.xlu1 %4285, %v4748_v13  }
  0xdf   : > { %v4997_v24 = vpop.permute.xlu0 %936 }
  0xe0   : > { %v4999_v25 = vpop.permute.xlu1 %815 }
  0xe2   : > { %4286 = vset.pattern.permute.xlu1 %v6744_v12  ;;  %v5046_v12 = vand.u32 127, %v6750_v50 }
  0xe3   : > { %1051 = vperm.xlu1 %4286, %v4727_v9   ;;  %v5003_v26 = vpop.permute.xlu0 %945 }
  0xe4   : > { %vm408_vm1 = vcmp.eq.s32.totalorder %v5046_v12, %v4950_v59  ;;  %vm632_vm2 = vcmp.eq.s32.totalorder %v5046_v12, %v4882_v39  ;;  %vm856_vm4 = vcmp.eq.s32.totalorder %v5046_v12, %v4880_v38  ;;  %vm744_vm5 = vcmp.eq.s32.totalorder %v5046_v12, %v4896_v43 }
  0xe5   : > { %v5005_v27 = vpop.permute.xlu1 %373  ;;  %vm968_vm6 = vcmp.eq.s32.totalorder %v5046_v12, %v4936_v55  ;;  %vm1080_vm7 = vcmp.eq.s32.totalorder %v5046_v12, %v4959_v62  ;;  %vm1192_vm8 = vcmp.eq.s32.totalorder %v5046_v12, %v4983_v11  ;;  %v6767_v11 = vmov 2  }
  0xe6   : > { %vm411_vm10 = vcmp.eq.s32.totalorder %v5046_v12, %v4946_v58  ;;  %vm521_vm11 = vcmp.eq.s32.totalorder %v5046_v12, %v4869_v35  ;;  %vm409_vm12 = vcmp.eq.s32.totalorder %v5046_v12, %v4849_v28  ;;  %vm635_vm13 = vcmp.eq.s32.totalorder %v5046_v12, %v4967_v2 }
  0xe7   : > { %4287 = vset.pattern.permute.xlu1 %v6746_v8  ;;  %v5008_v31 = vpop.permute.xlu0 %948  ;;  %vm747_vm14 = vcmp.eq.s32.totalorder %v5046_v12, %v4854_v30  ;;  %vm748_vm15 = vcmp.eq.s32.totalorder %v5046_v12, %v4867_v34 }
  0xe8   : > { %612 = vperm.xlu1 %4287, %v4733_v10  }
  0xea   : > { %v5011_v32 = vpop.permute.xlu1 %485 }
  0xeb   : > { %v5013_v36 = vpop.permute.xlu0 %954 }
  0xec   : > { %6763 = vst [vmem:[#allocation11_spill] sm:$0xff] %v5013_v36  ;;  %4288 = vset.pattern.permute.xlu1 %v6740_v0  ;;  %v1420_v0 = vld [vmem:[%s5027_s26 + $0x18] sm:$0xff] }
  0xed   : > { %721 = vperm.xlu1 %4288, %v4753_v15  }
  0xef   : > { %v5017_v37 = vpop.permute.xlu1 %376 }
  0xf0   : > { %v5019_v40 = vpop.permute.xlu0 %1154 }
  0xf1   : > { %4289 = vset.pattern.permute.xlu1 %v6742_v18 }
  0xf2   : > { %1163 = vperm.xlu1 %4289, %v4727_v9   ;;  %v1443_v9 = vsel %vm1433_vm0, %v1420_v0, 0.0 }
  0xf4   : > { %v5030_v42 = vpop.permute.xlu1 %488  ;;  %v5032_v44 = vpop.permute.xlu0 %1157 }
  0xf6   : > { %1166 = vperm.xlu1 %4289, %v4748_v13   ;;  %v1422_v13 = vld [vmem:[%s5027_s26 + $0x28] sm:$0xff] }
  0xf8   : > { %v5037_v14 = vpop.permute.xlu0 %1172 }
  0xf9   : > { %v5040_v18 = vpop.permute.xlu1 %597 }
  0xfa   : > { %4290 = vset.pattern.permute.xlu1 %v6748_v7  ;;  %1438 = vadd.xlane.f32.xlu0 %v1437_v48  ;;  %v1449_v48 = vsel %vm1433_vm0, %v1422_v13, 0.0  ;;  %v4593_v7 = vmov 0.0   ;;  %v6765_v13 = vmov 1  }
  0xfb   : > { %833 = vperm.xlu1 %4290, %v4753_v15   ;;  %v3595_v0 = vsel %vm408_vm1, 1.0, %v4593_v7  ;;  %v3691_v55 = vsel %vm1080_vm7, 1.0, %v4593_v7  ;;  %v3707_v62 = vsel %vm1192_vm8, 1.0, %v4593_v7  ;;  %v3596_v28 = vsel %vm409_vm12, 1.0, %v4593_v7 }
  0xfc   : > { %v5048_v8 = vpop.permute.xlu0 %1175  ;;  %vm859_vm1 = vcmp.eq.s32.totalorder %v5046_v12, %v4891_v41  ;;  %v3630_v2 = vsel %vm635_vm13, 1.0, %v4593_v7  ;;  %vm524_vm7 = vcmp.eq.s32.totalorder %v5046_v12, %v5011_v32  ;;  %vm412_vm8 = vcmp.eq.s32.totalorder %v5046_v12, %v5005_v27 }
  0xfd   : > { %6764 = vst [vmem:[#allocation12_spill] sm:$0xff] %v5048_v8  ;;  %v5051_v46 = vpop.permute.xlu1 %600  ;;  %v3662_v41 = vsel %vm859_vm1, 1.0, %v4593_v7  ;;  %vm746_vm12 = vcmp.eq.s32.totalorder %v5046_v12, %v4975_v4  ;;  %vm971_vm13 = vcmp.eq.s32.totalorder %v5046_v12, %v4992_v23  ;;  %vm858_vm1 = vcmp.eq.s32.totalorder %v5046_v12, %v4999_v25 }
  0xfe   : > { %1444 = vadd.xlane.f32.xlu0 %v1443_v9  ;;  %v3678_v23 = vsel %vm971_vm13, 1.0, %v4593_v7  ;;  %v3661_v4 = vsel %vm858_vm1, 1.0, %v4593_v7  ;;  %vm637_vm13 = vcmp.eq.s32.totalorder %v5046_v12, %v5051_v46  ;;  %vm973_vm1 = vcmp.eq.s32.totalorder %v5046_v12, %v4997_v24 }
  0xff   : > { %4292 = vset.pattern.permute.xlu1 %v6753_v1  ;;  %v3627_v1 = vsel %vm632_vm2, 1.0, %v4593_v7  ;;  %vm745_vm2 = vcmp.eq.s32.totalorder %v5046_v12, %v4909_v47 }
 0x100   : > { %391 = vperm.xlu1 %4292, %v4813_v21  }
 0x101   : > { %v474_v50 = vpop.permute.xlu0 %473 }
 0x102   : > { %vm520_vm3 = vcmp.eq.s32.totalorder %v5046_v12, %v474_v50  ;;  %v5062_v5 = vpop.permute.xlu1 %1042  ;;  %1450 = vadd.xlane.f32.xlu0 %v1449_v48  ;;  %v3659_v50 = vsel %vm856_vm4, 1.0, %v4593_v7  ;;  %v3643_v48 = vsel %vm744_vm5, 1.0, %v4593_v7  ;;  %vm410_vm5 = vcmp.eq.s32.totalorder %v5046_v12, %v4930_v53 }
 0x103   : > { %v3611_v59 = vsel %vm520_vm3, 1.0, %v4593_v7  ;;  %vm857_vm3 = vcmp.eq.s32.totalorder %v5046_v12, %v4922_v51  ;;  %v3615_v51 = vsel %vm524_vm7, 1.0, %v4593_v7  ;;  %vm1195_vm7 = vcmp.eq.s32.totalorder %v5046_v12, %v5019_v40 }
 0x104   : > { %v568_v9 = vadd.f32 %v3611_v59, %v3595_v0  ;;  %4293 = vset.pattern.permute.xlu1 %v6765_v13  ;;  %v6766_v0 = vmov 0  }
 0x105   : > { %v5071_v6 = vpop.permute.xlu0 %479  ;;  %503 = vperm.xlu1 %4293, %v4813_v21  }
 0x106   : > { %v680_v39 = vadd.f32 %v3627_v1, %v568_v9  ;;  %v3675_v1 = vsel %vm968_vm6, 1.0, %v4593_v7  ;;  %vm522_vm4 = vcmp.eq.s32.totalorder %v5046_v12, %v5071_v6  ;;  %vm1081_vm6 = vcmp.eq.s32.totalorder %v5046_v12, %v4925_v52 }
 0x107   : > { %v5076_v3 = vpop.permute.xlu1 %1151  ;;  %v3644_v6 = vsel %vm745_vm2, 1.0, %v4593_v7  ;;  %v3613_v53 = vsel %vm522_vm4, 1.0, %v4593_v7  ;;  %vm1082_vm2 = vcmp.eq.s32.totalorder %v5046_v12, %v4932_v54 }
 0x108   : > { %v792_v38 = vadd.f32 %v3643_v48, %v680_v39 }
 0x109   : > { %v483_v43 = vpop.permute.xlu0 %482  ;;  %4294 = vset.pattern.permute.xlu1 %v6766_v0 }
 0x10a   : > { %394 = vperm.xlu1 %4294, %v4797_v20   ;;  %v904_v59 = vadd.f32 %v3659_v50, %v792_v38  ;;  %vm523_vm9 = vcmp.eq.s32.totalorder %v5046_v12, %v483_v43  ;;  %v3598_v43 = vsel %vm411_vm10, 1.0, %v4593_v7  ;;  %vm636_vm10 = vcmp.eq.s32.totalorder %v5046_v12, %v5040_v18 }
 0x10b   : > { %v3599_v18 = vsel %vm412_vm8, 1.0, %v4593_v7  ;;  %vm1194_vm8 = vcmp.eq.s32.totalorder %v5046_v12, %v5076_v3 }
 0x10c   : > { %v5087_v9 = vpop.permute.xlu1 %712  ;;  %v1016_v36 = vadd.f32 %v3675_v1, %v904_v59 }
 0x10d   : > { %v5090_v39 = vpop.permute.xlu0 %497 }
 0x10e   : > { %4295 = vset.pattern.permute.xlu1 %v6765_v13  ;;  %v1128_v48 = vadd.f32 %v3691_v55, %v1016_v36  ;;  %v3614_v36 = vsel %vm523_vm9, 1.0, %v4593_v7 }
 0x10f   : > { %506 = vperm.xlu1 %4295, %v4797_v20   ;;  %v571_v58 = vadd.f32 %v3614_v36, %v3598_v43  ;;  %v3646_v43 = vsel %vm747_vm14, 1.0, %v4593_v7 }
 0x110   : > { %v1240_v50 = vadd.f32 %v3707_v62, %v1128_v48  ;;  %v3612_v48 = vsel %vm521_vm11, 1.0, %v4593_v7  ;;  %v1424_v62 = vld [vmem:[%s5027_s26 + $0x38] sm:$0xff]  ;;  %vm969_vm11 = vcmp.eq.s32.totalorder %v5046_v12, %v4952_v60 }
 0x111   : > { %v5095_v38 = vpop.permute.xlu1 %821  ;;  %v5097_v8 = vpop.permute.xlu0 %500  ;;  %v683_v30 = vadd.f32 %v3630_v2, %v571_v58  ;;  %v1455_v34 = vsel %vm1433_vm0, %v1424_v62, 0.0  ;;  %v569_v36 = vadd.f32 %v3612_v48, %v3596_v28  ;;  %v3597_v48 = vsel %vm410_vm5, 1.0, %v4593_v7 }
 0x112   : > { %4166 = vmatprep.mubr.f32.mxu0 %v1240_v50  ;;  %v6770_v50 = vmov 6   ;;  %1456 = vadd.xlane.f32.xlu0 %v1455_v34  ;;  %v3692_v28 = vsel %vm1081_vm6, 1.0, %v4593_v7  ;;  %v6771_v62 = vmov 7   ;;  %v570_v34 = vadd.f32 %v3613_v53, %v3597_v48 }
 0x113   : > { %4296 = vset.pattern.permute.xlu1 %v6767_v11  ;;  %v795_v32 = vadd.f32 %v3646_v43, %v683_v30  ;;  %v3631_v30 = vsel %vm636_vm10, 1.0, %v4593_v7  ;;  %v572_v43 = vadd.f32 %v3615_v51, %v3599_v18  ;;  %vm860_vm4 = vcmp.eq.s32.totalorder %v5046_v12, %v5095_v38 }
 0x114   : > { %615 = vperm.xlu1 %4296, %v4813_v21   ;;  %vm1083_vm5 = vcmp.eq.s32.totalorder %v5046_v12, %v5062_v5  ;;  %v3663_v5 = vsel %vm860_vm4, 1.0, %v4593_v7  ;;  %vm525_vm10 = vcmp.eq.s32.totalorder %v5046_v12, %v5030_v42  ;;  %vm414_vm4 = vcmp.eq.s32.totalorder %v5046_v12, %v4957_v61 }
 0x115   : > { %v5105_v59 = vpop.permute.xlu1 %824  ;;  %v5107_v1 = vpop.permute.xlu0 %515  ;;  %v684_v53 = vadd.f32 %v3631_v30, %v572_v43  ;;  %v3694_v18 = vsel %vm1083_vm5, 1.0, %v4593_v7  ;;  %v3616_v42 = vsel %vm525_vm10, 1.0, %v4593_v7 }
 0x116   : > { %6768 = vst [vmem:[#allocation13_spill] sm:$0xff] %v5107_v1 }
 0x118   : > { %618 = vperm.xlu1 %4296, %v4797_v20  }
 0x119   : > { %v5117_v55 = vpop.permute.xlu0 %518 }
 0x11a   : > { %6769 = vst [vmem:[#allocation14_spill] sm:$0xff] %v5117_v55  ;;  %v5124_v35 = vpop.permute.xlu1 %491  ;;  %v5139_v55 = vsel %vm748_vm15, 1.0, %v4593_v7  ;;  %vm970_vm15 = vcmp.eq.s32.totalorder %v5046_v12, %v4985_v19 }
 0x11b   : > { %v3677_v60 = vsel %vm970_vm15, 1.0, %v4593_v7  ;;  %v796_v19 = vadd.f32 %v5139_v55, %v684_v53  ;;  %v3710_v55 = vsel %vm1195_vm7, 1.0, %v4593_v7  ;;  %vm861_vm15 = vcmp.eq.s32.totalorder %v5046_v12, %v5105_v59 }
 0x11c   : > { %4298 = vset.pattern.permute.xlu1 %v6770_v50  ;;  %vm526_vm5 = vcmp.eq.s32.totalorder %v5046_v12, %v5124_v35 }
 0x11d   : > { %1060 = vperm.xlu1 %4298, %v4733_v10   ;;  %v3660_v10 = vsel %vm857_vm3, 1.0, %v4593_v7  ;;  %vm1193_vm3 = vcmp.eq.s32.totalorder %v5046_v12, %v4990_v22  ;;  %v3693_v22 = vsel %vm1082_vm2, 1.0, %v4593_v7  ;;  %v908_v38 = vadd.f32 %v3663_v5, %v796_v19 }
 0x11e   : > { %v589_v58 = vpop.permute.xlu0 %588 }
 0x11f   : > { %vm633_vm9 = vcmp.eq.s32.totalorder %v5046_v12, %v589_v58  ;;  %v934_v52 = vpop.permute.xlu1 %933  ;;  %v907_v58 = vadd.f32 %v3662_v41, %v795_v32  ;;  %v3645_v41 = vsel %vm746_vm12, 1.0, %v4593_v7  ;;  %v6772_v32 = vmov 3  }
 0x120   : > { %v3628_v47 = vsel %vm633_vm9, 1.0, %v4593_v7  ;;  %vm972_vm6 = vcmp.eq.s32.totalorder %v5046_v12, %v934_v52  ;;  %v6773_v52 = vmov 4   ;;  %vm1196_vm9 = vcmp.eq.s32.totalorder %v5046_v12, %v5032_v44 }
 0x121   : > { %v681_v2 = vadd.f32 %v3628_v47, %v569_v36  ;;  %4299 = vset.pattern.permute.xlu1 %v6771_v62  ;;  %v3679_v30 = vsel %vm972_vm6, 1.0, %v4593_v7  ;;  %vm413_vm12 = vcmp.eq.s32.totalorder %v5046_v12, %v5017_v37  ;;  %vm415_vm6 = vcmp.eq.s32.totalorder %v5046_v12, %v4965_v63 }
 0x122   : > { %v592_v27 = vpop.permute.xlu0 %591  ;;  %1169 = vperm.xlu1 %4299, %v4753_v15   ;;  %v1020_v43 = vadd.f32 %v3679_v30, %v908_v38  ;;  %v3600_v53 = vsel %vm413_vm12, 1.0, %v4593_v7  ;;  %v3602_v61 = vsel %vm415_vm6, 1.0, %v4593_v7 }
 0x123   : > { %v793_v36 = vadd.f32 %v3644_v6, %v681_v2  ;;  %vm634_vm14 = vcmp.eq.s32.totalorder %v5046_v12, %v592_v27  ;;  %v3676_v6 = vsel %vm969_vm11, 1.0, %v4593_v7  ;;  %v3708_v2 = vsel %vm1193_vm3, 1.0, %v4593_v7 }
 0x124   : > { %v3629_v47 = vsel %vm634_vm14, 1.0, %v4593_v7  ;;  %v5183_v1 = vpop.permute.xlu1 %494  ;;  %vm749_vm14 = vcmp.eq.s32.totalorder %v5046_v12, %v5087_v9  ;;  %v573_v37 = vadd.f32 %v3616_v42, %v3600_v53  ;;  %v3664_v9 = vsel %vm861_vm15, 1.0, %v4593_v7 }
 0x125   : > { %v905_v15 = vadd.f32 %v3660_v10, %v793_v36  ;;  %v682_v57 = vadd.f32 %v3629_v47, %v570_v34  ;;  %v1019_v10 = vadd.f32 %v3678_v23, %v907_v58  ;;  %v3709_v36 = vsel %vm1194_vm8, 1.0, %v4593_v7 }
 0x126   : > { %4300 = vset.pattern.permute.xlu1 %v6772_v32  ;;  %v3711_v47 = vsel %vm1196_vm9, 1.0, %v4593_v7  ;;  %v3648_v46 = vsel %vm749_vm14, 1.0, %v4593_v7  ;;  %vm527_vm7 = vcmp.eq.s32.totalorder %v5046_v12, %v5183_v1 }
 0x127   : > { %v794_v54 = vadd.f32 %v3645_v41, %v682_v57  ;;  %730 = vperm.xlu1 %4300, %v4797_v20   ;;  %v1017_v25 = vadd.f32 %v3676_v6, %v905_v15  ;;  %v1131_v40 = vadd.f32 %v3694_v18, %v1019_v10  ;;  %v6774_v10 = vmov 5  }
 0x128   : > { %v3618_v63 = vsel %vm527_vm7, 1.0, %v4593_v7 }
 0x129   : > { %v906_v48 = vadd.f32 %v3661_v4, %v794_v54  ;;  %v5213_v57 = vpop.permute.xlu1 %603  ;;  %v1129_v51 = vadd.f32 %v3692_v28, %v1017_v25  ;;  %v1243_v44 = vadd.f32 %v3710_v55, %v1131_v40  ;;  %v3632_v54 = vsel %vm637_vm13, 1.0, %v4593_v7 }
 0x12a   : > { %v685_v25 = vadd.f32 %v3632_v54, %v573_v37  ;;  %vm638_vm8 = vcmp.eq.s32.totalorder %v5046_v12, %v5213_v57 }
 0x12b   : > { %4301 = vset.pattern.permute.xlu1 %v6773_v52  ;;  %v1241_v28 = vadd.f32 %v3708_v2, %v1129_v51  ;;  %v1018_v27 = vadd.f32 %v3677_v60, %v906_v48  ;;  %v3680_v48 = vsel %vm973_vm1, 1.0, %v4593_v7  ;;  %v3633_v1 = vsel %vm638_vm8, 1.0, %v4593_v7 }
 0x12c   : > { %839 = vperm.xlu1 %4301, %v4813_v21   ;;  %v797_v4 = vadd.f32 %v3648_v46, %v685_v25  ;;  %vm528_vm8 = vcmp.eq.s32.totalorder %v5046_v12, %v5090_v39  ;;  %v4491_v39 = vld [vmem:[%s4703_s21 + $0x68] sm:$0xff] }
 0x12d   : > { %4167 = vmatmul.mubr.f32.vlgmr.msra.gmra.mxu0 %v1241_v28  ;;  %v1130_v34 = vadd.f32 %v3693_v22, %v1018_v27  ;;  %v1426_v27 = vld [vmem:[%s5027_s26 + $0x48] sm:$0xff] }
 0x12e   : > { %v1046_v3 = vpop.permute.xlu1 %1045  ;;  %v909_v22 = vadd.f32 %v3664_v9, %v797_v4 }
 0x12f   : > { %vm1084_vm11 = vcmp.eq.s32.totalorder %v5046_v12, %v1046_v3  ;;  %v1242_v58 = vadd.f32 %v3709_v36, %v1130_v34  ;;  %v3601_v34 = vsel %vm414_vm4, 1.0, %v4593_v7  ;;  %v607_v36 = vpop.permute.xlu0 %606 }
 0x130   : > { %v3695_v23 = vsel %vm1084_vm11, 1.0, %v4593_v7  ;;  %842 = vperm.xlu1 %4301, %v4797_v20   ;;  %v1021_v2 = vadd.f32 %v3680_v48, %v909_v22  ;;  %vm639_vm10 = vcmp.eq.s32.totalorder %v5046_v12, %v607_v36  ;;  %vm862_vm11 = vcmp.eq.s32.totalorder %v5046_v12, %v4903_v45 }
 0x131   : > { %v1132_v15 = vadd.f32 %v3695_v23, %v1020_v43  ;;  %4169 = vmatprep.mubr.f32.mxu0 %v1242_v58  ;;  %v575_v43 = vadd.f32 %v3618_v63, %v3602_v61 }
 0x132   : > { %4170 = vmatmul.mubr.f32.gmra.mxu0 %v1243_v44  ;;  %v1049_v6 = vpop.permute.xlu1 %1048  ;;  %v3665_v44 = vsel %vm862_vm11, 1.0, %v4593_v7 }
 0x133   : > { %v1244_v41 = vadd.f32 %v3711_v47, %v1132_v15  ;;  %vm1085_vm2 = vcmp.eq.s32.totalorder %v5046_v12, %v1049_v6  ;;  %v3634_v47 = vsel %vm639_vm10, 1.0, %v4593_v7 }
 0x134   : > { %4302 = vset.pattern.permute.xlu1 %v6765_v13  ;;  %v3696_v51 = vsel %vm1085_vm2, 1.0, %v4593_v7  ;;  %v687_v45 = vadd.f32 %v3634_v47, %v575_v43  ;;  %vm1087_vm2 = vcmp.eq.s32.totalorder %v5046_v12, %v4938_v56 }
 0x135   : > { %509 = vperm.xlu1 %4302, %v4769_v16   ;;  %4172 = vmatprep.mubr.f32.mxu0 %v1244_v41  ;;  %v1133_v19 = vadd.f32 %v3696_v51, %v1021_v2 }
 0x137   : > { %v716_v60 = vpop.permute.xlu1 %715 }
 0x138   : > { %vm750_vm9 = vcmp.eq.s32.totalorder %v5046_v12, %v716_v60 }
 0x139   : > { %4303 = vset.pattern.permute.xlu1 %v6774_v10  ;;  %v3649_v57 = vsel %vm750_vm9, 1.0, %v4593_v7 }
 0x13a   : > { %951 = vperm.xlu1 %4303, %v4813_v21  }
 0x13b   : > { %v719_v59 = vpop.permute.xlu1 %718 }
 0x13c   : > { %vm751_vm12 = vcmp.eq.s32.totalorder %v5046_v12, %v719_v59  ;;  %v3698_v59 = vsel %vm1087_vm2, 1.0, %v4593_v7  ;;  %vm1201_vm2 = vcmp.eq.s32.totalorder %v5046_v12, %v5037_v14 }
 0x13d   : > { %v3650_v15 = vsel %vm751_vm12, 1.0, %v4593_v7 }
 0x13e   : > { %4305 = vset.pattern.permute.xlu1 %v6765_v13  ;;  %v1461_v13 = vsel %vm1433_vm0, %v1426_v27, 0.0  ;;  %v799_v53 = vadd.f32 %v3650_v15, %v687_v45 }
 0x13f   : > { %512 = vperm.xlu1 %4305, %v4775_v17   ;;  %1462 = vadd.xlane.f32.xlu0 %v1461_v13 }
 0x140   : > { %v1161_v24 = vpop.permute.xlu1 %1160 }
 0x141   : > { %vm1197_vm3 = vcmp.eq.s32.totalorder %v5046_v12, %v1161_v24 }
 0x142   : > { %v3712_v5 = vsel %vm1197_vm3, 1.0, %v4593_v7 }
 0x143   : > { %v1245_v18 = vadd.f32 %v3712_v5, %v1133_v19  ;;  %4307 = vset.pattern.permute.xlu1 %v6767_v11 }
 0x144   : > { %621 = vperm.xlu1 %4307, %v4769_v16  }
 0x145   : > { %4173 = vmatmul.mubr.f32.gmra.mxu0 %v1245_v18  ;;  %v831_v28 = vpop.permute.xlu1 %830  ;;  %v610_v18 = vpop.permute.xlu0 %609 }
 0x146   : > { %vm863_vm13 = vcmp.eq.s32.totalorder %v5046_v12, %v831_v28  ;;  %vm640_vm11 = vcmp.eq.s32.totalorder %v5046_v12, %v610_v18 }
 0x147   : > { %v3666_v6 = vsel %vm863_vm13, 1.0, %v4593_v7 }
 0x148   : > { %4308 = vset.pattern.permute.xlu1 %v6770_v50  ;;  %v911_v25 = vadd.f32 %v3666_v6, %v799_v53 }
 0x149   : > { %1063 = vperm.xlu1 %4308, %v4813_v21   ;;  %v5338_v27 = vpop.permute.xlu0 %624 }
 0x14a   : > { %v5271_v30 = vpop.permute.xlu1 %385 }
 0x14b   : > { %vm416_vm9 = vcmp.eq.s32.totalorder %v5046_v12, %v5271_v30 }
 0x14c   : > { %v3603_v36 = vsel %vm416_vm9, 1.0, %v4593_v7 }
 0x14d   : > { %1066 = vperm.xlu1 %4308, %v4797_v20  }
 0x14f   : > { %v940_v40 = vpop.permute.xlu1 %939 }
 0x150   : > { %vm974_vm14 = vcmp.eq.s32.totalorder %v5046_v12, %v940_v40  ;;  %v1428_v40 = vld [vmem:[%s5027_s26 + $0x58] sm:$0xff] }
 0x151   : > { %4309 = vset.pattern.permute.xlu1 %v6772_v32  ;;  %v3681_v41 = vsel %vm974_vm14, 1.0, %v4593_v7  ;;  %vm865_vm14 = vcmp.eq.s32.totalorder %v5046_v12, %v4915_v49 }
 0x152   : > { %733 = vperm.xlu1 %4309, %v4769_v16  }
 0x154   : > { %v5276_v55 = vpop.permute.xlu1 %388 }
 0x155   : > { %vm417_vm6 = vcmp.eq.s32.totalorder %v5046_v12, %v5276_v55  ;;  %v4490_v55 = vld [vmem:[%s4703_s21 + $0x60] sm:$0xff] }
 0x156   : > { %736 = vperm.xlu1 %4309, %v4775_v17  }
 0x159   : > { %v943_v38 = vpop.permute.xlu1 %942 }
 0x15a   : > { %4311 = vset.pattern.permute.xlu1 %v6771_v62  ;;  %vm975_vm15 = vcmp.eq.s32.totalorder %v5046_v12, %v943_v38  ;;  %v5346_v38 = vpop.permute.xlu0 %627 }
 0x15b   : > { %1178 = vperm.xlu1 %4311, %v4797_v20   ;;  %v3617_v20 = vsel %vm526_vm5, 1.0, %v4593_v7  ;;  %v3682_v37 = vsel %vm975_vm15, 1.0, %v4593_v7  ;;  %vm529_vm5 = vcmp.eq.s32.totalorder %v5046_v12, %v5097_v8  ;;  %v3604_v8 = vsel %vm417_vm6, 1.0, %v4593_v7 }
 0x15c   : > { %v574_v35 = vadd.f32 %v3617_v20, %v3601_v34  ;;  %v1023_v4 = vadd.f32 %v3682_v37, %v911_v25  ;;  %v3619_v20 = vsel %vm528_vm8, 1.0, %v4593_v7  ;;  %vm977_vm15 = vcmp.eq.s32.totalorder %v5046_v12, %v5008_v31 }
 0x15d   : > { %v576_v63 = vadd.f32 %v3619_v20, %v3603_v36  ;;  %v3684_v15 = vsel %vm977_vm15, 1.0, %v4593_v7  ;;  %v6776_v20 = vld [vmem:[#allocation12_spill] sm:$0xff] }
 0x15e   : > { %v1052_v21 = vpop.permute.xlu1 %1051  ;;  %v686_v58 = vadd.f32 %v3633_v1, %v574_v35  ;;  %v1135_v24 = vadd.f32 %v3698_v59, %v1023_v4  ;;  %v3635_v35 = vsel %vm640_vm11, 1.0, %v4593_v7  ;;  %v4492_v4 = vld [vmem:[%s4703_s21 + $0x70] sm:$0xff]  ;;  %s6612_s21 = scalar_lea.hbm %s6736_s7, %s6756_s25 }
 0x15f   : > { %4312 = vset.pattern.permute.xlu1 %v6773_v52  ;;  %vm1086_vm1 = vcmp.eq.s32.totalorder %v5046_v12, %v1052_v21 }
 0x160   : > { %848 = vperm.xlu1 %4312, %v4775_v17   ;;  %v798_v23 = vadd.f32 %v3649_v57, %v686_v58  ;;  %v3697_v46 = vsel %vm1086_vm1, 1.0, %v4593_v7  ;;  %v688_v58 = vadd.f32 %v3635_v35, %v576_v63  ;;  %vm976_vm1 = vcmp.eq.s32.totalorder %v5046_v12, %v5003_v26  ;;  %v1419_v63 = vld [vmem:[%s5027_s26 + $0x10] sm:$0xff] }
 0x161   : > { %v3683_v31 = vsel %vm976_vm1, 1.0, %v4593_v7  ;;  %v3716_v26 = vsel %vm1201_vm2, 1.0, %v4593_v7 }
 0x162   : > { %v910_v54 = vadd.f32 %v3665_v44, %v798_v23  ;;  %v3668_v44 = vsel %vm865_vm14, 1.0, %v4593_v7 }
 0x163   : > { %v5301_v3 = vpop.permute.xlu1 %612 }
 0x164   : > { %4313 = vset.pattern.permute.xlu1 %v6766_v0  ;;  %v1022_v60 = vadd.f32 %v3681_v41, %v910_v54  ;;  %vm641_vm7 = vcmp.eq.s32.totalorder %v5046_v12, %v5301_v3  ;;  %v6775_v41 = vld [vmem:[#allocation8_spill] sm:$0xff] }
 0x165   : > { %403 = vperm.xlu1 %4313, %v4852_v29   ;;  %v3636_v21 = vsel %vm641_vm7, 1.0, %v4593_v7 }
 0x166   : > { %v1134_v22 = vadd.f32 %v3697_v46, %v1022_v60 }
 0x168   : > { %v5315_v42 = vpop.permute.xlu1 %721 }
 0x169   : > { %4314 = vset.pattern.permute.xlu1 %v6774_v10  ;;  %vm752_vm12 = vcmp.eq.s32.totalorder %v5046_v12, %v5315_v42 }
 0x16a   : > { %957 = vperm.xlu1 %4314, %v4769_v16   ;;  %v3651_v43 = vsel %vm752_vm12, 1.0, %v4593_v7  ;;  %vm1202_vm12 = vcmp.eq.s32.totalorder %v5046_v12, %v6776_v20 }
 0x16b   : > { %v3717_v35 = vsel %vm1202_vm12, 1.0, %v4593_v7 }
 0x16d   : > { %v1164_v9 = vpop.permute.xlu1 %1163 }
 0x16e   : > { %vm1198_vm3 = vcmp.eq.s32.totalorder %v5046_v12, %v1164_v9  ;;  %4315 = vset.pattern.permute.xlu1 %v6766_v0 }
 0x16f   : > { %v3713_v48 = vsel %vm1198_vm3, 1.0, %v4593_v7  ;;  %406 = vperm.xlu1 %4315, %v4865_v33  }
 0x170   : > { %v1246_v51 = vadd.f32 %v3713_v48, %v1134_v22  ;;  %v1430_v22 = vld [vmem:[%s5027_s26 + $0x68] sm:$0xff] }
 0x171   : > { %v1167_v2 = vpop.permute.xlu1 %1166  ;;  %v1473_v59 = vsel %vm1433_vm0, %v1430_v22, 0.0 }
 0x172   : > { %vm1199_vm4 = vcmp.eq.s32.totalorder %v5046_v12, %v1167_v2  ;;  %4175 = vmatprep.mubr.f32.mxu0 %v1246_v51 }
 0x173   : > { %v3714_v56 = vsel %vm1199_vm4, 1.0, %v4593_v7  ;;  %4317 = vset.pattern.permute.xlu1 %v6774_v10  ;;  %vm1088_vm4 = vcmp.eq.s32.totalorder %v5046_v12, %v6775_v41 }
 0x174   : > { %v1247_v19 = vadd.f32 %v3714_v56, %v1135_v24  ;;  %960 = vperm.xlu1 %4317, %v4775_v17   ;;  %v1467_v17 = vsel %vm1433_vm0, %v1428_v40, 0.0  ;;  %v3699_v54 = vsel %vm1088_vm4, 1.0, %v4593_v7  ;;  %v1432_v24 = vld [vmem:[%s5027_s26 + $0x78] sm:$0xff] }
 0x175   : > { %1468 = vadd.xlane.f32.xlu0 %v1467_v17  ;;  %v1479_v56 = vsel %vm1433_vm0, %v1432_v24, 0.0  ;;  %v1567_v24 = vld [vmem:[%s6732_s3 + $0x68] sm:$0xff] }
 0x176   : > { %4176 = vmatmul.mubr.f32.gmra.mxu0 %v1247_v19  ;;  %v834_v5 = vpop.permute.xlu1 %833 }
 0x177   : > { %vm864_vm13 = vcmp.eq.s32.totalorder %v5046_v12, %v834_v5 }
 0x178   : > { %4319 = vset.pattern.permute.xlu1 %v6770_v50  ;;  %v3667_v47 = vsel %vm864_vm13, 1.0, %v4593_v7 }
 0x179   : > { %1069 = vperm.xlu1 %4319, %v4769_v16   ;;  %1474 = vadd.xlane.f32.xlu0 %v1473_v59  ;;  %v1429_v59 = vld [vmem:[%s5027_s26 + $0x60] sm:$0xff] }
 0x17b   : > { %v5336_v28 = vpop.permute.xlu1 %391 }
 0x17c   : > { %vm418_vm7 = vcmp.eq.s32.totalorder %v5046_v12, %v5336_v28 }
 0x17d   : > { %4320 = vset.pattern.permute.xlu1 %v6767_v11  ;;  %v3620_v11 = vsel %vm529_vm5, 1.0, %v4593_v7  ;;  %v3605_v19 = vsel %vm418_vm7, 1.0, %v4593_v7  ;;  %1480 = vadd.xlane.f32.xlu0 %v1479_v56  ;;  %v1470_v56 = vsel %vm1433_vm0, %v1429_v59, 0.0 }
 0x17e   : > { %630 = vperm.xlu1 %4320, %v4865_v33   ;;  %v577_v61 = vadd.f32 %v3620_v11, %v3604_v8 }
 0x180   : > { %v5342_v13 = vpop.permute.xlu1 %503  ;;  %v689_v30 = vadd.f32 %v3636_v21, %v577_v61 }
 0x181   : > { %vm530_vm6 = vcmp.eq.s32.totalorder %v5046_v12, %v5342_v13 }
 0x182   : > { %4321 = vset.pattern.permute.xlu1 %v6772_v32  ;;  %v725_v32 = vpop.permute.xlu0 %724 }
 0x183   : > { %739 = vperm.xlu1 %4321, %v4852_v29   ;;  %vm753_vm10 = vcmp.eq.s32.totalorder %v5046_v12, %v725_v32 }
 0x184   : > { %v3652_v1 = vsel %vm753_vm10, 1.0, %v4593_v7 }
 0x185   : > { %v5354_v16 = vpop.permute.xlu1 %394  ;;  %v801_v3 = vadd.f32 %v3652_v1, %v689_v30 }
 0x186   : > { %v728_v2 = vpop.permute.xlu0 %727  ;;  %vm419_vm15 = vcmp.eq.s32.totalorder %v5046_v12, %v5354_v16 }
 0x187   : > { %4322 = vset.pattern.permute.xlu1 %v6771_v62  ;;  %v913_v49 = vadd.f32 %v3668_v44, %v801_v3  ;;  %vm754_vm9 = vcmp.eq.s32.totalorder %v5046_v12, %v728_v2 }
 0x188   : > { %1181 = vperm.xlu1 %4322, %v4490_v55   ;;  %v3653_v40 = vsel %vm754_vm9, 1.0, %v4593_v7  ;;  %v1417_v55 = vld [vmem:[%s5027_s26] sm:$0xff] }
 0x189   : > { %v1025_v6 = vadd.f32 %v3684_v15, %v913_v49 }
 0x18a   : > { %v5367_v34 = vpop.permute.xlu1 %506 }
 0x18b   : > { %vm531_vm13 = vcmp.eq.s32.totalorder %v5046_v12, %v5367_v34 }
 0x18c   : > { %1184 = vperm.xlu1 %4322, %v4491_v39   ;;  %v1434_v39 = vsel %vm1433_vm0, %v1417_v55, 0.0  ;;  %v3622_v34 = vsel %vm531_vm13, 1.0, %v4593_v7 }
 0x18f   : > { %v616_v57 = vpop.permute.xlu1 %615 }
 0x190   : > { %4324 = vset.pattern.permute.xlu1 %v6773_v52  ;;  %v800_v52 = vadd.f32 %v3651_v43, %v688_v58  ;;  %vm642_vm8 = vcmp.eq.s32.totalorder %v5046_v12, %v616_v57  ;;  %v1440_v43 = vsel %vm1433_vm0, %v1419_v63, 0.0  ;;  %v3606_v58 = vsel %vm419_vm15, 1.0, %v4593_v7 }
 0x191   : > { %851 = vperm.xlu1 %4324, %v4852_v29   ;;  %v3637_v5 = vsel %vm642_vm8, 1.0, %v4593_v7  ;;  %v579_v44 = vadd.f32 %v3622_v34, %v3606_v58  ;;  %vm646_vm8 = vcmp.eq.s32.totalorder %v5046_v12, %v5346_v38  ;;  %v5533_v58 = vpop.permute.xlu0 %742  ;;  %vm645_vm15 = vcmp.eq.s32.totalorder %v5046_v12, %v5338_v27 }
 0x192   : > { %v912_v45 = vadd.f32 %v3667_v47, %v800_v52  ;;  %v1421_v47 = vld [vmem:[%s5027_s26 + $0x20] sm:$0xff]  ;;  %v3641_v34 = vsel %vm646_vm8, 1.0, %v4593_v7 }
 0x193   : > { %v5387_v23 = vpop.permute.xlu1 %618  ;;  %v1446_v15 = vsel %vm1433_vm0, %v1421_v47, 0.0  ;;  %v6779_v47 = vld [vmem:[#allocation9_spill] sm:$0xff] }
 0x194   : > { %vm643_vm1 = vcmp.eq.s32.totalorder %v5046_v12, %v5387_v23 }
 0x195   : > { %4326 = vset.pattern.permute.xlu1 %v6774_v10  ;;  %v1024_v10 = vadd.f32 %v3683_v31, %v912_v45  ;;  %v3638_v16 = vsel %vm643_vm1, 1.0, %v4593_v7  ;;  %v1423_v31 = vld [vmem:[%s5027_s26 + $0x30] sm:$0xff] }
 0x196   : > { %963 = vperm.xlu1 %4326, %v4852_v29   ;;  %v691_v52 = vadd.f32 %v3638_v16, %v579_v44 }
 0x197   : > { %v1136_v46 = vadd.f32 %v3699_v54, %v1024_v10  ;;  %v1452_v10 = vsel %vm1433_vm0, %v1423_v31, 0.0 }
 0x198   : > { %v1061_v42 = vpop.permute.xlu1 %1060 }
 0x199   : > { %vm1089_vm3 = vcmp.eq.s32.totalorder %v5046_v12, %v1061_v42 }
 0x19a   : > { %v3700_v53 = vsel %vm1089_vm3, 1.0, %v4593_v7  ;;  %966 = vperm.xlu1 %4326, %v4865_v33  }
 0x19b   : > { %v1137_v29 = vadd.f32 %v3700_v53, %v1025_v6  ;;  %v6777_v6 = vld [vmem:[#allocation11_spill] sm:$0xff]  ;;  %v1425_v53 = vld [vmem:[%s5027_s26 + $0x40] sm:$0xff] }
 0x19c   : > { %vm979_vm4 = vcmp.eq.s32.totalorder %v5046_v12, %v6777_v6 }
 0x19d   : > { %v1170_v14 = vpop.permute.xlu1 %1169  ;;  %v1249_v37 = vadd.f32 %v3716_v26, %v1137_v29  ;;  %v3686_v29 = vsel %vm979_vm4, 1.0, %v4593_v7 }
 0x19e   : > { %vm1200_vm5 = vcmp.eq.s32.totalorder %v5046_v12, %v1170_v14  ;;  %4327 = vset.pattern.permute.xlu1 %v6770_v50 }
 0x19f   : > { %v3715_v25 = vsel %vm1200_vm5, 1.0, %v4593_v7  ;;  %1078 = vperm.xlu1 %4327, %v4865_v33  }
 0x1a0   : > { %v1248_v60 = vadd.f32 %v3715_v25, %v1136_v46  ;;  %v1427_v25 = vld [vmem:[%s5027_s26 + $0x50] sm:$0xff] }
 0x1a1   : > { %v1464_v22 = vsel %vm1433_vm0, %v1427_v25, 0.0 }
 0x1a2   : > { %4178 = vmatprep.mubr.f32.mxu0 %v1248_v60  ;;  %v731_v9 = vpop.permute.xlu1 %730 }
 0x1a3   : > { %4328 = vset.pattern.permute.xlu1 %v6771_v62  ;;  %4179 = vmatmul.mubr.f32.gmra.mxu0 %v1249_v37  ;;  %v3621_v62 = vsel %vm530_vm6, 1.0, %v4593_v7  ;;  %vm755_vm2 = vcmp.eq.s32.totalorder %v5046_v12, %v731_v9  ;;  %v1458_v37 = vsel %vm1433_vm0, %v1425_v53, 0.0 }
 0x1a4   : > { %1187 = vperm.xlu1 %4328, %v4492_v4   ;;  %v578_v13 = vadd.f32 %v3621_v62, %v3605_v19  ;;  %v3654_v23 = vsel %vm755_vm2, 1.0, %v4593_v7  ;;  %v1563_v62 = vld [vmem:[%s6732_s3 + $0x48] sm:$0xff]  ;;  %v1431_v19 = vld [vmem:[%s5027_s26 + $0x70] sm:$0xff] }
 0x1a5   : > { %v803_v42 = vadd.f32 %v3654_v23, %v691_v52  ;;  %v846_v23 = vpop.permute.xlu0 %845  ;;  %v6780_v52 = vld [vmem:[#allocation10_spill] sm:$0xff] }
 0x1a6   : > { %v690_v28 = vadd.f32 %v3637_v5, %v578_v13  ;;  %v5493_v5 = vcombine.low %v1563_v62, %v1567_v24  ;;  %v3734_v13 = vcombine.high %v1563_v62, %v1567_v24  ;;  %vm421_vm13 = vcmp.eq.s32.totalorder %v5046_v12, %v6780_v52 }
 0x1a7   : > { %v840_v48 = vpop.permute.xlu1 %839  ;;  %vm868_vm1 = vcmp.eq.s32.totalorder %v5046_v12, %v846_v23 }
 0x1a8   : > { %vm866_vm10 = vcmp.eq.s32.totalorder %v5046_v12, %v840_v48  ;;  %v802_v8 = vadd.f32 %v3653_v40, %v690_v28  ;;  %v6778_v40 = vld [vmem:[#allocation13_spill] sm:$0xff]  ;;  %1842 = vmatprep.subr.bf16.mxu0 %v3734_v13  ;;  %v3671_v27 = vsel %vm868_vm1, 1.0, %v4593_v7 }
 0x1a9   : > { %v3669_v11 = vsel %vm866_vm10, 1.0, %v4593_v7  ;;  %vm534_vm7 = vcmp.eq.s32.totalorder %v5046_v12, %v6778_v40  ;;  %1843 = vmatpush1.bf16.msra.mxu0 %v5493_v5  ;;  %vm420_vm10 = vcmp.eq.s32.totalorder %v5046_v12, %v6779_v47 }
 0x1aa   : > { %v914_v21 = vadd.f32 %v3669_v11, %v802_v8  ;;  %v1554_v11 = vld [vmem:[%s6732_s3] sm:$0xff]  ;;  %v3625_v63 = vsel %vm534_vm7, 1.0, %v4593_v7 }
 0x1ab   : > { %v843_v51 = vpop.permute.xlu1 %842  ;;  %v1558_v8 = vld [vmem:[%s6732_s3 + $0x20] sm:$0xff] }
 0x1ac   : > { %vm867_vm3 = vcmp.eq.s32.totalorder %v5046_v12, %v843_v51  ;;  %v1562_v51 = vld [vmem:[%s6732_s3 + $0x40] sm:$0xff]  ;;  %v3724_v20 = vcombine.high %v1554_v11, %v1558_v8 }
 0x1ad   : > { %v3670_v45 = vsel %vm867_vm3, 1.0, %v4593_v7 }
 0x1ae   : > { %v915_v41 = vadd.f32 %v3670_v45, %v803_v42 }
 0x1b0   : > { %v5413_v50 = vpop.permute.xlu1 %509  ;;  %v1027_v14 = vadd.f32 %v3686_v29, %v915_v41 }
 0x1b5   : > { %v952_v33 = vpop.permute.xlu1 %951 }
 0x1b6   : > { %vm978_vm11 = vcmp.eq.s32.totalorder %v5046_v12, %v952_v33  ;;  %v1566_v33 = vld [vmem:[%s6732_s3 + $0x60] sm:$0xff] }
 0x1b7   : > { %v3685_v32 = vsel %vm978_vm11, 1.0, %v4593_v7  ;;  %v3732_v2 = vcombine.high %v1562_v51, %v1566_v33  ;;  %v3731_v28 = vcombine.low %v1562_v51, %v1566_v33  ;;  %v5574_v51 = vld [vmem:[%s6732_s3 + $0x58] sm:$0xff] }
 0x1b8   : > { %v1026_v61 = vadd.f32 %v3685_v32, %v914_v21  ;;  %v1555_v32 = vld [vmem:[%s6732_s3 + $0x8] sm:$0xff]  ;;  %v1476_v21 = vsel %vm1433_vm0, %v1431_v19, 0.0  ;;  %vm532_vm0 = vcmp.eq.s32.totalorder %v5046_v12, %v5413_v50  ;;  %v3607_v50 = vsel %vm420_vm10, 1.0, %v4593_v7  ;;  %v5579_v33 = vld [vmem:[%s6732_s3 + $0x78] sm:$0xff] }
 0x1b9   : > { %1729 = vmatprep.subr.bf16.mxu1 %v3732_v2  ;;  %v3623_v44 = vsel %vm532_vm0, 1.0, %v4593_v7  ;;  %v3738_v24 = vcombine.high %v5574_v51, %v5579_v33 }
 0x1ba   : > { %v5425_v18 = vpop.permute.xlu1 %512  ;;  %1730 = vmatpush1.bf16.msra.mxu1 %v3731_v28 }
 0x1bb   : > { %1731 = vmatprep.subr.bf16.mxu1 %v3724_v20  ;;  %vm533_vm11 = vcmp.eq.s32.totalorder %v5046_v12, %v5425_v18  ;;  %v580_v18 = vadd.f32 %v3623_v44, %v3607_v50 }
 0x1bf   : > { %v5431_v17 = vpop.permute.xlu1 %621 }
 0x1c0   : > { %vm644_vm12 = vcmp.eq.s32.totalorder %v5046_v12, %v5431_v17  ;;  %v3608_v17 = vsel %vm421_vm13, 1.0, %v4593_v7 }
 0x1c1   : > { %v3639_v45 = vsel %vm644_vm12, 1.0, %v4593_v7  ;;  %vm759_vm12 = vcmp.eq.s32.totalorder %v5046_v12, %v5533_v58 }
 0x1c2   : > { %v692_v41 = vadd.f32 %v3639_v45, %v580_v18 }
 0x1c4   : > { %v1064_v36 = vpop.permute.xlu1 %1063 }
 0x1c5   : > { %vm1090_vm14 = vcmp.eq.s32.totalorder %v5046_v12, %v1064_v36  ;;  %v1559_v36 = vld [vmem:[%s6732_s3 + $0x28] sm:$0xff] }
 0x1c6   : > { %v3701_v30 = vsel %vm1090_vm14, 1.0, %v4593_v7 }
 0x1c7   : > { %v1138_v1 = vadd.f32 %v3701_v30, %v1026_v61  ;;  %v5514_v61 = vcombine.low %v1555_v32, %v1559_v36  ;;  %v3723_v30 = vcombine.low %v1554_v11, %v1558_v8 }
 0x1c8   : > { %1435 = vadd.xlane.f32.xlu1 %v1434_v39  ;;  %v1067_v57 = vpop.permute.xlu1 %1066  ;;  %v5516_v39 = vcombine.high %v1555_v32, %v1559_v36 }
 0x1c9   : > { %v1250_v3 = vadd.f32 %v3717_v35, %v1138_v1  ;;  %vm1091_vm5 = vcmp.eq.s32.totalorder %v5046_v12, %v1067_v57  ;;  %1732 = vmatpush1.bf16.msra.mxu1 %v3723_v30 }
 0x1ca   : > { %v3702_v54 = vsel %vm1091_vm5, 1.0, %v4593_v7  ;;  %1844 = vmatprep.subr.bf16.mxu0 %v5516_v39  ;;  %4190 = vmatprep.subr.bf16.mxu1 %v3734_v13  ;;  %v3737_v13 = vcombine.low %v5574_v51, %v5579_v33  ;;  %v5646_v51 = vld [vmem:[%s6732_s3 + $0x50] sm:$0xff] }
 0x1cb   : > { %4181 = vmatprep.mubr.f32.mxu0 %v1250_v3  ;;  %v1139_v60 = vadd.f32 %v3702_v54, %v1027_v14  ;;  %1845 = vmatpush1.bf16.msra.mxu0 %v5514_v61 }
 0x1cc   : > { %1441 = vadd.xlane.f32.xlu1 %v1440_v43  ;;  %2068 = vmatprep.subr.bf16.mxu0 %v3738_v24 }
 0x1cd   : > { %v5457_v49 = vpop.permute.xlu1 %733 }
 0x1ce   : > { %vm756_vm14 = vcmp.eq.s32.totalorder %v5046_v12, %v5457_v49  ;;  %v3640_v49 = vsel %vm645_vm15, 1.0, %v4593_v7 }
 0x1cf   : > { %v3655_v31 = vsel %vm756_vm14, 1.0, %v4593_v7 }
 0x1d0   : > { %1447 = vadd.xlane.f32.xlu1 %v1446_v15  ;;  %v3624_v15 = vsel %vm533_vm11, 1.0, %v4593_v7  ;;  %v804_v53 = vadd.f32 %v3655_v31, %v692_v41 }
 0x1d1   : > { %v5465_v26 = vpop.permute.xlu1 %736  ;;  %v581_v6 = vadd.f32 %v3624_v15, %v3608_v17 }
 0x1d2   : > { %vm757_vm2 = vcmp.eq.s32.totalorder %v5046_v12, %v5465_v26  ;;  %v916_v25 = vadd.f32 %v3671_v27, %v804_v53 }
 0x1d3   : > { %v3656_v29 = vsel %vm757_vm2, 1.0, %v4593_v7  ;;  %v693_v54 = vadd.f32 %v3640_v49, %v581_v6 }
 0x1d4   : > { %1453 = vadd.xlane.f32.xlu1 %v1452_v10  ;;  %v855_v10 = vpop.permute.xlu0 %854 }
 0x1d5   : > { %vm871_vm15 = vcmp.eq.s32.totalorder %v5046_v12, %v855_v10 }
 0x1d6   : > { %v1179_v46 = vpop.permute.xlu1 %1178 }
 0x1d7   : > { %vm1203_vm6 = vcmp.eq.s32.totalorder %v5046_v12, %v1179_v46  ;;  %v805_v46 = vadd.f32 %v3656_v29, %v693_v54 }
 0x1d8   : > { %v3718_v9 = vsel %vm1203_vm6, 1.0, %v4593_v7  ;;  %1459 = vadd.xlane.f32.xlu1 %v1458_v37 }
 0x1d9   : > { %v1251_v4 = vadd.f32 %v3718_v9, %v1139_v60  ;;  %v1073_v60 = vpop.permute.xlu0 %1072 }
 0x1da   : > { %vm1093_vm7 = vcmp.eq.s32.totalorder %v5046_v12, %v1073_v60 }
 0x1db   : > { %4182 = vmatmul.mubr.f32.gmra.mxu0 %v1251_v4  ;;  %v5477_v48 = vpop.permute.xlu1 %848 }
 0x1dc   : > { %1465 = vadd.xlane.f32.xlu1 %v1464_v22  ;;  %vm869_vm3 = vcmp.eq.s32.totalorder %v5046_v12, %v5477_v48 }
 0x1dd   : > { %v3672_v26 = vsel %vm869_vm3, 1.0, %v4593_v7 }
 0x1de   : > { %v917_v22 = vadd.f32 %v3672_v26, %v805_v46 }
 0x1e0   : > { %v404_v55 = vpop.permute.xlu1 %403  ;;  %1471 = vadd.xlane.f32.xlu1 %v1470_v56  ;;  %v3704_v56 = vsel %vm1093_vm7, 1.0, %v4593_v7  ;;  %vm1692_vm7 = vcmask 261120  }
 0x1e1   : > { %vm422_vm9 = vcmp.eq.s32.totalorder %v5046_v12, %v404_v55 }
 0x1e2   : > { %v3609_v1 = vsel %vm422_vm9, 1.0, %v4593_v7 }
 0x1e3   : > { %v582_v35 = vadd.f32 %v3625_v63, %v3609_v1 }
 0x1e4   : > { %1477 = vadd.xlane.f32.xlu1 %v1476_v21  ;;  %v6781_v21 = vld [vmem:[#allocation14_spill] sm:$0xff] }
 0x1e5   : > { %v958_v57 = vpop.permute.xlu1 %957  ;;  %v5529_v3 = vadd.f32 %v3641_v34, %v582_v35  ;;  %vm535_vm10 = vcmp.eq.s32.totalorder %v5046_v12, %v6781_v21  ;;  %v3658_v34 = vsel %vm759_vm12, 1.0, %v4593_v7 }
 0x1e6   : > { %vm980_vm4 = vcmp.eq.s32.totalorder %v5046_v12, %v958_v57  ;;  %v3626_v36 = vsel %vm535_vm10, 1.0, %v4593_v7 }
 0x1e7   : > { %v3687_v37 = vsel %vm980_vm4, 1.0, %v4593_v7 }
 0x1e8   : > { %v1028_v59 = vadd.f32 %v3687_v37, %v916_v25 }
 0x1ea   : > { %v5531_v43 = vpop.permute.xlu1 %406 }
 0x1eb   : > { %vm423_vm0 = vcmp.eq.s32.totalorder %v5046_v12, %v5531_v43 }
 0x1ec   : > { %v3610_v20 = vsel %vm423_vm0, 1.0, %v4593_v7 }
 0x1ed   : > { %v583_v63 = vadd.f32 %v3626_v36, %v3610_v20 }
 0x1ef   : > { %v961_v16 = vpop.permute.xlu1 %960 }
 0x1f0   : > { %vm981_vm5 = vcmp.eq.s32.totalorder %v5046_v12, %v961_v16  ;;  %v1076_v16 = vpop.permute.xlu0 %1075 }
 0x1f1   : > { %v3688_v9 = vsel %vm981_vm5, 1.0, %v4593_v7  ;;  %vm1094_vm3 = vcmp.eq.s32.totalorder %v5046_v12, %v1076_v16 }
 0x1f2   : > { %v1029_v62 = vadd.f32 %v3688_v9, %v917_v22 }
 0x1f4   : > { %v1070_v38 = vpop.permute.xlu1 %1069  ;;  %v1141_v11 = vadd.f32 %v3704_v56, %v1029_v62  ;;  %v1191_v18 = vpop.permute.xlu0 %1190 }
 0x1f5   : > { %vm1092_vm6 = vcmp.eq.s32.totalorder %v5046_v12, %v1070_v38  ;;  %v3674_v38 = vsel %vm871_vm15, 1.0, %v4593_v7  ;;  %vm1207_vm5 = vcmp.eq.s32.totalorder %v5046_v12, %v1191_v18 }
 0x1f6   : > { %v3703_v4 = vsel %vm1092_vm6, 1.0, %v4593_v7  ;;  %v3722_v49 = vsel %vm1207_vm5, 1.0, %v4593_v7 }
 0x1f7   : > { %v1140_v2 = vadd.f32 %v3703_v4, %v1028_v59 }
 0x1f8   : > { %v1439_v54 = vpop.xlane.xlu0 %1438 }
 0x1f9   : > { %v631_v42 = vpop.permute.xlu1 %630 }
 0x1fa   : > { %vm647_vm11 = vcmp.eq.s32.totalorder %v5046_v12, %v631_v42  ;;  %v3705_v42 = vsel %vm1094_vm3, 1.0, %v4593_v7 }
 0x1fb   : > { %v3642_v30 = vsel %vm647_vm11, 1.0, %v4593_v7 }
 0x1fc   : > { %v695_v35 = vadd.f32 %v3642_v30, %v583_v63  ;;  %v1445_v46 = vpop.xlane.xlu0 %1444 }
 0x1fd   : > { %v1485_v60 = vmax.f32 %v1445_v46, 1.0  ;;  %v4330_v46 = vld [vmem:[%s6734_s5 + $0xf8] sm:$0xff]  }
 0x1fe   : > { %v740_v14 = vpop.permute.xlu1 %739  ;;  %v807_v47 = vadd.f32 %v3658_v34, %v695_v35 }
 0x1ff   : > { %vm758_vm13 = vcmp.eq.s32.totalorder %v5046_v12, %v740_v14  ;;  %v1483_v14 = vmax.f32 %v1439_v54, 1.0 }
 0x200   : > { %v3657_v57 = vsel %vm758_vm13, 1.0, %v4593_v7  ;;  %v919_v45 = vadd.f32 %v3674_v38, %v807_v47  ;;  %v1451_v4 = vpop.xlane.xlu0 %1450 }
 0x201   : > { %v806_v44 = vadd.f32 %v3657_v57, %v5529_v3  ;;  %4394 = vrcp.f32 %v1483_v14  ;;  %v1487_v59 = vmax.f32 %v1451_v4, 1.0 }
 0x203   : > { %v1182_v48 = vpop.permute.xlu1 %1181 }
 0x204   : > { %vm1204_vm8 = vcmp.eq.s32.totalorder %v5046_v12, %v1182_v48 }
 0x205   : > { %v3719_v19 = vsel %vm1204_vm8, 1.0, %v4593_v7 }
 0x206   : > { %v1252_v28 = vadd.f32 %v3719_v19, %v1140_v2 }
 0x207   : > { %v1185_v40 = vpop.permute.xlu1 %1184 }
 0x208   : > { %vm1205_vm9 = vcmp.eq.s32.totalorder %v5046_v12, %v1185_v40  ;;  %4184 = vmatprep.mubr.f32.mxu0 %v1252_v28  ;;  %v1557_v28 = vld [vmem:[%s6732_s3 + $0x18] sm:$0xff] }
 0x209   : > { %v3720_v8 = vsel %vm1205_vm9, 1.0, %v4593_v7  ;;  %v1561_v40 = vld [vmem:[%s6732_s3 + $0x38] sm:$0xff] }
 0x20a   : > { %v1253_v32 = vadd.f32 %v3720_v8, %v1141_v11  ;;  %v1457_v8 = vpop.xlane.xlu0 %1456  ;;  %v3730_v20 = vcombine.high %v1557_v28, %v1561_v40  ;;  %v3729_v35 = vcombine.low %v1557_v28, %v1561_v40  ;;  %v4338_v28 = vld [vmem:[%s6734_s5 + $0xd8] sm:$0xff]  }
 0x20b   : > { %v1489_v36 = vmax.f32 %v1457_v8, 1.0  ;;  %v4339_v40 = vld [vmem:[%s6734_s5 + $0x98] sm:$0xff]   ;;  %v4341_v8 = vld [vmem:[%s6734_s5 + $0x90] sm:$0xff]  }
 0x20c   : > { %4185 = vmatmul.mubr.f32.gmra.mxu0 %v1253_v32  ;;  %v852_v55 = vpop.permute.xlu1 %851 }
 0x20d   : > { %vm870_vm14 = vcmp.eq.s32.totalorder %v5046_v12, %v852_v55 }
 0x20e   : > { %v3673_v58 = vsel %vm870_vm14, 1.0, %v4593_v7  ;;  %v4395_v48 = vpop.eup %4394  ;;  %v1463_v16 = vpop.xlane.xlu0 %1462 }
 0x20f   : > { %v918_v52 = vadd.f32 %v3673_v58, %v806_v44 }
 0x211   : > { %v964_v1 = vpop.permute.xlu1 %963 }
 0x212   : > { %vm982_vm1 = vcmp.eq.s32.totalorder %v5046_v12, %v964_v1  ;;  %v1469_v54 = vpop.xlane.xlu0 %1468 }
 0x213   : > { %v3689_v23 = vsel %vm982_vm1, 1.0, %v4593_v7 }
 0x214   : > { %v1030_v17 = vadd.f32 %v3689_v23, %v918_v52 }
 0x215   : > { %v967_v43 = vpop.permute.xlu1 %966 }
 0x216   : > { %vm983_vm2 = vcmp.eq.s32.totalorder %v5046_v12, %v967_v43  ;;  %v1142_v10 = vadd.f32 %v3705_v42, %v1030_v17 }
 0x217   : > { %v3690_v50 = vsel %vm983_vm2, 1.0, %v4593_v7 }
 0x218   : > { %v1031_v3 = vadd.f32 %v3690_v50, %v919_v45 }
 0x21a   : > { %v1079_v15 = vpop.permute.xlu1 %1078 }
 0x21b   : > { %vm1095_vm4 = vcmp.eq.s32.totalorder %v5046_v12, %v1079_v15 }
 0x21c   : > { %v3706_v31 = vsel %vm1095_vm4, 1.0, %v4593_v7 }
 0x21d   : > { %v1143_v6 = vadd.f32 %v3706_v31, %v1031_v3 }
 0x21f   : > { %v1188_v41 = vpop.permute.xlu1 %1187  ;;  %v1255_v29 = vadd.f32 %v3722_v49, %v1143_v6 }
 0x220   : > { %vm1206_vm6 = vcmp.eq.s32.totalorder %v5046_v12, %v1188_v41 }
 0x221   : > { %v3721_v53 = vsel %vm1206_vm6, 1.0, %v4593_v7  ;;  %v4168_v7 = vpop.f32.mrf.mxu0 }
 0x222   : > { %v1254_v27 = vadd.f32 %v3721_v53, %v1142_v10  ;;  %v1531_v56 = vmul.f32 %v4395_v48, %v4168_v7  ;;  %v4334_v7 = vld [vmem:[%s6734_s5 + $0xe8] sm:$0xff]   ;;  %v4336_v48 = vld [vmem:[%s6734_s5 + $0xe0] sm:$0xff]  }
 0x223   : > { %v1338_v62 = vpop.f32.mrf.mxu0 }
 0x224   : > { %4187 = vmatprep.mubr.f32.mxu0 %v1254_v27 }
 0x225   : > { %4188 = vmatmul.mubr.f32.gmra.mxu0 %v1255_v29  ;;  %v4171_v11 = vpop.f32.mrf.mxu0 }
 0x226   : > { %1862 = vmatprep.mubr.bf16.mxu0 %v6766_v0 }
 0x227   : > { %v1348_v63 = vpop.f32.mrf.mxu0 }
 0x229   : > { %v4174_v43 = vpop.f32.mrf.mxu0 }
 0x22b   : > { %v1358_v44 = vpop.f32.mrf.mxu0 }
 0x236   : > { %v4177_v50 = vpop.f32.mrf.mxu0 }
 0x238   : > { %v1368_v17 = vpop.f32.mrf.mxu0 }
 0x251   : > { %v1436_v26 = vpop.xlane.xlu1 %1435 }
 0x252   : > { %v1482_v37 = vmax.f32 %v1436_v26, 1.0  ;;  %v1493_v26 = vmax.f32 %v1469_v54, 1.0  ;;  %v4351_v54 = vld [vmem:[%s6734_s5 + $0x28] sm:$0xff]  }
 0x254   : > { %4396 = vrcp.f32 %v1482_v37 }
 0x255   : > { %v1442_v25 = vpop.xlane.xlu1 %1441 }
 0x256   : > { %v1484_v9 = vmax.f32 %v1442_v25, 1.0  ;;  %v4331_v25 = vld [vmem:[%s6734_s5 + $0xb8] sm:$0xff]  }
 0x258   : > { %4398 = vrcp.f32 %v1484_v9  ;;  %v4333_v9 = vld [vmem:[%s6734_s5 + $0xb0] sm:$0xff]  }
 0x259   : > { %v1448_v12 = vpop.xlane.xlu1 %1447  ;;  %4400 = vrcp.f32 %v1485_v60  ;;  %v4332_v60 = vld [vmem:[%s6734_s5 + $0xf0] sm:$0xff]  }
 0x25a   : > { %v1486_v22 = vmax.f32 %v1448_v12, 1.0 }
 0x25c   : > { %4402 = vrcp.f32 %v1486_v22 }
 0x25d   : > { %v1454_v24 = vpop.xlane.xlu1 %1453  ;;  %4404 = vrcp.f32 %v1487_v59  ;;  %v4335_v59 = vld [vmem:[%s6734_s5 + $0xa8] sm:$0xff]  }
 0x25e   : > { %v1488_v32 = vmax.f32 %v1454_v24, 1.0 }
 0x260   : > { %4406 = vrcp.f32 %v1488_v32  ;;  %v4343_v32 = vld [vmem:[%s6734_s5 + $0xc8] sm:$0xff]  }
 0x261   : > { %v4397_v2 = vpop.eup %4396  ;;  %v1460_v34 = vpop.xlane.xlu1 %1459  ;;  %4408 = vrcp.f32 %v1489_v36  ;;  %v4349_v36 = vld [vmem:[%s6734_s5 + $0x80] sm:$0xff]  }
 0x262   : > { %v1530_v19 = vmul.f32 %v4397_v2, %v1338_v62  ;;  %v1490_v47 = vmax.f32 %v1460_v34, 1.0  ;;  %v4337_v2 = vld [vmem:[%s6734_s5 + $0xa0] sm:$0xff]  }
 0x263   : > { %v4180_v3 = vpop.f32.mrf.mxu0 }
 0x264   : > { %v5627_v55 = vpack.c.bf16 %v1531_v56, %v1530_v19  ;;  %4410 = vrcp.f32 %v1490_v47 }
 0x265   : > { %v4399_v21 = vpop.eup %4398  ;;  %v1378_v10 = vpop.f32.mrf.mxu0 }
 0x266   : > { %3739 = vmatmul.mubr.msk.bf16.vlgmr.msra.gmra.mxu1 %vm1692_vm7, %v5627_v55  ;;  %3747 = vmatmul.mubr.msk.bf16.vlgmr.msra.gmra.mxu0 %vm1692_vm7, %v5627_v55  ;;  %v4401_v30 = vpop.eup %4400  ;;  %v1532_v1 = vmul.f32 %v4399_v21, %v1348_v63  ;;  %v1466_v14 = vpop.xlane.xlu1 %1465  ;;  %v4345_v21 = vld [vmem:[%s6734_s5 + $0x88] sm:$0xff]  }
 0x267   : > { %1759 = vmatprep.mubr.bf16.mxu1 %v6766_v0  ;;  %1872 = vmatprep.mubr.bf16.mxu0 %v6766_v0  ;;  %v1533_v57 = vmul.f32 %v4401_v30, %v4171_v11  ;;  %v1492_v37 = vmax.f32 %v1466_v14, 1.0  ;;  %v4340_v11 = vld [vmem:[%s6734_s5 + $0xd0] sm:$0xff]   ;;  %v1475_v30 = vpop.xlane.xlu0 %1474  ;;  %v4353_v14 = vld [vmem:[%s6734_s5 + $0x20] sm:$0xff]  }
 0x268   : > { %2069 = vmatpush1.bf16.msra.mxu0 %v3737_v13  ;;  %4192 = vmatpush1.bf16.msra.mxu1 %v5493_v5  ;;  %v5651_v5 = vld [vmem:[%s6732_s3 + $0x70] sm:$0xff] }
 0x269   : > { %2070 = vmatprep.subr.bf16.mxu0 %v3730_v20  ;;  %4191 = vmatprep.subr.bf16.mxu1 %v5516_v39  ;;  %v5640_v58 = vpack.c.bf16 %v1533_v57, %v1532_v1  ;;  %v4403_v38 = vpop.eup %4402  ;;  %v1491_v39 = vmax.f32 %v1463_v16, 1.0  ;;  %v3736_v33 = vcombine.high %v5646_v51, %v5651_v5  ;;  %v4347_v20 = vld [vmem:[%s6734_s5 + $0xc0] sm:$0xff]   ;;  %v1495_v1 = vmax.f32 %v1475_v30, 1.0 }
 0x26a   : > { %v4405_v13 = vpop.eup %4404  ;;  %v1534_v23 = vmul.f32 %v4403_v38, %v1358_v44  ;;  %v1472_v63 = vpop.xlane.xlu1 %1471 }
 0x26b   : > { %v1535_v52 = vmul.f32 %v4405_v13, %v4174_v43  ;;  %4412 = vrcp.f32 %v1491_v39  ;;  %v1481_v39 = vpop.xlane.xlu0 %1480 }
 0x26c   : > { %2071 = vmatpush1.bf16.msra.mxu0 %v3729_v35  ;;  %4193 = vmatpush1.bf16.msra.mxu1 %v5514_v61  ;;  %v3735_v61 = vcombine.low %v5646_v51, %v5651_v5  ;;  %4414 = vrcp.f32 %v1493_v26  ;;  %v1494_v35 = vmax.f32 %v1472_v63, 1.0  ;;  %v1497_v44 = vmax.f32 %v1481_v39, 1.0  ;;  %v4344_v51 = vld [vmem:[%s6734_s5 + $0x38] sm:$0xff]   ;;  %v4346_v5 = vld [vmem:[%s6734_s5 + $0x70] sm:$0xff]  }
 0x26d   : > { %1955 = vmatprep.subr.bf16.mxu1 %v3736_v33  ;;  %v5663_v15 = vpack.c.bf16 %v1535_v52, %v1534_v23  ;;  %v4407_v45 = vpop.eup %4406  ;;  %4416 = vrcp.f32 %v1492_v37  ;;  %3942 = vmatprep.subr.bf16.mxu0 %v4330_v46  ;;  %v4354_v26 = vld [vmem:[%s6734_s5 + $0x58] sm:$0xff]   ;;  %v4357_v46 = vld [vmem:[%s6734_s5 + $0x10] sm:$0xff]  }
 0x26e   : > { %3740 = vmatmul.mubr.msk.bf16.gmra.mxu1 %vm1692_vm7, %v5640_v58  ;;  %3748 = vmatmul.mubr.msk.bf16.gmra.mxu0 %vm1692_vm7, %v5640_v58  ;;  %v4409_v18 = vpop.eup %4408  ;;  %v1536_v31 = vmul.f32 %v4407_v45, %v1368_v17  ;;  %4418 = vrcp.f32 %v1495_v1  ;;  %v1478_v13 = vpop.xlane.xlu1 %1477  ;;  %v4355_v37 = vld [vmem:[%s6734_s5 + $0x18] sm:$0xff]  }
 0x26f   : > { %1769 = vmatprep.mubr.bf16.mxu1 %v6766_v0  ;;  %1882 = vmatprep.mubr.bf16.mxu0 %v6766_v0  ;;  %v1537_v42 = vmul.f32 %v4409_v18, %v4177_v50  ;;  %4420 = vrcp.f32 %v1494_v35  ;;  %v1496_v23 = vmax.f32 %v1478_v13, 1.0  ;;  %v4365_v13 = vld [vmem:[%s6734_s5 + $0x1b8] sm:$0xff]  }
 0x270   : > { %4422 = vrcp.f32 %v1497_v44 }
 0x271   : > { %v5671_v6 = vpack.c.bf16 %v1537_v42, %v1536_v31  ;;  %v4411_v41 = vpop.eup %4410  ;;  %4424 = vrcp.f32 %v1496_v23 }
 0x272   : > { %v1538_v53 = vmul.f32 %v4411_v41, %v1378_v10  ;;  %v1560_v41 = vld [vmem:[%s6732_s3 + $0x30] sm:$0xff] }
 0x276   : > { %3741 = vmatmul.mubr.msk.bf16.gmra.mxu1 %vm1692_vm7, %v5663_v15  ;;  %3749 = vmatmul.mubr.msk.bf16.gmra.mxu0 %vm1692_vm7, %v5663_v15 }
 0x277   : > { %1779 = vmatprep.mubr.bf16.mxu1 %v6766_v0  ;;  %1892 = vmatprep.mubr.bf16.mxu0 %v6766_v0 }
 0x278   : > { %v4413_v49 = vpop.eup %4412 }
 0x279   : > { %v1539_v27 = vmul.f32 %v4413_v49, %v4180_v3  ;;  %v4415_v12 = vpop.eup %4414  ;;  %v1556_v3 = vld [vmem:[%s6732_s3 + $0x10] sm:$0xff] }
 0x27a   : > { %v4417_v4 = vpop.eup %4416  ;;  %v3728_v49 = vcombine.high %v1556_v3, %v1560_v41  ;;  %v3727_v10 = vcombine.low %v1556_v3, %v1560_v41 }
 0x27b   : > { %v5679_v29 = vpack.c.bf16 %v1539_v27, %v1538_v53  ;;  %v4419_v34 = vpop.eup %4418  ;;  %v4342_v53 = vld [vmem:[%s6734_s5 + $0x78] sm:$0xff]   ;;  %v4350_v27 = vld [vmem:[%s6734_s5 + $0x68] sm:$0xff]  }
 0x27c   : > { %v4421_v57 = vpop.eup %4420 }
 0x27d   : > { %v4423_v52 = vpop.eup %4422 }
 0x27e   : > { %3742 = vmatmul.mubr.msk.bf16.gmra.mxu1 %vm1692_vm7, %v5671_v6  ;;  %3750 = vmatmul.mubr.msk.bf16.gmra.mxu0 %vm1692_vm7, %v5671_v6  ;;  %v4425_v50 = vpop.eup %4424 }
 0x27f   : > { %1789 = vmatprep.mubr.bf16.mxu1 %v6766_v0  ;;  %1902 = vmatprep.mubr.bf16.mxu0 %v6766_v0 }
 0x286   : > { %3743 = vmatmul.mubr.msk.bf16.gmra.mxu1 %vm1692_vm7, %v5679_v29  ;;  %3751 = vmatmul.mubr.msk.bf16.gmra.mxu0 %vm1692_vm7, %v5679_v29 }
 0x287   : > { %2088 = vmatprep.mubr.bf16.mxu0 %v6766_v0  ;;  %1799 = vmatprep.mubr.bf16.mxu1 %v6766_v0 }
 0x28e   : > { %3763 = vmatmul.mubr.msk.bf16.vlgmr.msra.gmra.mxu0 %vm1692_vm7, %v5627_v55 }
 0x28f   : > { %2098 = vmatprep.mubr.bf16.mxu0 %v6766_v0  ;;  %3943 = vmatpush3.bf16.msra.mxu0 %v4331_v25  ;;  %v4358_v25 = vld [vmem:[%s6734_s5 + $0x48] sm:$0xff]  }
 0x290   : > { %3944 = vmatprep.subr.bf16.mxu0 %v4332_v60  ;;  %v4364_v60 = vld [vmem:[%s6734_s5 + $0x1f8] sm:$0xff]  }
 0x293   : > { %3945 = vmatpush3.bf16.msra.mxu0 %v4333_v9  ;;  %v6782_v9 = vlaneseq }
 0x294   : > { %3946 = vmatprep.subr.bf16.mxu0 %v4334_v7  ;;  %v4360_v7 = vld [vmem:[%s6734_s5 + $0x40] sm:$0xff]  }
 0x296   : > { %3764 = vmatmul.mubr.msk.bf16.gmra.mxu0 %vm1692_vm7, %v5640_v58 }
 0x297   : > { %2108 = vmatprep.mubr.bf16.mxu0 %v6766_v0  ;;  %3947 = vmatpush3.bf16.msra.mxu0 %v4335_v59  ;;  %v5858_v59 = vld [vmem:[%s6733_s4] sm:$0xff] }
 0x298   : > { %3948 = vmatprep.subr.bf16.mxu0 %v4336_v48  ;;  %v4361_v48 = vld [vmem:[%s6734_s5] sm:$0xff]  }
 0x29b   : > { %v4183_v22 = vpop.f32.mrf.mxu0  ;;  %3949 = vmatpush3.bf16.msra.mxu0 %v4337_v2 }
 0x29c   : > { %v1541_v24 = vmul.f32 %v4415_v12, %v4183_v22  ;;  %3950 = vmatprep.subr.bf16.mxu0 %v4338_v28  ;;  %v5843_v12 = vshrl.u32 %v6782_v9, 7 }
 0x29d   : > { %v1388_v62 = vpop.f32.mrf.mxu0 }
 0x29e   : > { %v1540_v56 = vmul.f32 %v4417_v4, %v1388_v62  ;;  %3765 = vmatmul.mubr.msk.bf16.gmra.mxu0 %vm1692_vm7, %v5663_v15  ;;  %v1586_v4 = vsub.s32 3, %v5843_v12  ;;  %v1582_v22 = vsub.s32 2, %v5843_v12  ;;  %v1578_v3 = vsub.s32 1, %v5843_v12 }
 0x29f   : > { %2118 = vmatprep.mubr.bf16.mxu0 %v6766_v0  ;;  %3951 = vmatpush3.bf16.msra.mxu0 %v4339_v40 }
 0x2a0   : > { %v5720_v19 = vpack.c.bf16 %v1541_v24, %v1540_v56  ;;  %3952 = vmatprep.subr.bf16.mxu0 %v4340_v11  ;;  %v5870_v24 = vrot.slane %v5858_v59, %v1586_v4  ;;  %v5873_v56 = vrot.slane %v5858_v59, %v1582_v22  ;;  %v1574_v4 = vsub.s32 0, %v5843_v12 }
 0x2a2   : > { %3744 = vmatmul.mubr.msk.bf16.gmra.mxu1 %vm1692_vm7, %v5720_v19 }
 0x2a3   : > { %1809 = vmatprep.mubr.bf16.mxu1 %v6766_v0  ;;  %3953 = vmatpush3.bf16.msra.mxu0 %v4341_v8 }
 0x2a4   : > { %3954 = vmatprep.subr.bf16.mxu0 %v4343_v32 }
 0x2a6   : > { %3766 = vmatmul.mubr.msk.bf16.gmra.mxu0 %vm1692_vm7, %v5671_v6 }
 0x2a7   : > { %2128 = vmatprep.mubr.bf16.mxu0 %v6766_v0  ;;  %3955 = vmatpush3.bf16.msra.mxu0 %v4345_v21 }
 0x2a8   : > { %3956 = vmatprep.subr.bf16.mxu0 %v4347_v20 }
 0x2ab   : > { %3957 = vmatpush3.bf16.msra.mxu0 %v4349_v36 }
 0x2ac   : > { %4070 = vmatprep.subr.bf16.mxu0 %v4364_v60  ;;  %v4376_v60 = vld [vmem:[%s6734_s5 + $0x1e0] sm:$0xff]  }
 0x2ae   : > { %3767 = vmatmul.mubr.msk.bf16.gmra.mxu0 %vm1692_vm7, %v5679_v29 }
 0x2af   : > { %2138 = vmatprep.mubr.bf16.mxu0 %v6766_v0 }
 0x2b6   : > { %3768 = vmatmul.mubr.msk.bf16.gmra.mxu0 %vm1692_vm7, %v5720_v19 }
 0x2b7   : > { %2148 = vmatprep.mubr.bf16.mxu0 %v6766_v0 }
 0x2cc   : > { %v4186_v43 = vpop.f32.mrf.mxu0 }
 0x2cd   : > { %v1543_v47 = vmul.f32 %v4419_v34, %v4186_v43 }
 0x2ce   : > { %v1398_v16 = vpop.f32.mrf.mxu0 }
 0x2cf   : > { %v1542_v38 = vmul.f32 %v4421_v57, %v1398_v16 }
 0x2d1   : > { %v5758_v33 = vpack.c.bf16 %v1543_v47, %v1542_v38 }
 0x2d3   : > { %3745 = vmatmul.mubr.msk.bf16.gmra.mxu1 %vm1692_vm7, %v5758_v33  ;;  %3769 = vmatmul.mubr.msk.bf16.gmra.mxu0 %vm1692_vm7, %v5758_v33 }
 0x2d4   : > { %1819 = vmatprep.mubr.bf16.mxu1 %v6766_v0  ;;  %2158 = vmatprep.mubr.bf16.mxu0 %v6766_v0 }
 0x2e5   : > { %v4189_v45 = vpop.f32.mrf.mxu0 }
 0x2e6   : > { %v1545_v17 = vmul.f32 %v4423_v52, %v4189_v45  ;;  %v4368_v52 = vld [vmem:[%s6734_s5 + $0x1f0] sm:$0xff]  }
 0x2e7   : > { %v1408_v18 = vpop.f32.mrf.mxu0 }
 0x2e8   : > { %v1544_v31 = vmul.f32 %v4425_v50, %v1408_v18 }
 0x2ea   : > { %v5766_v42 = vpack.c.bf16 %v1545_v17, %v1544_v31 }
 0x2ec   : > { %3746 = vmatmul.mubr.msk.bf16.gmra.mxu1 %vm1692_vm7, %v5766_v42  ;;  %3770 = vmatmul.mubr.msk.bf16.gmra.mxu0 %vm1692_vm7, %v5766_v42 }
 0x2ed   : > { %1912 = vmatprep.mubr.bf16.mxu1 %v6766_v0 }
 0x2f4   : > { %3752 = vmatmul.mubr.msk.bf16.vlgmr.msra.gmra.mxu1 %vm1692_vm7, %v5720_v19 }
 0x2f5   : > { %1956 = vmatpush1.bf16.msra.mxu1 %v3735_v61  ;;  %1922 = vmatprep.mubr.bf16.mxu1 %v6766_v0  ;;  %v4348_v61 = vld [vmem:[%s6734_s5 + $0x30] sm:$0xff]  }
 0x2f6   : > { %1957 = vmatprep.subr.bf16.mxu1 %v3728_v49  ;;  %v4369_v49 = vld [vmem:[%s6734_s5 + $0x1b0] sm:$0xff]  }
 0x2f9   : > { %1958 = vmatpush1.bf16.msra.mxu1 %v3727_v10 }
 0x2fa   : > { %3878 = vmatprep.subr.bf16.mxu1 %v4342_v53 }
 0x2fc   : > { %3753 = vmatmul.mubr.msk.bf16.gmra.mxu1 %vm1692_vm7, %v5758_v33 }
 0x2fd   : > { %1932 = vmatprep.mubr.bf16.mxu1 %v6766_v0 }
 0x304   : > { %3754 = vmatmul.mubr.msk.bf16.gmra.mxu1 %vm1692_vm7, %v5766_v42 }
 0x305   : > { %1975 = vmatprep.mubr.bf16.mxu1 %v6766_v0 }
 0x30c   : > { %3755 = vmatmul.mubr.msk.bf16.vlgmr.msra.gmra.mxu1 %vm1692_vm7, %v5627_v55  ;;  %v4352_v55 = vld [vmem:[%s6734_s5 + $0x60] sm:$0xff]  }
 0x30d   : > { %1985 = vmatprep.mubr.bf16.mxu1 %v6766_v0  ;;  %3879 = vmatpush3.bf16.msra.mxu1 %v4344_v51 }
 0x30e   : > { %3880 = vmatprep.subr.bf16.mxu1 %v4346_v5 }
 0x311   : > { %3881 = vmatpush3.bf16.msra.mxu1 %v4348_v61 }
 0x312   : > { %3882 = vmatprep.subr.bf16.mxu1 %v4350_v27 }
 0x314   : > { %3756 = vmatmul.mubr.msk.bf16.gmra.mxu1 %vm1692_vm7, %v5640_v58  ;;  %v4356_v58 = vld [vmem:[%s6734_s5 + $0x50] sm:$0xff]  }
 0x315   : > { %1995 = vmatprep.mubr.bf16.mxu1 %v6766_v0  ;;  %3883 = vmatpush3.bf16.msra.mxu1 %v4351_v54 }
 0x316   : > { %3884 = vmatprep.subr.bf16.mxu1 %v4352_v55 }
 0x319   : > { %3885 = vmatpush3.bf16.msra.mxu1 %v4353_v14  ;;  %v5919_v14 = vrot.slane %v5858_v59, %v1578_v3 }
 0x31a   : > { %3886 = vmatprep.subr.bf16.mxu1 %v4354_v26 }
 0x31c   : > { %3757 = vmatmul.mubr.msk.bf16.gmra.mxu1 %vm1692_vm7, %v5663_v15  ;;  %v4359_v15 = vld [vmem:[%s6734_s5 + $0x8] sm:$0xff]  }
 0x31d   : > { %2005 = vmatprep.mubr.bf16.mxu1 %v6766_v0  ;;  %3887 = vmatpush3.bf16.msra.mxu1 %v4355_v37  ;;  %v4373_v37 = vld [vmem:[%s6734_s5 + $0x1a8] sm:$0xff]  }
 0x31e   : > { %3888 = vmatprep.subr.bf16.mxu1 %v4356_v58 }
 0x321   : > { %3889 = vmatpush3.bf16.msra.mxu1 %v4357_v46 }
 0x322   : > { %3890 = vmatprep.subr.bf16.mxu1 %v4358_v25 }
 0x324   : > { %3758 = vmatmul.mubr.msk.bf16.gmra.mxu1 %vm1692_vm7, %v5671_v6  ;;  %v4362_v6 = vld [vmem:[%s6734_s5 + $0x178] sm:$0xff]  }
 0x325   : > { %2015 = vmatprep.mubr.bf16.mxu1 %v6766_v0  ;;  %3891 = vmatpush3.bf16.msra.mxu1 %v4359_v15 }
 0x326   : > { %v5864_v62 = vpop.f32.mrf.mxu1  ;;  %v1864_v2 = vpop.f32.mrf.mxu0  ;;  %3892 = vmatprep.subr.bf16.mxu1 %v4360_v7 }
 0x327   : > { %v1865_v20 = vadd.f32 %v1864_v2, %v5873_v56 }
 0x328   : > { %v5875_v28 = vpop.f32.mrf.mxu1  ;;  %v1866_v40 = vpop.f32.mrf.mxu0 }
 0x329   : > { %3893 = vmatpush3.bf16.msra.mxu1 %v4361_v48  ;;  %v1867_v32 = vadd.f32 %v1866_v40, %v5870_v24  ;;  %v2171_v16 = vmax.f32 %v1865_v20, 0.0 }
 0x32a   : > { %v5877_v11 = vpop.f32.mrf.mxu1  ;;  %v1868_v8 = vpop.f32.mrf.mxu0  ;;  %4006 = vmatprep.subr.bf16.mxu1 %v4362_v6  ;;  %v1754_v6 = vadd.f32 %v5875_v28, %v5919_v14  ;;  %v4380_v28 = vld [vmem:[%s6734_s5 + $0x1d8] sm:$0xff]  }
 0x32b   : > { %v1869_v21 = vadd.f32 %v1868_v8, %v5873_v56  ;;  %v2172_v57 = vmax.f32 %v1867_v32, 0.0  ;;  %v4377_v8 = vld [vmem:[%s6734_s5 + $0x1a0] sm:$0xff]  }
 0x32c   : > { %v1757_v36 = vpop.f32.mrf.mxu1  ;;  %v1870_v30 = vpop.f32.mrf.mxu0  ;;  %3759 = vmatmul.mubr.msk.bf16.gmra.mxu1 %vm1692_vm7, %v5679_v29 }
 0x32d   : > { %v1871_v63 = vadd.f32 %v1870_v30, %v5870_v24  ;;  %2025 = vmatprep.mubr.bf16.mxu1 %v6766_v0  ;;  %v2179_v1 = vmax.f32 %v1869_v21, 0.0  ;;  %v1758_v9 = vadd.f32 %v1757_v36, %v5919_v14 }
 0x32e   : > { %v5886_v35 = vpop.f32.mrf.mxu1  ;;  %v1874_v34 = vpop.f32.mrf.mxu0 }
 0x32f   : > { %v2180_v43 = vmax.f32 %v1871_v63, 0.0  ;;  %v2299_v29 = vpack.c.bf16 %v2179_v1, %v2171_v16  ;;  %v1875_v18 = vadd.f32 %v1874_v34, %v5873_v56  ;;  %v2178_v36 = vmax.f32 %v1758_v9, 0.0  ;;  %v4381_v16 = vld [vmem:[%s6734_s5 + $0x198] sm:$0xff]  }
 0x330   : > { %v5888_v47 = vpop.f32.mrf.mxu1  ;;  %v1876_v38 = vpop.f32.mrf.mxu0  ;;  %v5951_v63 = vrot.slane %v5858_v59, %v1574_v4 }
 0x331   : > { %v2300_v39 = vpack.c.bf16 %v2180_v43, %v2172_v57  ;;  %v1877_v50 = vadd.f32 %v1876_v38, %v5870_v24  ;;  %v2187_v27 = vmax.f32 %v1875_v18, 0.0  ;;  %v2170_v57 = vmax.f32 %v1754_v6, 0.0 }
 0x332   : > { %v5893_v44 = vpop.f32.mrf.mxu1  ;;  %v1878_v23 = vpop.f32.mrf.mxu0  ;;  %v1756_v38 = vadd.f32 %v5877_v11, %v5951_v63 }
 0x333   : > { %v1879_v45 = vadd.f32 %v1878_v23, %v5873_v56  ;;  %3009 = vmatprep.mubr.bf16.mxu0 %v2300_v39  ;;  %v2188_v5 = vmax.f32 %v1877_v50, 0.0  ;;  %v2298_v50 = vpack.c.bf16 %v2178_v36, %v2170_v57  ;;  %v4367_v36 = vld [vmem:[%s6734_s5 + $0x130] sm:$0xff]   ;;  %v4389_v57 = vld [vmem:[%s6734_s5 + $0x188] sm:$0xff]  }
 0x334   : > { %v5901_v17 = vpop.f32.mrf.mxu1  ;;  %v1880_v31 = vpop.f32.mrf.mxu0  ;;  %3760 = vmatmul.mubr.msk.bf16.gmra.mxu1 %vm1692_vm7, %v5720_v19  ;;  %3010 = vmatmul.mubr.bf16.vlgmr.msra.gmra.mxu0 %v2299_v29  ;;  %v4372_v19 = vld [vmem:[%s6734_s5 + $0x1e8] sm:$0xff]  }
 0x335   : > { %v1881_v41 = vadd.f32 %v1880_v31, %v5870_v24  ;;  %2035 = vmatprep.mubr.bf16.mxu1 %v6766_v0  ;;  %4071 = vmatpush3.bf16.msra.mxu0 %v4365_v13  ;;  %v2195_v10 = vmax.f32 %v1879_v45, 0.0  ;;  %v1768_v29 = vadd.f32 %v5901_v17, %v5919_v14  ;;  %v1752_v45 = vadd.f32 %v5864_v62, %v5951_v63 }
 0x336   : > { %v5911_v53 = vpop.f32.mrf.mxu1  ;;  %v1884_v51 = vpop.f32.mrf.mxu0  ;;  %4072 = vmatprep.subr.bf16.mxu0 %v4368_v52  ;;  %v1764_v17 = vadd.f32 %v5888_v47, %v5919_v14 }
 0x337   : > { %v2196_v61 = vmax.f32 %v1881_v41, 0.0  ;;  %v2307_v58 = vpack.c.bf16 %v2195_v10, %v2187_v27  ;;  %v1885_v22 = vadd.f32 %v1884_v51, %v5873_v56  ;;  %v2177_v41 = vmax.f32 %v1756_v38, 0.0 }
 0x338   : > { %v5916_v54 = vpop.f32.mrf.mxu1  ;;  %v1886_v55 = vpop.f32.mrf.mxu0  ;;  %v2194_v62 = vmax.f32 %v1768_v29, 0.0  ;;  %v4371_v29 = vld [vmem:[%s6734_s5 + $0x128] sm:$0xff]  }
 0x339   : > { %v2308_v26 = vpack.c.bf16 %v2196_v61, %v2188_v5  ;;  %4073 = vmatpush3.bf16.msra.mxu0 %v4369_v49  ;;  %v1887_v15 = vadd.f32 %v1886_v55, %v5870_v24  ;;  %v4384_v5 = vld [vmem:[%s6734_s5 + $0x1d0] sm:$0xff]   ;;  %v2169_v61 = vmax.f32 %v1752_v45, 0.0  ;;  %v4374_v45 = vld [vmem:[%s6734_s5 + $0x160] sm:$0xff]  }
 0x33a   : > { %v5924_v46 = vpop.f32.mrf.mxu1  ;;  %v1888_v25 = vpop.f32.mrf.mxu0  ;;  %4074 = vmatprep.subr.bf16.mxu0 %v4372_v19 }
 0x33b   : > { %v1889_v7 = vadd.f32 %v1888_v25, %v5873_v56  ;;  %3017 = vmatprep.mubr.bf16.mxu0 %v2308_v26  ;;  %v2186_v26 = vmax.f32 %v1764_v17, 0.0  ;;  %v2297_v25 = vpack.c.bf16 %v2177_v41, %v2169_v61  ;;  %v1772_v17 = vadd.f32 %v5911_v53, %v5951_v63  ;;  %v4375_v41 = vld [vmem:[%s6734_s5 + $0x120] sm:$0xff]   ;;  %v4378_v53 = vld [vmem:[%s6734_s5 + $0x158] sm:$0xff]  }
 0x33c   : > { %v5934_v48 = vpop.f32.mrf.mxu1  ;;  %v1890_v2 = vpop.f32.mrf.mxu0  ;;  %3761 = vmatmul.mubr.msk.bf16.gmra.mxu1 %vm1692_vm7, %v5758_v33  ;;  %3018 = vmatmul.mubr.bf16.gmra.mxu0 %v2307_v58  ;;  %v2204_v33 = vmax.f32 %v1887_v15, 0.0  ;;  %v4363_v58 = vld [vmem:[%s6734_s5 + $0x138] sm:$0xff]  }
 0x33d   : > { %v1891_v40 = vadd.f32 %v1890_v2, %v5870_v24  ;;  %2045 = vmatprep.mubr.bf16.mxu1 %v6766_v0  ;;  %4075 = vmatpush3.bf16.msra.mxu0 %v4373_v37  ;;  %v2211_v32 = vmax.f32 %v1889_v7, 0.0  ;;  %v2203_v0 = vmax.f32 %v1885_v22, 0.0  ;;  %v4366_v7 = vld [vmem:[%s6734_s5 + $0x170] sm:$0xff]   ;;  %v1778_v4 = vadd.f32 %v5934_v48, %v5919_v14 }
 0x33e   : > { %v5945_v21 = vpop.f32.mrf.mxu1  ;;  %v1894_v20 = vpop.f32.mrf.mxu0  ;;  %4076 = vmatprep.subr.bf16.mxu0 %v4376_v60  ;;  %v1766_v60 = vadd.f32 %v5893_v44, %v5951_v63  ;;  %v2306_v6 = vpack.c.bf16 %v2194_v62, %v2186_v26 }
 0x33f   : > { %v2212_v30 = vmax.f32 %v1891_v40, 0.0  ;;  %v2315_v39 = vpack.c.bf16 %v2211_v32, %v2203_v0  ;;  %v1895_v18 = vadd.f32 %v1894_v20, %v5873_v56  ;;  %v1762_v40 = vadd.f32 %v5886_v35, %v5951_v63 }
 0x340   : > { %v5953_v1 = vpop.f32.mrf.mxu1  ;;  %v1896_v34 = vpop.f32.mrf.mxu0  ;;  %v1774_v20 = vadd.f32 %v5916_v54, %v5919_v14  ;;  %v4388_v54 = vld [vmem:[%s6734_s5 + $0x1c8] sm:$0xff]  }
 0x341   : > { %v2316_v43 = vpack.c.bf16 %v2212_v30, %v2204_v33  ;;  %4077 = vmatpush3.bf16.msra.mxu0 %v4377_v8  ;;  %v1897_v23 = vadd.f32 %v1896_v34, %v5870_v24  ;;  %v2219_v47 = vmax.f32 %v1895_v18, 0.0  ;;  %v2193_v33 = vmax.f32 %v1766_v60, 0.0  ;;  %v4370_v30 = vld [vmem:[%s6734_s5 + $0x168] sm:$0xff]  }
 0x342   : > { %v1898_v13 = vpop.f32.mrf.mxu0  ;;  %4078 = vmatprep.subr.bf16.mxu0 %v4380_v28  ;;  %v5967_v31 = vpop.f32.mrf.mxu1  ;;  %v2210_v28 = vmax.f32 %v1778_v4, 0.0  ;;  %v4386_v60 = vld [vmem:[%s6734_s5 + $0x148] sm:$0xff]  }
 0x343   : > { %v1899_v52 = vadd.f32 %v1898_v13, %v5873_v56  ;;  %3025 = vmatprep.mubr.bf16.mxu0 %v2316_v43  ;;  %v2220_v51 = vmax.f32 %v1897_v23, 0.0  ;;  %v2185_v43 = vmax.f32 %v1762_v40, 0.0 }
 0x344   : > { %v1900_v11 = vpop.f32.mrf.mxu0  ;;  %3762 = vmatmul.mubr.msk.bf16.gmra.mxu1 %vm1692_vm7, %v5766_v42  ;;  %3026 = vmatmul.mubr.bf16.gmra.mxu0 %v2315_v39  ;;  %v4385_v42 = vld [vmem:[%s6734_s5 + $0x190] sm:$0xff]   ;;  %v1787_v27 = vpop.f32.mrf.mxu1  ;;  %v2202_v39 = vmax.f32 %v1774_v20, 0.0  ;;  %v4391_v20 = vld [vmem:[%s6734_s5 + $0x100] sm:$0xff]  }
 0x345   : > { %v1901_v3 = vadd.f32 %v1900_v11, %v5870_v24  ;;  %2912 = vmatprep.mubr.bf16.mxu1 %v2298_v50  ;;  %4079 = vmatpush3.bf16.msra.mxu0 %v4381_v16  ;;  %v2227_v49 = vmax.f32 %v1899_v52, 0.0  ;;  %v2305_v23 = vpack.c.bf16 %v2193_v33, %v2185_v43  ;;  %v1776_v52 = vadd.f32 %v5924_v46, %v5951_v63 }
 0x346   : > { %v1904_v10 = vpop.f32.mrf.mxu0  ;;  %4080 = vmatprep.subr.bf16.mxu0 %v4384_v5  ;;  %v5994_v44 = vpop.f32.mrf.mxu1  ;;  %v1788_v18 = vadd.f32 %v1787_v27, %v5919_v14  ;;  %v2314_v11 = vpack.c.bf16 %v2210_v28, %v2202_v39  ;;  %v1784_v46 = vadd.f32 %v5953_v1, %v5919_v14  ;;  %v4393_v1 = vld [vmem:[%s6734_s5 + $0x180] sm:$0xff]   ;;  %v4382_v27 = vld [vmem:[%s6734_s5 + $0x150] sm:$0xff]  }
 0x347   : > { %v2228_v19 = vmax.f32 %v1901_v3, 0.0  ;;  %v2323_v9 = vpack.c.bf16 %v2227_v49, %v2219_v47  ;;  %v1905_v8 = vadd.f32 %v1904_v10, %v5873_v56  ;;  %v4392_v49 = vld [vmem:[%s6734_s5 + $0x1c0] sm:$0xff]   ;;  %v2209_v10 = vmax.f32 %v1776_v52, 0.0 }
 0x348   : > { %v1906_v55 = vpop.f32.mrf.mxu0  ;;  %v1793_v38 = vpop.f32.mrf.mxu1  ;;  %v2226_v62 = vmax.f32 %v1788_v18, 0.0  ;;  %v2218_v5 = vmax.f32 %v1784_v46, 0.0  ;;  %v1786_v47 = vadd.f32 %v5967_v31, %v5951_v63  ;;  %v4383_v31 = vld [vmem:[%s6734_s5 + $0x110] sm:$0xff]  }
 0x349   : > { %v2324_v37 = vpack.c.bf16 %v2228_v19, %v2220_v51  ;;  %4081 = vmatpush3.bf16.msra.mxu0 %v4385_v42  ;;  %v1907_v22 = vadd.f32 %v1906_v55, %v5870_v24  ;;  %v2235_v16 = vmax.f32 %v1905_v8, 0.0  ;;  %v2201_v51 = vmax.f32 %v1772_v17, 0.0  ;;  %v4379_v42 = vld [vmem:[%s6734_s5 + $0x118] sm:$0xff]  }
 0x34a   : > { %v1908_v15 = vpop.f32.mrf.mxu0  ;;  %4082 = vmatprep.subr.bf16.mxu0 %v4388_v54  ;;  %v1795_v3 = vpop.f32.mrf.mxu1  ;;  %v2322_v26 = vpack.c.bf16 %v2226_v62, %v2218_v5  ;;  %v1792_v8 = vadd.f32 %v5994_v44, %v5951_v63 }
 0x34b   : > { %v1909_v2 = vadd.f32 %v1908_v15, %v5873_v56  ;;  %3033 = vmatprep.mubr.bf16.mxu0 %v2324_v37  ;;  %v2236_v0 = vmax.f32 %v1907_v22, 0.0  ;;  %v2313_v61 = vpack.c.bf16 %v2209_v10, %v2201_v51  ;;  %v1782_v37 = vadd.f32 %v5945_v21, %v5951_v63  ;;  %v4387_v21 = vld [vmem:[%s6734_s5 + $0x108] sm:$0xff]  }
 0x34c   : > { %v1910_v32 = vpop.f32.mrf.mxu0  ;;  %2913 = vmatmul.mubr.bf16.vlgmr.msra.gmra.mxu1 %v2297_v25  ;;  %3034 = vmatmul.mubr.bf16.gmra.mxu0 %v2323_v9  ;;  %v1797_v19 = vpop.f32.mrf.mxu1  ;;  %v2225_v25 = vmax.f32 %v1786_v47, 0.0  ;;  %v1796_v22 = vadd.f32 %v1795_v3, %v5951_v63 }
 0x34d   : > { %v1911_v48 = vadd.f32 %v1910_v32, %v5870_v24  ;;  %2920 = vmatprep.mubr.bf16.mxu1 %v2306_v6  ;;  %4007 = vmatpush3.bf16.msra.mxu1 %v4363_v58  ;;  %v2243_v35 = vmax.f32 %v1909_v2, 0.0  ;;  %v1798_v55 = vadd.f32 %v1797_v19, %v5919_v14  ;;  %v1794_v58 = vadd.f32 %v1793_v38, %v5919_v14  ;;  %v4390_v6 = vld [vmem:[%s6734_s5 + $0x140] sm:$0xff]  }
 0x34e   : > { %4008 = vmatprep.subr.bf16.mxu1 %v4366_v7  ;;  %4083 = vmatpush3.bf16.msra.mxu0 %v4389_v57  ;;  %v2217_v15 = vmax.f32 %v1782_v37, 0.0 }
 0x34f   : > { %v2244_v34 = vmax.f32 %v1911_v48, 0.0  ;;  %v2331_v50 = vpack.c.bf16 %v2243_v35, %v2235_v16  ;;  %4084 = vmatprep.subr.bf16.mxu0 %v4392_v49  ;;  %v2242_v9 = vmax.f32 %v1798_v55, 0.0  ;;  %v2234_v7 = vmax.f32 %v1794_v58, 0.0 }
 0x350   : > { %v2321_v4 = vpack.c.bf16 %v2225_v25, %v2217_v15  ;;  %v2241_v48 = vmax.f32 %v1796_v22, 0.0  ;;  %v2233_v35 = vmax.f32 %v1792_v8, 0.0 }
 0x351   : > { %v2332_v13 = vpack.c.bf16 %v2244_v34, %v2236_v0  ;;  %4009 = vmatpush3.bf16.msra.mxu1 %v4367_v36  ;;  %v2330_v40 = vpack.c.bf16 %v2242_v9, %v2234_v7 }
 0x352   : > { %4010 = vmatprep.subr.bf16.mxu1 %v4370_v30  ;;  %4085 = vmatpush3.bf16.msra.mxu0 %v4393_v1  ;;  %v2329_v0 = vpack.c.bf16 %v2241_v48, %v2233_v35 }
 0x353   : > { %3041 = vmatprep.mubr.bf16.mxu0 %v2332_v13  ;;  %v6071_v13 = vpop.f32.mrf.mxu0 }
 0x354   : > { %2921 = vmatmul.mubr.bf16.gmra.mxu1 %v2305_v23  ;;  %3042 = vmatmul.mubr.bf16.gmra.mxu0 %v2331_v50 }
 0x355   : > { %2928 = vmatprep.mubr.bf16.mxu1 %v2314_v11  ;;  %4011 = vmatpush3.bf16.msra.mxu1 %v4371_v29  ;;  %v6073_v29 = vpop.f32.mrf.mxu0 }
 0x356   : > { %4012 = vmatprep.subr.bf16.mxu1 %v4374_v45 }
 0x357   : > { %v6075_v23 = vpop.f32.mrf.mxu0 }
 0x359   : > { %4013 = vmatpush3.bf16.msra.mxu1 %v4375_v41  ;;  %v6077_v52 = vpop.f32.mrf.mxu0 }
 0x35a   : > { %4014 = vmatprep.subr.bf16.mxu1 %v4378_v53 }
 0x35b   : > { %v6079_v18 = vpop.f32.mrf.mxu0 }
 0x35c   : > { %2929 = vmatmul.mubr.bf16.gmra.mxu1 %v2313_v61 }
 0x35d   : > { %2936 = vmatprep.mubr.bf16.mxu1 %v2322_v26  ;;  %4015 = vmatpush3.bf16.msra.mxu1 %v4379_v42  ;;  %v6084_v49 = vpop.f32.mrf.mxu0 }
 0x35e   : > { %4016 = vmatprep.subr.bf16.mxu1 %v4382_v27 }
 0x35f   : > { %v6087_v19 = vpop.f32.mrf.mxu0 }
 0x361   : > { %4017 = vmatpush3.bf16.msra.mxu1 %v4383_v31  ;;  %v6089_v61 = vpop.f32.mrf.mxu0 }
 0x362   : > { %v1801_v2 = vpop.f32.mrf.mxu1  ;;  %4018 = vmatprep.subr.bf16.mxu1 %v4386_v60 }
 0x363   : > { %v1802_v57 = vadd.f32 %v1801_v2, %v5951_v63  ;;  %v6091_v47 = vpop.f32.mrf.mxu0 }
 0x364   : > { %v1803_v32 = vpop.f32.mrf.mxu1  ;;  %2937 = vmatmul.mubr.bf16.gmra.mxu1 %v2321_v4 }
 0x365   : > { %2944 = vmatprep.mubr.bf16.mxu1 %v2330_v40  ;;  %4019 = vmatpush3.bf16.msra.mxu1 %v4387_v21  ;;  %v1804_v33 = vadd.f32 %v1803_v32, %v5919_v14  ;;  %v2249_v38 = vmax.f32 %v1802_v57, 0.0  ;;  %v6093_v27 = vpop.f32.mrf.mxu0 }
 0x366   : > { %v1805_v36 = vpop.f32.mrf.mxu1  ;;  %4020 = vmatprep.subr.bf16.mxu1 %v4390_v6 }
 0x367   : > { %v1806_v44 = vadd.f32 %v1805_v36, %v5951_v63  ;;  %v2250_v34 = vmax.f32 %v1804_v33, 0.0  ;;  %v6095_v26 = vpop.f32.mrf.mxu0 }
 0x368   : > { %v1807_v30 = vpop.f32.mrf.mxu1 }
 0x369   : > { %v1808_v28 = vadd.f32 %v1807_v30, %v5919_v14  ;;  %4021 = vmatpush3.bf16.msra.mxu1 %v4391_v20  ;;  %v2257_v16 = vmax.f32 %v1806_v44, 0.0  ;;  %v6099_v60 = vpop.f32.mrf.mxu0 }
 0x36b   : > { %v2258_v54 = vmax.f32 %v1808_v28, 0.0  ;;  %v2337_v39 = vpack.c.bf16 %v2257_v16, %v2249_v38  ;;  %v6103_v6 = vpop.f32.mrf.mxu0 }
 0x36c   : > { %2945 = vmatmul.mubr.bf16.gmra.mxu1 %v2329_v0 }
 0x36d   : > { %v2338_v43 = vpack.c.bf16 %v2258_v54, %v2250_v34 }
 0x36f   : > { %2952 = vmatprep.mubr.bf16.mxu1 %v2338_v43 }
 0x374   : > { %2953 = vmatmul.mubr.bf16.gmra.mxu1 %v2337_v39 }
 0x393   : > { %v1811_v50 = vpop.f32.mrf.mxu1 }
 0x394   : > { %v1812_v46 = vadd.f32 %v1811_v50, %v5951_v63 }
 0x395   : > { %v1813_v45 = vpop.f32.mrf.mxu1 }
 0x396   : > { %v1814_v17 = vadd.f32 %v1813_v45, %v5919_v14  ;;  %v2265_v51 = vmax.f32 %v1812_v46, 0.0  ;;  %v1602_v46 = vsub.s32 7, %v5843_v12 }
 0x397   : > { %v1815_v11 = vpop.f32.mrf.mxu1 }
 0x398   : > { %v1816_v3 = vadd.f32 %v1815_v11, %v5951_v63  ;;  %v2266_v1 = vmax.f32 %v1814_v17, 0.0 }
 0x399   : > { %v1817_v41 = vpop.f32.mrf.mxu1 }
 0x39a   : > { %v1818_v10 = vadd.f32 %v1817_v41, %v5919_v14  ;;  %v2273_v53 = vmax.f32 %v1816_v3, 0.0 }
 0x39c   : > { %v2274_v62 = vmax.f32 %v1818_v10, 0.0  ;;  %v2345_v42 = vpack.c.bf16 %v2273_v53, %v2265_v51 }
 0x39e   : > { %v2346_v5 = vpack.c.bf16 %v2274_v62, %v2266_v1 }
 0x3a0   : > { %2960 = vmatprep.mubr.bf16.mxu1 %v2346_v5 }
 0x3a1   : > { %2961 = vmatmul.mubr.bf16.gmra.mxu1 %v2345_v42 }
 0x3ac   : > { %v1821_v55 = vpop.f32.mrf.mxu1 }
 0x3ad   : > { %v1822_v9 = vadd.f32 %v1821_v55, %v5951_v63  ;;  %v6123_v55 = vrot.slane %v5858_v59, %v1602_v46 }
 0x3ae   : > { %v1823_v37 = vpop.f32.mrf.mxu1 }
 0x3af   : > { %v1824_v31 = vadd.f32 %v1823_v37, %v5919_v14  ;;  %v2281_v40 = vmax.f32 %v1822_v9, 0.0 }
 0x3b0   : > { %v1825_v58 = vpop.f32.mrf.mxu1 }
 0x3b1   : > { %v1826_v25 = vadd.f32 %v1825_v58, %v5951_v63  ;;  %v2282_v22 = vmax.f32 %v1824_v31, 0.0  ;;  %v6107_v63 = vpop.f32.mrf.mxu0 }
 0x3b2   : > { %v1827_v15 = vpop.f32.mrf.mxu1 }
 0x3b3   : > { %v1828_v7 = vadd.f32 %v1827_v15, %v5919_v14  ;;  %v2289_v21 = vmax.f32 %v1826_v25, 0.0  ;;  %v6111_v54 = vpop.f32.mrf.mxu0  ;;  %v2097_v25 = vadd.f32 %v6077_v52, %v6123_v55  ;;  %v2093_v52 = vadd.f32 %v6073_v29, %v6123_v55 }
 0x3b4   : > { %v1914_v4 = vpop.f32.mrf.mxu1 }
 0x3b5   : > { %v2290_v2 = vmax.f32 %v1828_v7, 0.0  ;;  %v2353_v20 = vpack.c.bf16 %v2289_v21, %v2281_v40  ;;  %v1915_v14 = vadd.f32 %v1914_v4, %v5873_v56  ;;  %v6115_v11 = vpop.f32.mrf.mxu0  ;;  %v1594_v7 = vsub.s32 5, %v5843_v12 }
 0x3b6   : > { %v1916_v8 = vpop.f32.mrf.mxu1  ;;  %v1598_v21 = vsub.s32 6, %v5843_v12  ;;  %v1590_v40 = vsub.s32 4, %v5843_v12 }
 0x3b7   : > { %v2354_v32 = vpack.c.bf16 %v2290_v2, %v2282_v22  ;;  %v1917_v36 = vadd.f32 %v1916_v8, %v5870_v24  ;;  %v2251_v57 = vmax.f32 %v1915_v14, 0.0  ;;  %v6120_v51 = vpop.f32.mrf.mxu0  ;;  %v6139_v14 = vrot.slane %v5858_v59, %v1594_v7 }
 0x3b8   : > { %v1918_v48 = vpop.f32.mrf.mxu1  ;;  %v6147_v12 = vrot.slane %v5858_v59, %v1590_v40 }
 0x3b9   : > { %v1919_v33 = vadd.f32 %v1918_v48, %v5873_v56  ;;  %2968 = vmatprep.mubr.bf16.mxu1 %v2354_v32  ;;  %v2252_v44 = vmax.f32 %v1917_v36, 0.0  ;;  %v6131_v4 = vpop.f32.mrf.mxu0  ;;  %v2184_v48 = vmax.f32 %v2097_v25, 0.0 }
 0x3ba   : > { %v1920_v35 = vpop.f32.mrf.mxu1  ;;  %2969 = vmatmul.mubr.bf16.gmra.mxu1 %v2353_v20 }
 0x3bb   : > { %v1921_v30 = vadd.f32 %v1920_v35, %v5870_v24  ;;  %v2259_v28 = vmax.f32 %v1919_v33, 0.0  ;;  %v6142_v35 = vrot.slane %v5858_v59, %v1598_v21 }
 0x3bc   : > { %v1924_v0 = vpop.f32.mrf.mxu1 }
 0x3bd   : > { %v2260_v34 = vmax.f32 %v1921_v30, 0.0  ;;  %v2339_v38 = vpack.c.bf16 %v2259_v28, %v2251_v57  ;;  %v1925_v17 = vadd.f32 %v1924_v0, %v5873_v56  ;;  %v2176_v28 = vmax.f32 %v2093_v52, 0.0 }
 0x3be   : > { %v1926_v43 = vpop.f32.mrf.mxu1  ;;  %v2095_v0 = vadd.f32 %v6075_v23, %v6142_v35  ;;  %v2091_v59 = vadd.f32 %v6071_v13, %v6142_v35  ;;  %v2103_v23 = vadd.f32 %v6084_v49, %v6123_v55  ;;  %v2105_v49 = vadd.f32 %v6087_v19, %v6142_v35 }
 0x3bf   : > { %v2340_v16 = vpack.c.bf16 %v2260_v34, %v2252_v44  ;;  %v1927_v50 = vadd.f32 %v1926_v43, %v5870_v24  ;;  %v2267_v5 = vmax.f32 %v1925_v17, 0.0  ;;  %v2304_v57 = vpack.c.bf16 %v2184_v48, %v2176_v28 }
 0x3c0   : > { %v1928_v39 = vpop.f32.mrf.mxu1  ;;  %v2107_v43 = vadd.f32 %v6089_v61, %v6123_v55  ;;  %v2183_v61 = vmax.f32 %v2095_v0, 0.0  ;;  %v2113_v19 = vadd.f32 %v6093_v27, %v6123_v55  ;;  %v2115_v27 = vadd.f32 %v6095_v26, %v6142_v35 }
 0x3c1   : > { %v1929_v45 = vadd.f32 %v1928_v39, %v5873_v56  ;;  %3049 = vmatprep.mubr.bf16.mxu0 %v2340_v16  ;;  %v2268_v1 = vmax.f32 %v1927_v50, 0.0  ;;  %v2123_v26 = vadd.f32 %v6107_v63, %v6123_v55  ;;  %v2125_v63 = vadd.f32 %v6111_v54, %v6142_v35 }
 0x3c2   : > { %v1930_v3 = vpop.f32.mrf.mxu1  ;;  %3050 = vmatmul.mubr.bf16.gmra.mxu0 %v2339_v38  ;;  %v2133_v54 = vadd.f32 %v6131_v4, %v6123_v55 }
 0x3c3   : > { %v1931_v41 = vadd.f32 %v1930_v3, %v5870_v24  ;;  %v2275_v10 = vmax.f32 %v1929_v45, 0.0 }
 0x3c4   : > { %v1934_v53 = vpop.f32.mrf.mxu1 }
 0x3c5   : > { %v2276_v62 = vmax.f32 %v1931_v41, 0.0  ;;  %v2347_v58 = vpack.c.bf16 %v2275_v10, %v2267_v5  ;;  %v1935_v22 = vadd.f32 %v1934_v53, %v5873_v56  ;;  %v2200_v41 = vmax.f32 %v2107_v43, 0.0 }
 0x3c6   : > { %v1936_v42 = vpop.f32.mrf.mxu1 }
 0x3c7   : > { %v2348_v37 = vpack.c.bf16 %v2276_v62, %v2268_v1  ;;  %v1937_v9 = vadd.f32 %v1936_v42, %v5870_v24  ;;  %v2283_v30 = vmax.f32 %v1935_v22, 0.0  ;;  %v2175_v1 = vmax.f32 %v2091_v59, 0.0 }
 0x3c8   : > { %v1938_v31 = vpop.f32.mrf.mxu1  ;;  %v2192_v42 = vmax.f32 %v2103_v23, 0.0  ;;  %v2101_v22 = vadd.f32 %v6079_v18, %v6142_v35 }
 0x3c9   : > { %v1939_v15 = vadd.f32 %v1938_v31, %v5873_v56  ;;  %3057 = vmatprep.mubr.bf16.mxu0 %v2348_v37  ;;  %v2284_v36 = vmax.f32 %v1937_v9, 0.0  ;;  %v6144_v56 = vpop.f32.mrf.mxu0 }
 0x3ca   : > { %v1940_v2 = vpop.f32.mrf.mxu1  ;;  %3058 = vmatmul.mubr.bf16.gmra.mxu0 %v2347_v58  ;;  %v2303_v58 = vpack.c.bf16 %v2183_v61, %v2175_v1  ;;  %v2312_v9 = vpack.c.bf16 %v2200_v41, %v2192_v42  ;;  %v2191_v18 = vmax.f32 %v2101_v22, 0.0  ;;  %v2224_v42 = vmax.f32 %v2123_v26, 0.0 }
 0x3cb   : > { %v1941_v8 = vadd.f32 %v1940_v2, %v5870_v24  ;;  %v2291_v32 = vmax.f32 %v1939_v15, 0.0  ;;  %v6157_v39 = vpop.f32.mrf.mxu0  ;;  %v2117_v15 = vadd.f32 %v6099_v60, %v6123_v55  ;;  %v2121_v22 = vadd.f32 %v6103_v6, %v6142_v35 }
 0x3cc   : > { %v1977_v20 = vpop.f32.mrf.mxu1  ;;  %v2135_v4 = vadd.f32 %v6144_v56, %v6142_v35 }
 0x3cd   : > { %v2292_v33 = vmax.f32 %v1941_v8, 0.0  ;;  %v2355_v44 = vpack.c.bf16 %v2291_v32, %v2283_v30  ;;  %v1978_v50 = vadd.f32 %v1977_v20, %v6147_v12  ;;  %v6163_v13 = vpop.f32.mrf.mxu0  ;;  %v2199_v8 = vmax.f32 %v2105_v49, 0.0 }
 0x3ce   : > { %v1979_v29 = vpop.f32.mrf.mxu1  ;;  %v2216_v48 = vmax.f32 %v2117_v15, 0.0  ;;  %v2137_v15 = vadd.f32 %v6157_v39, %v6123_v55  ;;  %v2231_v39 = vmax.f32 %v2125_v63, 0.0  ;;  %v2223_v6 = vmax.f32 %v2121_v22, 0.0 }
 0x3cf   : > { %v2356_v24 = vpack.c.bf16 %v2292_v33, %v2284_v36  ;;  %v1980_v16 = vadd.f32 %v1979_v29, %v6139_v14  ;;  %v2173_v62 = vmax.f32 %v1978_v50, 0.0  ;;  %v6173_v2 = vpop.f32.mrf.mxu0  ;;  %v2111_v50 = vadd.f32 %v6091_v47, %v6142_v35 }
 0x3d0   : > { %v1981_v34 = vpop.f32.mrf.mxu1  ;;  %v2143_v56 = vadd.f32 %v6173_v2, %v6123_v55 }
 0x3d1   : > { %v1982_v38 = vadd.f32 %v1981_v34, %v6147_v12  ;;  %3065 = vmatprep.mubr.bf16.mxu0 %v2356_v24  ;;  %v2174_v10 = vmax.f32 %v1980_v16, 0.0  ;;  %v6179_v30 = vpop.f32.mrf.mxu0  ;;  %v2208_v24 = vmax.f32 %v2113_v19, 0.0  ;;  %v2127_v16 = vadd.f32 %v6115_v11, %v6123_v55 }
 0x3d2   : > { %v1983_v45 = vpop.f32.mrf.mxu1  ;;  %3066 = vmatmul.mubr.bf16.gmra.mxu0 %v2355_v44  ;;  %v2311_v44 = vpack.c.bf16 %v2199_v8, %v2191_v18  ;;  %v2215_v11 = vmax.f32 %v2115_v27, 0.0  ;;  %v2207_v1 = vmax.f32 %v2111_v50, 0.0 }
 0x3d3   : > { %v1984_v17 = vadd.f32 %v1983_v45, %v6139_v14  ;;  %3203 = vmatprep.mubr.bf16.mxu0 %v2304_v57  ;;  %v2181_v3 = vmax.f32 %v1982_v38, 0.0  ;;  %v2320_v43 = vpack.c.bf16 %v2216_v48, %v2208_v24  ;;  %v2146_v45 = vpop.f32.mrf.mxu0  ;;  %v2327_v24 = vpack.c.bf16 %v2231_v39, %v2223_v6 }
 0x3d4   : > { %v1987_v46 = vpop.f32.mrf.mxu1 }
 0x3d5   : > { %v2182_v53 = vmax.f32 %v1984_v17, 0.0  ;;  %v2301_v31 = vpack.c.bf16 %v2181_v3, %v2173_v62  ;;  %v1988_v40 = vadd.f32 %v1987_v46, %v6147_v12  ;;  %v6193_v3 = vpop.f32.mrf.mxu0 }
 0x3d6   : > { %v1989_v5 = vpop.f32.mrf.mxu1 }
 0x3d7   : > { %v2302_v37 = vpack.c.bf16 %v2182_v53, %v2174_v10  ;;  %v1990_v7 = vadd.f32 %v1989_v5, %v6139_v14  ;;  %v2189_v29 = vmax.f32 %v1988_v40, 0.0  ;;  %v2232_v10 = vmax.f32 %v2127_v16, 0.0  ;;  %v6197_v49 = vpop.f32.mrf.mxu0 }
 0x3d8   : > { %v1991_v25 = vpop.f32.mrf.mxu1 }
 0x3d9   : > { %v1992_v21 = vadd.f32 %v1991_v25, %v6147_v12  ;;  %3106 = vmatprep.mubr.bf16.mxu1 %v2302_v37  ;;  %v2190_v36 = vmax.f32 %v1990_v7, 0.0 }
 0x3da   : > { %v1993_v52 = vpop.f32.mrf.mxu1  ;;  %3107 = vmatmul.mubr.bf16.vlgmr.msra.gmra.mxu1 %v2301_v31  ;;  %3204 = vmatmul.mubr.bf16.vlgmr.msra.gmra.mxu0 %v2303_v58  ;;  %v2319_v58 = vpack.c.bf16 %v2215_v11, %v2207_v1  ;;  %v2256_v1 = vmax.f32 %v2143_v56, 0.0 }
 0x3db   : > { %v1994_v60 = vadd.f32 %v1993_v52, %v6139_v14  ;;  %3211 = vmatprep.mubr.bf16.mxu0 %v2312_v9  ;;  %v2197_v32 = vmax.f32 %v1992_v21, 0.0  ;;  %v2328_v9 = vpack.c.bf16 %v2232_v10, %v2224_v42  ;;  %v2145_v42 = vadd.f32 %v6179_v30, %v6142_v35 }
 0x3dc   : > { %v1997_v20 = vpop.f32.mrf.mxu1  ;;  %v2153_v30 = vadd.f32 %v6197_v49, %v6123_v55 }
 0x3dd   : > { %v2198_v33 = vmax.f32 %v1994_v60, 0.0  ;;  %v2309_v34 = vpack.c.bf16 %v2197_v32, %v2189_v29  ;;  %v1998_v23 = vadd.f32 %v1997_v20, %v6147_v12  ;;  %v6209_v60 = vpop.f32.mrf.mxu0  ;;  %v2248_v20 = vmax.f32 %v2137_v15, 0.0 }
 0x3de   : > { %v1999_v28 = vpop.f32.mrf.mxu1  ;;  %v2240_v29 = vmax.f32 %v2133_v54, 0.0 }
 0x3df   : > { %v2310_v0 = vpack.c.bf16 %v2198_v33, %v2190_v36  ;;  %v2000_v38 = vadd.f32 %v1999_v28, %v6139_v14  ;;  %v2205_v62 = vmax.f32 %v1998_v23, 0.0 }
 0x3e0   : > { %v2001_v57 = vpop.f32.mrf.mxu1 }
 0x3e1   : > { %v2002_v59 = vadd.f32 %v2001_v57, %v6147_v12  ;;  %3114 = vmatprep.mubr.bf16.mxu1 %v2310_v0  ;;  %v2206_v53 = vmax.f32 %v2000_v38, 0.0  ;;  %v2156_v0 = vpop.f32.mrf.mxu0  ;;  %v2147_v57 = vadd.f32 %v2146_v45, %v6123_v55  ;;  %v2131_v38 = vadd.f32 %v6120_v51, %v6142_v35 }
 0x3e2   : > { %v2003_v17 = vpop.f32.mrf.mxu1  ;;  %3115 = vmatmul.mubr.bf16.gmra.mxu1 %v2309_v34  ;;  %3212 = vmatmul.mubr.bf16.gmra.mxu0 %v2311_v44  ;;  %v2336_v34 = vpack.c.bf16 %v2248_v20, %v2240_v29  ;;  %v2157_v63 = vadd.f32 %v2156_v0, %v6123_v55 }
 0x3e3   : > { %v2004_v61 = vadd.f32 %v2003_v17, %v6139_v14  ;;  %3219 = vmatprep.mubr.bf16.mxu0 %v2320_v43  ;;  %v2213_v46 = vmax.f32 %v2002_v59, 0.0  ;;  %v6218_v59 = vpop.f32.mrf.mxu0  ;;  %v2247_v17 = vmax.f32 %v2135_v4, 0.0  ;;  %v2264_v11 = vmax.f32 %v2147_v57, 0.0 }
 0x3e4   : > { %v2007_v41 = vpop.f32.mrf.mxu1  ;;  %v2239_v51 = vmax.f32 %v2131_v38, 0.0 }
 0x3e5   : > { %v2214_v47 = vmax.f32 %v2004_v61, 0.0  ;;  %v2317_v31 = vpack.c.bf16 %v2213_v46, %v2205_v62  ;;  %v2008_v40 = vadd.f32 %v2007_v41, %v6147_v12  ;;  %v2162_v10 = vpop.f32.mrf.mxu0 }
 0x3e6   : > { %v2009_v5 = vpop.f32.mrf.mxu1 }
 0x3e7   : > { %v2318_v37 = vpack.c.bf16 %v2214_v47, %v2206_v53  ;;  %v2010_v7 = vadd.f32 %v2009_v5, %v6139_v14  ;;  %v2221_v33 = vmax.f32 %v2008_v40, 0.0  ;;  %v2335_v5 = vpack.c.bf16 %v2247_v17, %v2239_v51  ;;  %v2164_v15 = vpop.f32.mrf.mxu0 }
 0x3e8   : > { %v2011_v25 = vpop.f32.mrf.mxu1  ;;  %v2263_v40 = vmax.f32 %v2145_v42, 0.0 }
 0x3e9   : > { %v2012_v21 = vadd.f32 %v2011_v25, %v6147_v12  ;;  %3122 = vmatprep.mubr.bf16.mxu1 %v2318_v37  ;;  %v2222_v48 = vmax.f32 %v2010_v7, 0.0 }
 0x3ea   : > { %v2013_v52 = vpop.f32.mrf.mxu1  ;;  %3123 = vmatmul.mubr.bf16.gmra.mxu1 %v2317_v31  ;;  %3220 = vmatmul.mubr.bf16.gmra.mxu0 %v2319_v58  ;;  %v2344_v58 = vpack.c.bf16 %v2264_v11, %v2256_v1 }
 0x3eb   : > { %v2014_v19 = vadd.f32 %v2013_v52, %v6139_v14  ;;  %3227 = vmatprep.mubr.bf16.mxu0 %v2328_v9  ;;  %v2229_v8 = vmax.f32 %v2012_v21, 0.0  ;;  %v2141_v9 = vadd.f32 %v6163_v13, %v6142_v35  ;;  %v2166_v13 = vpop.f32.mrf.mxu0 }
 0x3ec   : > { %v2017_v32 = vpop.f32.mrf.mxu1 }
 0x3ed   : > { %v2230_v36 = vmax.f32 %v2014_v19, 0.0  ;;  %v2325_v44 = vpack.c.bf16 %v2229_v8, %v2221_v33  ;;  %v2018_v50 = vadd.f32 %v2017_v32, %v6147_v12  ;;  %v2280_v19 = vmax.f32 %v2157_v63, 0.0 }
 0x3ee   : > { %v2019_v18 = vpop.f32.mrf.mxu1  ;;  %v2255_v32 = vmax.f32 %v2141_v9, 0.0 }
 0x3ef   : > { %v2326_v28 = vpack.c.bf16 %v2230_v36, %v2222_v48  ;;  %v2020_v43 = vadd.f32 %v2019_v18, %v6139_v14  ;;  %v2237_v53 = vmax.f32 %v2018_v50, 0.0  ;;  %v2272_v36 = vmax.f32 %v2153_v30, 0.0 }
 0x3f0   : > { %v2021_v27 = vpop.f32.mrf.mxu1  ;;  %v2343_v33 = vpack.c.bf16 %v2263_v40, %v2255_v32  ;;  %v2155_v18 = vadd.f32 %v6209_v60, %v6142_v35  ;;  %v2163_v60 = vadd.f32 %v2162_v10, %v6123_v55 }
 0x3f1   : > { %v2022_v16 = vadd.f32 %v2021_v27, %v6147_v12  ;;  %3130 = vmatprep.mubr.bf16.mxu1 %v2326_v28  ;;  %v2238_v46 = vmax.f32 %v2020_v43, 0.0  ;;  %v2352_v28 = vpack.c.bf16 %v2280_v19, %v2272_v36 }
 0x3f2   : > { %v2023_v23 = vpop.f32.mrf.mxu1  ;;  %3131 = vmatmul.mubr.bf16.gmra.mxu1 %v2325_v44  ;;  %3228 = vmatmul.mubr.bf16.gmra.mxu0 %v2327_v24  ;;  %v2167_v24 = vadd.f32 %v2166_v13, %v6123_v55  ;;  %v2151_v44 = vadd.f32 %v6193_v3, %v6142_v35  ;;  %v2279_v43 = vmax.f32 %v2155_v18, 0.0  ;;  %v2288_v3 = vmax.f32 %v2163_v60, 0.0 }
 0x3f3   : > { %v2024_v45 = vadd.f32 %v2023_v23, %v6139_v14  ;;  %3235 = vmatprep.mubr.bf16.mxu0 %v2336_v34  ;;  %v2245_v26 = vmax.f32 %v2022_v16, 0.0 }
 0x3f4   : > { %v2027_v61 = vpop.f32.mrf.mxu1  ;;  %v2296_v50 = vmax.f32 %v2167_v24, 0.0 }
 0x3f5   : > { %v2246_v41 = vmax.f32 %v2024_v45, 0.0  ;;  %v2333_v2 = vpack.c.bf16 %v2245_v26, %v2237_v53  ;;  %v2028_v7 = vadd.f32 %v2027_v61, %v6147_v12  ;;  %v2271_v45 = vmax.f32 %v2151_v44, 0.0 }
 0x3f6   : > { %v2029_v47 = vpop.f32.mrf.mxu1  ;;  %v2360_v55 = vpack.c.bf16 %v2296_v50, %v2288_v3 }
 0x3f7   : > { %v2334_v62 = vpack.c.bf16 %v2246_v41, %v2238_v46  ;;  %v2030_v31 = vadd.f32 %v2029_v47, %v6139_v14  ;;  %v2253_v20 = vmax.f32 %v2028_v7, 0.0  ;;  %v2351_v11 = vpack.c.bf16 %v2279_v43, %v2271_v45 }
 0x3f8   : > { %v2031_v37 = vpop.f32.mrf.mxu1  ;;  %v2165_v46 = vadd.f32 %v2164_v15, %v6142_v35  ;;  %v2161_v47 = vadd.f32 %v6218_v59, %v6142_v35 }
 0x3f9   : > { %v2032_v25 = vadd.f32 %v2031_v37, %v6147_v12  ;;  %3138 = vmatprep.mubr.bf16.mxu1 %v2334_v62  ;;  %v2254_v39 = vmax.f32 %v2030_v31, 0.0 }
 0x3fa   : > { %v2033_v21 = vpop.f32.mrf.mxu1  ;;  %3139 = vmatmul.mubr.bf16.gmra.mxu1 %v2333_v2  ;;  %3236 = vmatmul.mubr.bf16.gmra.mxu0 %v2335_v5  ;;  %v2295_v42 = vmax.f32 %v2165_v46, 0.0  ;;  %v2287_v63 = vmax.f32 %v2161_v47, 0.0 }
 0x3fb   : > { %v2034_v22 = vadd.f32 %v2033_v21, %v6139_v14  ;;  %3243 = vmatprep.mubr.bf16.mxu0 %v2344_v58  ;;  %v2261_v52 = vmax.f32 %v2032_v25, 0.0 }
 0x3fc   : > { %v2037_v54 = vpop.f32.mrf.mxu1  ;;  %v2359_v9 = vpack.c.bf16 %v2295_v42, %v2287_v63 }
 0x3fd   : > { %v2262_v8 = vmax.f32 %v2034_v22, 0.0  ;;  %v2341_v49 = vpack.c.bf16 %v2261_v52, %v2253_v20  ;;  %v2038_v27 = vadd.f32 %v2037_v54, %v6147_v12 }
 0x3fe   : > { %v2039_v48 = vpop.f32.mrf.mxu1 }
 0x3ff   : > { %v2342_v6 = vpack.c.bf16 %v2262_v8, %v2254_v39  ;;  %v2040_v4 = vadd.f32 %v2039_v48, %v6139_v14  ;;  %v2269_v17 = vmax.f32 %v2038_v27, 0.0 }
 0x400   : > { %v2041_v29 = vpop.f32.mrf.mxu1 }
 0x401   : > { %v2042_v0 = vadd.f32 %v2041_v29, %v6147_v12  ;;  %3146 = vmatprep.mubr.bf16.mxu1 %v2342_v6  ;;  %v2270_v23 = vmax.f32 %v2040_v4, 0.0 }
 0x402   : > { %v2043_v34 = vpop.f32.mrf.mxu1  ;;  %3147 = vmatmul.mubr.bf16.gmra.mxu1 %v2341_v49  ;;  %3244 = vmatmul.mubr.bf16.gmra.mxu0 %v2343_v33 }
 0x403   : > { %v2044_v57 = vadd.f32 %v2043_v34, %v6139_v14  ;;  %3251 = vmatprep.mubr.bf16.mxu0 %v2352_v28  ;;  %v2277_v16 = vmax.f32 %v2042_v0, 0.0 }
 0x404   : > { %v2047_v38 = vpop.f32.mrf.mxu1 }
 0x405   : > { %v2278_v56 = vmax.f32 %v2044_v57, 0.0  ;;  %v2349_v41 = vpack.c.bf16 %v2277_v16, %v2269_v17  ;;  %v2048_v1 = vadd.f32 %v2047_v38, %v6147_v12 }
 0x406   : > { %v2049_v26 = vpop.f32.mrf.mxu1 }
 0x407   : > { %v2350_v61 = vpack.c.bf16 %v2278_v56, %v2270_v23  ;;  %v2050_v10 = vadd.f32 %v2049_v26, %v6139_v14  ;;  %v2285_v31 = vmax.f32 %v2048_v1, 0.0 }
 0x408   : > { %v2051_v51 = vpop.f32.mrf.mxu1 }
 0x409   : > { %v2052_v53 = vadd.f32 %v2051_v51, %v6147_v12  ;;  %3154 = vmatprep.mubr.bf16.mxu1 %v2350_v61  ;;  %v2286_v37 = vmax.f32 %v2050_v10, 0.0 }
 0x40a   : > { %v2053_v62 = vpop.f32.mrf.mxu1  ;;  %3155 = vmatmul.mubr.bf16.gmra.mxu1 %v2349_v41  ;;  %3252 = vmatmul.mubr.bf16.gmra.mxu0 %v2351_v11 }
 0x40b   : > { %v2054_v5 = vadd.f32 %v2053_v62, %v6139_v14  ;;  %3259 = vmatprep.mubr.bf16.mxu0 %v2360_v55  ;;  %v2293_v2 = vmax.f32 %v2052_v53, 0.0  ;;  %v6254_v14 = vpop.f32.mrf.mxu0 }
 0x40c   : > { %v3894_v35 = vpop.f32.mrf.mxu1 }
 0x40d   : > { %v2294_v58 = vmax.f32 %v2054_v5, 0.0  ;;  %v2357_v15 = vpack.c.bf16 %v2293_v2, %v2285_v31  ;;  %v6258_v22 = vpop.f32.mrf.mxu0 }
 0x40e   : > { %v3895_v12 = vpop.f32.mrf.mxu1 }
 0x40f   : > { %v2358_v25 = vpack.c.bf16 %v2294_v58, %v2286_v37  ;;  %v6262_v52 = vpop.f32.mrf.mxu0 }
 0x410   : > { %v3897_v59 = vpop.f32.mrf.mxu1 }
 0x411   : > { %3162 = vmatprep.mubr.bf16.mxu1 %v2358_v25  ;;  %v6266_v19 = vpop.f32.mrf.mxu0  ;;  %v3896_v25 = vadd.f32 %v3895_v12, %v3894_v35  ;;  %v3960_v35 = vadd.f32 %v6258_v22, %v6254_v14 }
 0x412   : > { %3163 = vmatmul.mubr.bf16.gmra.mxu1 %v2357_v15  ;;  %3260 = vmatmul.mubr.bf16.gmra.mxu0 %v2359_v9  ;;  %v3898_v7 = vpop.f32.mrf.mxu1  ;;  %v6369_v9 = vld [vmem:[%s6735_s6] ss:$0 sm:$0xff] }
 0x413   : > { %v6270_v8 = vpop.f32.mrf.mxu0 }
 0x414   : > { %v6252_v21 = vpop.f32.mrf.mxu1 }
 0x415   : > { %v6274_v13 = vpop.f32.mrf.mxu0 }
 0x416   : > { %v6256_v30 = vpop.f32.mrf.mxu1 }
 0x417   : > { %v6278_v48 = vpop.f32.mrf.mxu0 }
 0x418   : > { %v6260_v40 = vpop.f32.mrf.mxu1 }
 0x419   : > { %v6282_v6 = vpop.f32.mrf.mxu0 }
 0x41a   : > { %v6264_v54 = vpop.f32.mrf.mxu1 }
 0x41b   : > { %v6286_v18 = vpop.f32.mrf.mxu0 }
 0x41c   : > { %v6268_v39 = vpop.f32.mrf.mxu1 }
 0x41d   : > { %v6290_v29 = vpop.f32.mrf.mxu0 }
 0x41e   : > { %v6272_v32 = vpop.f32.mrf.mxu1 }
 0x41f   : > { %v6294_v24 = vpop.f32.mrf.mxu0 }
 0x420   : > { %v6276_v20 = vpop.f32.mrf.mxu1 }
 0x421   : > { %v6298_v0 = vpop.f32.mrf.mxu0 }
 0x422   : > { %v6280_v36 = vpop.f32.mrf.mxu1 }
 0x423   : > { %v6302_v27 = vpop.f32.mrf.mxu0 }
 0x424   : > { %v6284_v33 = vpop.f32.mrf.mxu1 }
 0x425   : > { %v6306_v60 = vpop.f32.mrf.mxu0 }
 0x426   : > { %v6288_v49 = vpop.f32.mrf.mxu1 }
 0x427   : > { %v6310_v43 = vpop.f32.mrf.mxu0 }
 0x428   : > { %v6292_v28 = vpop.f32.mrf.mxu1 }
 0x429   : > { %v6314_v38 = vpop.f32.mrf.mxu0 }
 0x42a   : > { %v6296_v4 = vpop.f32.mrf.mxu1 }
 0x42b   : > { %v6318_v23 = vpop.f32.mrf.mxu0 }
 0x42c   : > { %v6300_v44 = vpop.f32.mrf.mxu1 }
 0x42d   : > { %v6322_v45 = vpop.f32.mrf.mxu0 }
 0x42e   : > { %v6304_v34 = vpop.f32.mrf.mxu1 }
 0x42f   : > { %v6326_v26 = vpop.f32.mrf.mxu0 }
 0x430   : > { %v6308_v57 = vpop.f32.mrf.mxu1 }
 0x431   : > { %v6332_v11 = vpop.f32.mrf.mxu0 }
 0x432   : > { %v6312_v16 = vpop.f32.mrf.mxu1 }
 0x434   : > { %v6316_v50 = vpop.f32.mrf.mxu1 }
 0x436   : > { %v6320_v56 = vpop.f32.mrf.mxu1 }
 0x438   : > { %v6324_v17 = vpop.f32.mrf.mxu1 }
 0x43a   : > { %v6328_v3 = vpop.f32.mrf.mxu1 }
 0x461   : > { %v6330_v61 = vpop.f32.mrf.mxu1 }
 0x463   : > { %v6334_v46 = vpop.f32.mrf.mxu1 }
 0x464   : > { %6783 = vst [vmem:[#allocation8_spill] sm:$0xff] %v6334_v46  ;;  %v3905_v46 = vadd.f32 %v6264_v54, %v6260_v40  ;;  %v3908_v40 = vadd.f32 %v6272_v32, %v6268_v39 }
 0x465   : > { %v6340_v55 = vpop.f32.mrf.mxu1 }
 0x466   : > { %6784 = vst [vmem:[#allocation12_spill] sm:$0xff] %v6340_v55  ;;  %v2931_v39 = vadd.f32 %v3908_v40, %v6369_v9 }
 0x467   : > { %v6346_v47 = vpop.f32.mrf.mxu1 }
 0x468   : > { %6785 = vst [vmem:[#allocation11_spill] sm:$0xff] %v6346_v47 }
 0x47a   : > { %v6350_v62 = vpop.f32.mrf.mxu1 }
 0x47b   : > { %6787 = vst [vmem:[#allocation9_spill] sm:$0xff] %v6350_v62  ;;  %v3899_v62 = vadd.f32 %v3898_v7, %v3897_v59  ;;  %v3902_v59 = vadd.f32 %v6256_v30, %v6252_v21 }
 0x47c   : > { %v6356_v2 = vpop.f32.mrf.mxu1 }
 0x47d   : > { %6790 = vst [vmem:[#allocation15_spill] sm:$0xff] %v6356_v2  ;;  %v2918_v12 = vadd.f32 %v3899_v62, %v6369_v9  ;;  %v2923_v62 = vadd.f32 %v3902_v59, %v6369_v9 }
 0x47e   : > { %v6362_v63 = vpop.f32.mrf.mxu1 }
 0x47f   : > { %6793 = vst [vmem:[#allocation18_spill] sm:$0xff] %v6362_v63 }
 0x482   : > { %v6336_v41 = vpop.f32.mrf.mxu0 }
 0x484   : > { %v6338_v51 = vpop.f32.mrf.mxu0 }
 0x486   : > { %v6342_v10 = vpop.f32.mrf.mxu0 }
 0x488   : > { %v6344_v53 = vpop.f32.mrf.mxu0 }
 0x48a   : > { %v6348_v1 = vpop.f32.mrf.mxu0 }
 0x48b   : > { %6786 = vst [vmem:[#allocation13_spill] sm:$0xff] %v6348_v1 }
 0x48c   : > { %v6352_v5 = vpop.f32.mrf.mxu0 }
 0x48d   : > { %6788 = vst [vmem:[#allocation10_spill] sm:$0xff] %v6352_v5 }
 0x48e   : > { %v6354_v42 = vpop.f32.mrf.mxu0 }
 0x48f   : > { %6789 = vst [vmem:[#allocation14_spill] sm:$0xff] %v6354_v42  ;;  %v6373_v42 = vpop.f32.mrf.mxu1 }
 0x490   : > { %v6358_v37 = vpop.f32.mrf.mxu0  ;;  %6796 = vst [vmem:[#allocation21_spill] sm:$0xff] %v6373_v42 }
 0x491   : > { %6791 = vst [vmem:[#allocation16_spill] sm:$0xff] %v6358_v37  ;;  %v2915_v37 = vadd.f32 %v3896_v25, %v6369_v9  ;;  %v3963_v25 = vadd.f32 %v6266_v19, %v6262_v52  ;;  %v3966_v52 = vadd.f32 %v6274_v13, %v6270_v8 }
 0x492   : > { %v6360_v58 = vpop.f32.mrf.mxu0 }
 0x493   : > { %6792 = vst [vmem:[#allocation17_spill] sm:$0xff] %v6360_v58  ;;  %v3012_v7 = vadd.f32 %v3960_v35, %v2915_v37  ;;  %v3015_v1 = vadd.f32 %v3963_v25, %v2918_v12  ;;  %v3020_v8 = vadd.f32 %v3966_v52, %v2923_v62  ;;  %v3911_v35 = vadd.f32 %v6280_v36, %v6276_v20 }
 0x494   : > { %v6364_v31 = vpop.f32.mrf.mxu0  ;;  %v3914_v36 = vadd.f32 %v6288_v49, %v6284_v33 }
 0x495   : > { %6794 = vst [vmem:[#allocation19_spill] sm:$0xff] %v6364_v31  ;;  %v2934_v20 = vadd.f32 %v3911_v35, %v6369_v9 }
 0x496   : > { %v6371_v15 = vpop.f32.mrf.mxu0  ;;  %v2939_v49 = vadd.f32 %v3914_v36, %v6369_v9 }
 0x497   : > { %6795 = vst [vmem:[#allocation20_spill] sm:$0xff] %v6371_v15 }
 0x498   : > { %v6375_v2 = vpop.f32.mrf.mxu0 }
 0x499   : > { %6797 = vst [vmem:[#allocation22_spill] sm:$0xff] %v6375_v2 }
 0x49a   : > { %v4022_v58 = vpop.f32.mrf.mxu1  ;;  %v4086_v47 = vpop.f32.mrf.mxu0 }
 0x49c   : > { %v4023_v63 = vpop.f32.mrf.mxu1  ;;  %v4087_v31 = vpop.f32.mrf.mxu0 }
 0x49d   : > { %v4024_v15 = vadd.f32 %v4023_v63, %v4022_v58  ;;  %v4088_v5 = vadd.f32 %v4087_v31, %v4086_v47 }
 0x49e   : > { %v4025_v2 = vpop.f32.mrf.mxu1  ;;  %v4089_v42 = vpop.f32.mrf.mxu0 }
 0x49f   : > { %v3109_v55 = vadd.f32 %v4024_v15, %v3012_v7 }
 0x4a0   : > { %v4026_v14 = vpop.f32.mrf.mxu1  ;;  %v4090_v22 = vpop.f32.mrf.mxu0 }
 0x4a1   : > { %v6392_v21 = vadd.f32 %v4088_v5, %v3109_v55  ;;  %v4027_v30 = vadd.f32 %v4026_v14, %v4025_v2  ;;  %v4091_v47 = vadd.f32 %v4090_v22, %v4089_v42  ;;  %v2926_v5 = vadd.f32 %v3905_v46, %v6369_v9 }
 0x4a2   : > { %v4028_v37 = vpop.f32.mrf.mxu1  ;;  %v4092_v58 = vpop.f32.mrf.mxu0 }
 0x4a3   : > { %3268 = vst [vmem:[%s6398_s24] sm:$0xff] %v6392_v21  ;;  %v3112_v19 = vadd.f32 %v4027_v30, %v3015_v1  ;;  %3284 = vmax.xlane.f32.xlu1 %v6392_v21  ;;  %v3969_v1 = vadd.f32 %v6282_v6, %v6278_v48  ;;  %v3972_v48 = vadd.f32 %v6290_v29, %v6286_v18 }
 0x4a4   : > { %v4029_v54 = vpop.f32.mrf.mxu1  ;;  %v4093_v55 = vpop.f32.mrf.mxu0 }
 0x4a5   : > { %v6406_v2 = vadd.f32 %v4091_v47, %v3112_v19  ;;  %v4030_v13 = vadd.f32 %v4029_v54, %v4028_v37  ;;  %v4094_v15 = vadd.f32 %v4093_v55, %v4092_v58  ;;  %v3023_v59 = vadd.f32 %v3969_v1, %v2926_v5 }
 0x4a6   : > { %v4031_v63 = vpop.f32.mrf.mxu1  ;;  %v4095_v31 = vpop.f32.mrf.mxu0  ;;  %v3028_v62 = vadd.f32 %v3972_v48, %v2931_v39  ;;  %v3975_v19 = vadd.f32 %v6298_v0, %v6294_v24  ;;  %v3917_v54 = vadd.f32 %v6296_v4, %v6292_v28  ;;  %v3978_v24 = vadd.f32 %v6306_v60, %v6302_v27 }
 0x4a7   : > { %3269 = vst [vmem:[%s6398_s24 + $0x8] sm:$0xff] %v6406_v2  ;;  %v3117_v42 = vadd.f32 %v4030_v13, %v3020_v8  ;;  %3286 = vmax.xlane.f32.xlu0 %v6406_v2  ;;  %v3981_v27 = vadd.f32 %v6314_v38, %v6310_v43 }
 0x4a8   : > { %v4032_v32 = vpop.f32.mrf.mxu1  ;;  %v4096_v46 = vpop.f32.mrf.mxu0  ;;  %v3031_v8 = vadd.f32 %v3975_v19, %v2934_v20  ;;  %v2942_v28 = vadd.f32 %v3917_v54, %v6369_v9 }
 0x4a9   : > { %v6416_v12 = vadd.f32 %v4094_v15, %v3117_v42  ;;  %v4033_v7 = vadd.f32 %v4032_v32, %v4031_v63  ;;  %v4097_v22 = vadd.f32 %v4096_v46, %v4095_v31  ;;  %v3920_v15 = vadd.f32 %v6304_v34, %v6300_v44 }
 0x4aa   : > { %v4034_v6 = vpop.f32.mrf.mxu1  ;;  %v4098_v25 = vpop.f32.mrf.mxu0  ;;  %v3036_v32 = vadd.f32 %v3978_v24, %v2939_v49  ;;  %v3039_v48 = vadd.f32 %v3981_v27, %v2942_v28  ;;  %v3923_v34 = vadd.f32 %v6312_v16, %v6308_v57 }
 0x4ab   : > { %3270 = vst [vmem:[%s6398_s24 + $0x10] sm:$0xff] %v6416_v12  ;;  %v3120_v14 = vadd.f32 %v4033_v7, %v3023_v59  ;;  %3288 = vmax.xlane.f32.xlu1 %v6416_v12  ;;  %v2947_v44 = vadd.f32 %v3920_v15, %v6369_v9 }
 0x4ac   : > { %v4035_v30 = vpop.f32.mrf.mxu1  ;;  %v4099_v37 = vpop.f32.mrf.mxu0 }
 0x4ad   : > { %v6426_v58 = vadd.f32 %v4097_v22, %v3120_v14  ;;  %v4036_v18 = vadd.f32 %v4035_v30, %v4034_v6  ;;  %v4100_v40 = vadd.f32 %v4099_v37, %v4098_v25 }
 0x4ae   : > { %v4037_v29 = vpop.f32.mrf.mxu1  ;;  %v4101_v52 = vpop.f32.mrf.mxu0 }
 0x4af   : > { %3271 = vst [vmem:[%s6398_s24 + $0x18] sm:$0xff] %v6426_v58  ;;  %v3125_v47 = vadd.f32 %v4036_v18, %v3028_v62  ;;  %3290 = vmax.xlane.f32.xlu0 %v6426_v58  ;;  %v3984_v62 = vadd.f32 %v6322_v45, %v6318_v23  ;;  %v2950_v18 = vadd.f32 %v3923_v34, %v6369_v9  ;;  %v6802_v34 = vld [vmem:[#allocation11_spill] sm:$0xff] }
 0x4b0   : > { %v4038_v55 = vpop.f32.mrf.mxu1  ;;  %v4102_v33 = vpop.f32.mrf.mxu0  ;;  %v3926_v23 = vadd.f32 %v6320_v56, %v6316_v50  ;;  %v3929_v50 = vadd.f32 %v6328_v3, %v6324_v17  ;;  %v6798_v17 = vld [vmem:[#allocation8_spill] sm:$0xff] }
 0x4b1   : > { %v6436_v5 = vadd.f32 %v4100_v40, %v3125_v47  ;;  %v4039_v13 = vadd.f32 %v4038_v55, %v4037_v29  ;;  %v4103_v1 = vadd.f32 %v4102_v33, %v4101_v52  ;;  %v3044_v16 = vadd.f32 %v3984_v62, %v2947_v44 }
 0x4b2   : > { %v4040_v63 = vpop.f32.mrf.mxu1  ;;  %v4104_v31 = vpop.f32.mrf.mxu0  ;;  %v3987_v47 = vadd.f32 %v6332_v11, %v6326_v26  ;;  %v3990_v33 = vadd.f32 %v6338_v51, %v6336_v41  ;;  %v2958_v15 = vadd.f32 %v3929_v50, %v6369_v9  ;;  %v3932_v3 = vadd.f32 %v6798_v17, %v6330_v61  ;;  %v6801_v61 = vld [vmem:[#allocation12_spill] sm:$0xff] }
 0x4b3   : > { %3272 = vst [vmem:[%s6398_s24 + $0x20] sm:$0xff] %v6436_v5  ;;  %v3128_v0 = vadd.f32 %v4039_v13, %v3031_v8  ;;  %3292 = vmax.xlane.f32.xlu1 %v6436_v5 }
 0x4b4   : > { %v4041_v4 = vpop.f32.mrf.mxu1  ;;  %v4105_v42 = vpop.f32.mrf.mxu0  ;;  %v3047_v8 = vadd.f32 %v3987_v47, %v2950_v18  ;;  %v2963_v44 = vadd.f32 %v3932_v3, %v6369_v9 }
 0x4b5   : > { %v6446_v39 = vadd.f32 %v4103_v1, %v3128_v0  ;;  %v4042_v46 = vadd.f32 %v4041_v4, %v4040_v63  ;;  %v4106_v7 = vadd.f32 %v4105_v42, %v4104_v31  ;;  %v2955_v63 = vadd.f32 %v3926_v23, %v6369_v9  ;;  %v6805_v23 = vld [vmem:[#allocation9_spill] sm:$0xff] }
 0x4b6   : > { %v4043_v60 = vpop.f32.mrf.mxu1  ;;  %v4107_v35 = vpop.f32.mrf.mxu0  ;;  %v3993_v0 = vadd.f32 %v6344_v53, %v6342_v10  ;;  %v6799_v53 = vld [vmem:[#allocation13_spill] sm:$0xff] }
 0x4b7   : > { %3273 = vst [vmem:[%s6398_s24 + $0x28] sm:$0xff] %v6446_v39  ;;  %v3133_v59 = vadd.f32 %v4042_v46, %v3036_v32  ;;  %3294 = vmax.xlane.f32.xlu0 %v6446_v39  ;;  %v3052_v51 = vadd.f32 %v3990_v33, %v2955_v63 }
 0x4b8   : > { %v4044_v6 = vpop.f32.mrf.mxu1  ;;  %v4108_v25 = vpop.f32.mrf.mxu0  ;;  %v3055_v10 = vadd.f32 %v3993_v0, %v2958_v15  ;;  %v6810_v0 = vld [vmem:[#allocation21_spill] sm:$0xff] }
 0x4b9   : > { %v6456_v14 = vadd.f32 %v4106_v7, %v3133_v59  ;;  %v4045_v43 = vadd.f32 %v4044_v6, %v4043_v60  ;;  %v4109_v37 = vadd.f32 %v4108_v25, %v4107_v35  ;;  %v6800_v35 = vld [vmem:[#allocation10_spill] sm:$0xff] }
 0x4ba   : > { %v4046_v38 = vpop.f32.mrf.mxu1  ;;  %v4110_v22 = vpop.f32.mrf.mxu0  ;;  %v3996_v59 = vadd.f32 %v6800_v35, %v6799_v53 }
 0x4bb   : > { %3274 = vst [vmem:[%s6398_s24 + $0x30] sm:$0xff] %v6456_v14  ;;  %v3136_v30 = vadd.f32 %v4045_v43, %v3039_v48  ;;  %3296 = vmax.xlane.f32.xlu1 %v6456_v14  ;;  %v3935_v43 = vadd.f32 %v6802_v34, %v6801_v61 }
 0x4bc   : > { %v4047_v20 = vpop.f32.mrf.mxu1  ;;  %v4111_v36 = vpop.f32.mrf.mxu0 }
 0x4bd   : > { %v6464_v57 = vadd.f32 %v4109_v37, %v3136_v30  ;;  %v4048_v29 = vadd.f32 %v4047_v20, %v4046_v38  ;;  %v4112_v40 = vadd.f32 %v4111_v36, %v4110_v22  ;;  %v3060_v37 = vadd.f32 %v3996_v59, %v2963_v44  ;;  %v6803_v20 = vld [vmem:[#allocation14_spill] sm:$0xff]  ;;  %v6804_v36 = vld [vmem:[#allocation16_spill] sm:$0xff] }
 0x4be   : > { %v4049_v52 = vpop.f32.mrf.mxu1  ;;  %v4113_v19 = vpop.f32.mrf.mxu0  ;;  %v3999_v18 = vadd.f32 %v6804_v36, %v6803_v20  ;;  %v2966_v47 = vadd.f32 %v3935_v43, %v6369_v9 }
 0x4bf   : > { %3275 = vst [vmem:[%s6398_s24 + $0x38] sm:$0xff] %v6464_v57  ;;  %v3141_v45 = vadd.f32 %v4048_v29, %v3044_v16  ;;  %3298 = vmax.xlane.f32.xlu0 %v6464_v57 }
 0x4c0   : > { %v4050_v54 = vpop.f32.mrf.mxu1  ;;  %v4114_v55 = vpop.f32.mrf.mxu0 }
 0x4c1   : > { %v6475_v49 = vadd.f32 %v4112_v40, %v3141_v45  ;;  %v4051_v13 = vadd.f32 %v4050_v54, %v4049_v52  ;;  %v4115_v31 = vadd.f32 %v4114_v55, %v4113_v19  ;;  %v6806_v45 = vld [vmem:[#allocation15_spill] sm:$0xff] }
 0x4c2   : > { %v4052_v26 = vpop.f32.mrf.mxu1  ;;  %v4116_v11 = vpop.f32.mrf.mxu0  ;;  %v3938_v40 = vadd.f32 %v6806_v45, %v6805_v23 }
 0x4c3   : > { %3276 = vst [vmem:[%s6398_s24 + $0x40] sm:$0xff] %v6475_v49  ;;  %v3144_v56 = vadd.f32 %v4051_v13, %v3047_v8  ;;  %3300 = vmax.xlane.f32.xlu1 %v6475_v49  ;;  %v3063_v13 = vadd.f32 %v3999_v18, %v2966_v47 }
 0x4c4   : > { %v4053_v24 = vpop.f32.mrf.mxu1  ;;  %v4117_v41 = vpop.f32.mrf.mxu0 }
 0x4c5   : > { %v6485_v1 = vadd.f32 %v4115_v31, %v3144_v56  ;;  %v4054_v28 = vadd.f32 %v4053_v24, %v4052_v26  ;;  %v4118_v46 = vadd.f32 %v4117_v41, %v4116_v11  ;;  %v6807_v26 = vld [vmem:[#allocation17_spill] sm:$0xff]  ;;  %v6808_v11 = vld [vmem:[#allocation19_spill] sm:$0xff]  ;;  %v2971_v41 = vadd.f32 %v3938_v40, %v6369_v9 }
 0x4c6   : > { %v4055_v4 = vpop.f32.mrf.mxu1  ;;  %v4119_v42 = vpop.f32.mrf.mxu0  ;;  %v4002_v63 = vadd.f32 %v6808_v11, %v6807_v26 }
 0x4c7   : > { %3277 = vst [vmem:[%s6398_s24 + $0x48] sm:$0xff] %v6485_v1  ;;  %v3149_v32 = vadd.f32 %v4054_v28, %v3052_v51  ;;  %3302 = vmax.xlane.f32.xlu0 %v6485_v1  ;;  %v6809_v51 = vld [vmem:[#allocation18_spill] sm:$0xff] }
 0x4c8   : > { %v4056_v27 = vpop.f32.mrf.mxu1  ;;  %v4120_v60 = vpop.f32.mrf.mxu0  ;;  %v3941_v28 = vadd.f32 %v6810_v0, %v6809_v51  ;;  %v3068_v3 = vadd.f32 %v4002_v63, %v2971_v41 }
 0x4c9   : > { %v6495_v7 = vadd.f32 %v4118_v46, %v3149_v32  ;;  %v4057_v48 = vadd.f32 %v4056_v27, %v4055_v4  ;;  %v4121_v22 = vadd.f32 %v4120_v60, %v4119_v42  ;;  %v6811_v32 = vld [vmem:[#allocation20_spill] sm:$0xff]  ;;  %v6812_v46 = vld [vmem:[#allocation22_spill] sm:$0xff] }
 0x4ca   : > { %v4058_v6 = vpop.f32.mrf.mxu1  ;;  %v4122_v25 = vpop.f32.mrf.mxu0  ;;  %v4005_v27 = vadd.f32 %v6812_v46, %v6811_v32  ;;  %v2974_v59 = vadd.f32 %v3941_v28, %v6369_v9 }
 0x4cb   : > { %3278 = vst [vmem:[%s6398_s24 + $0x50] sm:$0xff] %v6495_v7  ;;  %v3152_v38 = vadd.f32 %v4057_v48, %v3055_v10  ;;  %3304 = vmax.xlane.f32.xlu1 %v6495_v7 }
 0x4cc   : > { %v4059_v62 = vpop.f32.mrf.mxu1  ;;  %v4123_v30 = vpop.f32.mrf.mxu0  ;;  %v3071_v61 = vadd.f32 %v4005_v27, %v2974_v59 }
 0x4cd   : > { %v6505_v16 = vadd.f32 %v4121_v22, %v3152_v38  ;;  %v4060_v29 = vadd.f32 %v4059_v62, %v4058_v6  ;;  %v4124_v55 = vadd.f32 %v4123_v30, %v4122_v25 }
 0x4ce   : > { %v4061_v52 = vpop.f32.mrf.mxu1  ;;  %v4125_v19 = vpop.f32.mrf.mxu0 }
 0x4cf   : > { %3279 = vst [vmem:[%s6398_s24 + $0x58] sm:$0xff] %v6505_v16  ;;  %v3157_v54 = vadd.f32 %v4060_v29, %v3060_v37  ;;  %3306 = vmax.xlane.f32.xlu0 %v6505_v16 }
 0x4d0   : > { %v4062_v33 = vpop.f32.mrf.mxu1  ;;  %v4126_v8 = vpop.f32.mrf.mxu0 }
 0x4d1   : > { %v6515_v50 = vadd.f32 %v4124_v55, %v3157_v54  ;;  %v4063_v56 = vadd.f32 %v4062_v33, %v4061_v52  ;;  %v4127_v42 = vadd.f32 %v4126_v8, %v4125_v19 }
 0x4d2   : > { %v4064_v31 = vpop.f32.mrf.mxu1  ;;  %v4128_v24 = vpop.f32.mrf.mxu0 }
 0x4d3   : > { %3280 = vst [vmem:[%s6398_s24 + $0x60] sm:$0xff] %v6515_v50  ;;  %v3160_v4 = vadd.f32 %v4063_v56, %v3063_v13  ;;  %3308 = vmax.xlane.f32.xlu1 %v6515_v50 }
 0x4d4   : > { %v4065_v15 = vpop.f32.mrf.mxu1  ;;  %v4129_v17 = vpop.f32.mrf.mxu0 }
 0x4d5   : > { %v6525_v60 = vadd.f32 %v4127_v42, %v3160_v4  ;;  %v4066_v10 = vadd.f32 %v4065_v15, %v4064_v31  ;;  %v4130_v6 = vadd.f32 %v4129_v17, %v4128_v24 }
 0x4d6   : > { %v4067_v53 = vpop.f32.mrf.mxu1  ;;  %v4131_v35 = vpop.f32.mrf.mxu0 }
 0x4d7   : > { %3281 = vst [vmem:[%s6398_s24 + $0x68] sm:$0xff] %v6525_v60  ;;  %v3165_v48 = vadd.f32 %v4066_v10, %v3068_v3  ;;  %3310 = vmax.xlane.f32.xlu0 %v6525_v60 }
 0x4d8   : > { %v4068_v25 = vpop.f32.mrf.mxu1  ;;  %v4132_v44 = vpop.f32.mrf.mxu0 }
 0x4d9   : > { %v6531_v34 = vadd.f32 %v4130_v6, %v3165_v48  ;;  %v4069_v43 = vadd.f32 %v4068_v25, %v4067_v53  ;;  %v4133_v22 = vadd.f32 %v4132_v44, %v4131_v35 }
 0x4db   : > { %3282 = vst [vmem:[%s6398_s24 + $0x70] sm:$0xff] %v6531_v34  ;;  %v3168_v38 = vadd.f32 %v4069_v43, %v3071_v61  ;;  %3312 = vmax.xlane.f32.xlu1 %v6531_v34 }
 0x4dd   : > { %v6536_v62 = vadd.f32 %v4133_v22, %v3168_v38 }
 0x4df   : > { %3283 = vst [vmem:[%s6398_s24 + $0x78] sm:$0xff] %v6536_v62  ;;  %3314 = vmax.xlane.f32.xlu0 %v6536_v62 }
 0x52c   : > { %v3285_v9 = vpop.xlane.xlu1 %3284 }
 0x52d   : > { %v3316_v30 = vsub.f32 %v6392_v21, %v3285_v9 }
 0x52f   : > { %v3332_v37 = vmul.f32 1.442695, %v3316_v30 }
 0x530   : > { %v3287_v20 = vpop.xlane.xlu0 %3286 }
 0x531   : > { %4426 = vpow2.f32 %v3332_v37  ;;  %v3317_v36 = vsub.f32 %v6406_v2, %v3287_v20 }
 0x533   : > { %v3334_v18 = vmul.f32 1.442695, %v3317_v36 }
 0x534   : > { %v3289_v29 = vpop.xlane.xlu1 %3288 }
 0x535   : > { %4428 = vpow2.f32 %v3334_v18  ;;  %v3318_v52 = vsub.f32 %v6416_v12, %v3289_v29 }
 0x537   : > { %v3336_v19 = vmul.f32 1.442695, %v3318_v52 }
 0x538   : > { %v3291_v47 = vpop.xlane.xlu0 %3290 }
 0x539   : > { %4430 = vpow2.f32 %v3336_v19  ;;  %v3319_v23 = vsub.f32 %v6426_v58, %v3291_v47 }
 0x53b   : > { %v3338_v45 = vmul.f32 1.442695, %v3319_v23 }
 0x53c   : > { %v3293_v40 = vpop.xlane.xlu1 %3292 }
 0x53d   : > { %4432 = vpow2.f32 %v3338_v45  ;;  %v3320_v21 = vsub.f32 %v6436_v5, %v3293_v40 }
 0x53e   : > { %v6546_v54 = vpop.eup %4426 }
 0x53f   : > { %v3340_v55 = vmul.f32 1.442695, %v3320_v21  ;;  %3364 = vadd.xlane.f32.xlu1 %v6546_v54 }
 0x540   : > { %v3295_v2 = vpop.xlane.xlu0 %3294 }
 0x541   : > { %4434 = vpow2.f32 %v3340_v55  ;;  %v3321_v33 = vsub.f32 %v6446_v39, %v3295_v2 }
 0x542   : > { %v6550_v12 = vpop.eup %4428 }
 0x543   : > { %v3342_v8 = vmul.f32 1.442695, %v3321_v33  ;;  %3366 = vadd.xlane.f32.xlu0 %v6550_v12 }
 0x544   : > { %v3297_v58 = vpop.xlane.xlu1 %3296 }
 0x545   : > { %4436 = vpow2.f32 %v3342_v8  ;;  %v3322_v13 = vsub.f32 %v6456_v14, %v3297_v58 }
 0x546   : > { %v6554_v26 = vpop.eup %4430 }
 0x547   : > { %v3344_v5 = vmul.f32 1.442695, %v3322_v13  ;;  %3368 = vadd.xlane.f32.xlu1 %v6554_v26 }
 0x548   : > { %v3299_v11 = vpop.xlane.xlu0 %3298 }
 0x549   : > { %4438 = vpow2.f32 %v3344_v5  ;;  %v3323_v63 = vsub.f32 %v6464_v57, %v3299_v11 }
 0x54a   : > { %v6558_v56 = vpop.eup %4432 }
 0x54b   : > { %v3346_v39 = vmul.f32 1.442695, %v3323_v63  ;;  %3370 = vadd.xlane.f32.xlu0 %v6558_v56 }
 0x54c   : > { %v3301_v31 = vpop.xlane.xlu1 %3300 }
 0x54d   : > { %4440 = vpow2.f32 %v3346_v39  ;;  %v3324_v24 = vsub.f32 %v6475_v49, %v3301_v31 }
 0x54e   : > { %v6562_v41 = vpop.eup %4434 }
 0x54f   : > { %v3348_v14 = vmul.f32 1.442695, %v3324_v24  ;;  %3372 = vadd.xlane.f32.xlu1 %v6562_v41 }
 0x550   : > { %v3303_v51 = vpop.xlane.xlu0 %3302 }
 0x551   : > { %4442 = vpow2.f32 %v3348_v14  ;;  %v3325_v0 = vsub.f32 %v6485_v1, %v3303_v51 }
 0x552   : > { %v6566_v28 = vpop.eup %4436 }
 0x553   : > { %v3350_v57 = vmul.f32 1.442695, %v3325_v0  ;;  %3374 = vadd.xlane.f32.xlu0 %v6566_v28 }
 0x554   : > { %v3305_v4 = vpop.xlane.xlu1 %3304 }
 0x555   : > { %4444 = vpow2.f32 %v3350_v57  ;;  %v3326_v42 = vsub.f32 %v6495_v7, %v3305_v4 }
 0x556   : > { %v6570_v15 = vpop.eup %4438 }
 0x557   : > { %v3352_v49 = vmul.f32 1.442695, %v3326_v42  ;;  %3376 = vadd.xlane.f32.xlu1 %v6570_v15 }
 0x558   : > { %v3307_v17 = vpop.xlane.xlu0 %3306 }
 0x559   : > { %4446 = vpow2.f32 %v3352_v49  ;;  %v3327_v3 = vsub.f32 %v6505_v16, %v3307_v17 }
 0x55a   : > { %v6574_v32 = vpop.eup %4440 }
 0x55b   : > { %v3354_v1 = vmul.f32 1.442695, %v3327_v3  ;;  %3378 = vadd.xlane.f32.xlu0 %v6574_v32 }
 0x55c   : > { %v3309_v46 = vpop.xlane.xlu1 %3308 }
 0x55d   : > { %4448 = vpow2.f32 %v3354_v1  ;;  %v3328_v27 = vsub.f32 %v6515_v50, %v3309_v46 }
 0x55e   : > { %v6578_v10 = vpop.eup %4442 }
 0x55f   : > { %v3356_v7 = vmul.f32 1.442695, %v3328_v27  ;;  %3380 = vadd.xlane.f32.xlu1 %v6578_v10 }
 0x560   : > { %v3311_v53 = vpop.xlane.xlu0 %3310 }
 0x561   : > { %4450 = vpow2.f32 %v3356_v7  ;;  %v3329_v35 = vsub.f32 %v6525_v60, %v3311_v53 }
 0x562   : > { %v6582_v59 = vpop.eup %4444 }
 0x563   : > { %v3358_v16 = vmul.f32 1.442695, %v3329_v35  ;;  %3382 = vadd.xlane.f32.xlu0 %v6582_v59 }
 0x564   : > { %v3313_v48 = vpop.xlane.xlu1 %3312 }
 0x565   : > { %4452 = vpow2.f32 %v3358_v16  ;;  %v3330_v6 = vsub.f32 %v6531_v34, %v3313_v48 }
 0x566   : > { %v6586_v25 = vpop.eup %4446 }
 0x567   : > { %v3360_v50 = vmul.f32 1.442695, %v3330_v6  ;;  %3384 = vadd.xlane.f32.xlu1 %v6586_v25 }
 0x568   : > { %v3315_v44 = vpop.xlane.xlu0 %3314 }
 0x569   : > { %4454 = vpow2.f32 %v3360_v50  ;;  %v3331_v60 = vsub.f32 %v6536_v62, %v3315_v44 }
 0x56a   : > { %v6590_v61 = vpop.eup %4448 }
 0x56b   : > { %v3362_v43 = vmul.f32 1.442695, %v3331_v60  ;;  %3386 = vadd.xlane.f32.xlu0 %v6590_v61 }
 0x56d   : > { %4456 = vpow2.f32 %v3362_v43 }
 0x56e   : > { %v6593_v34 = vpop.eup %4450 }
 0x56f   : > { %3388 = vadd.xlane.f32.xlu1 %v6593_v34 }
 0x572   : > { %v6596_v38 = vpop.eup %4452 }
 0x573   : > { %3390 = vadd.xlane.f32.xlu0 %v6596_v38 }
 0x576   : > { %v6599_v22 = vpop.eup %4454 }
 0x577   : > { %3392 = vadd.xlane.f32.xlu1 %v6599_v22 }
 0x57a   : > { %v6602_v62 = vpop.eup %4456 }
 0x57b   : > { %3394 = vadd.xlane.f32.xlu0 %v6602_v62 }
 0x57c   : > { %4506 = shalt.err (!%p4503_p3)
}
 0x57d   : > { %s4507_s24 = scalar_lea.hbm %s6612_s21, 2048  ;;  %s4511_s13 = scalar_lea.hbm %s6736_s7, 4096 }
 0x57e   : > { %p4508_p4 = scmp.ne.s32.totalorder %s6612_s21, %s4507_s24  ;;  %p4512_p9 = scmp.lt.s32.totalorder %s6612_s21, %s6736_s7 }
 0x57f   : > { %p4513_p10 = scmp.lt.s32.totalorder %s4511_s13, %s4507_s24 }
 0x580   : > { %p4509_p7 = pnand %p4508_p4, %p4681_p5 }
 0x581   : > { %p4514_p11 = por %p4513_p10, %p4512_p9 }
 0x582   : > { %p4510_p8 = pneg %p4509_p7 }
 0x584   : > { %p4515_p12 = pnand %p4514_p11, %p4510_p8 }
 0x586   : > { %4518 = shalt.err (!%p4515_p12)
}
 0x587   : > { %s4595_s12 = smov 128   ;;  %s4596_s19 = smov 8  }
 0x588   : > { %4194 = dma.vmem_to_hbm [thread:$0]  (%p4681_p5), %s6614_s17, 2048, %s6612_s21, %s3445_s10, %s4595_s12, %s4595_s12, %s4596_s19  }
 0x589   : > { %s6813_s23 = sshll.u32 %s6379_s22, 7  ;;  %s6814_s21 = sshll.u32 %s4664_s9, 11 }
 0x58a   : > { %s6645_s25 = scalar_lea.vmem [#allocation4], %s6813_s23  ;;  %s6683_s24 = scalar_lea.hbm %s6737_s8, %s6814_s21 }
 0x58b   : > { %s3479_s17 = sshll.u32 %s6645_s25, 4  ;;  %s3450_s26 = scalar_lea.sflag [#allocation5], %s6379_s22  ;;  %s6685_s17 = int_to_ptr.vmem [resolvable:$true] %s3479_s17 }
 0x58c   : > { %s4519_s18 = scalar_lea.vmem %s6685_s17, 2048  ;;  %s4597_s13 = smov [#allocation4]  }
 0x58d   : > { %p4520_p13 = scmp.ne.s32.totalorder %s6685_s17, %s4519_s18  ;;  %s4523_s23 = sshll.u32 %s4597_s13, 4  ;;  %s4524_s23 = int_to_ptr.vmem [resolvable:$false] %s4523_s23 }
 0x58e   : > { %s4525_s9 = scalar_lea.vmem %s4524_s23, 4096  ;;  %p4526_p2 = scmp.lt.s32.totalorder %s6685_s17, %s4524_s23 }
 0x58f   : > { %p4521_p0 = pnand %p4520_p13, %p4681_p5  ;;  %p4527_p3 = scmp.lt.s32.totalorder %s4525_s9, %s4519_s18 }
 0x591   : > { %p4522_p1 = pneg %p4521_p0  ;;  %p4528_p4 = por %p4527_p3, %p4526_p2 }
 0x593   : > { %p4529_p7 = pnand %p4528_p4, %p4522_p1 }
 0x5c8   : > { %v3365_v9 = vpop.xlane.xlu1 %3364 }
 0x5c9   : > { %4458 = vrcp.f32 %v3365_v9 }
 0x5cc   : > { %v3367_v30 = vpop.xlane.xlu0 %3366 }
 0x5cd   : > { %4460 = vrcp.f32 %v3367_v30 }
 0x5d0   : > { %v3369_v37 = vpop.xlane.xlu1 %3368 }
 0x5d1   : > { %4462 = vrcp.f32 %v3369_v37 }
 0x5d4   : > { %v3371_v20 = vpop.xlane.xlu0 %3370 }
 0x5d5   : > { %4464 = vrcp.f32 %v3371_v20 }
 0x5d6   : > { %v4459_v36 = vpop.eup %4458 }
 0x5d7   : > { %v3412_v18 = vmul.f32 %v4459_v36, %v6546_v54 }
 0x5d8   : > { %v3373_v29 = vpop.xlane.xlu1 %3372 }
 0x5d9   : > { %3428 = vst [vmem:[%s6645_s25] sm:$0xff] %v3412_v18  ;;  %4466 = vrcp.f32 %v3373_v29 }
 0x5da   : > { %v4461_v52 = vpop.eup %4460 }
 0x5db   : > { %v3413_v19 = vmul.f32 %v4461_v52, %v6550_v12 }
 0x5dc   : > { %v3375_v47 = vpop.xlane.xlu0 %3374 }
 0x5dd   : > { %3429 = vst [vmem:[%s6645_s25 + $0x8] sm:$0xff] %v3413_v19  ;;  %4468 = vrcp.f32 %v3375_v47 }
 0x5de   : > { %v4463_v23 = vpop.eup %4462 }
 0x5df   : > { %v3414_v45 = vmul.f32 %v4463_v23, %v6554_v26 }
 0x5e0   : > { %v3377_v40 = vpop.xlane.xlu1 %3376 }
 0x5e1   : > { %3430 = vst [vmem:[%s6645_s25 + $0x10] sm:$0xff] %v3414_v45  ;;  %4470 = vrcp.f32 %v3377_v40 }
 0x5e2   : > { %v4465_v21 = vpop.eup %4464 }
 0x5e3   : > { %v3415_v54 = vmul.f32 %v4465_v21, %v6558_v56 }
 0x5e4   : > { %v3379_v55 = vpop.xlane.xlu0 %3378 }
 0x5e5   : > { %3431 = vst [vmem:[%s6645_s25 + $0x18] sm:$0xff] %v3415_v54  ;;  %4472 = vrcp.f32 %v3379_v55 }
 0x5e6   : > { %v4467_v2 = vpop.eup %4466 }
 0x5e7   : > { %v3416_v33 = vmul.f32 %v4467_v2, %v6562_v41 }
 0x5e8   : > { %v3381_v12 = vpop.xlane.xlu1 %3380 }
 0x5e9   : > { %3432 = vst [vmem:[%s6645_s25 + $0x20] sm:$0xff] %v3416_v33  ;;  %4474 = vrcp.f32 %v3381_v12 }
 0x5ea   : > { %v4469_v8 = vpop.eup %4468 }
 0x5eb   : > { %v3417_v58 = vmul.f32 %v4469_v8, %v6566_v28 }
 0x5ec   : > { %v3383_v13 = vpop.xlane.xlu0 %3382 }
 0x5ed   : > { %3433 = vst [vmem:[%s6645_s25 + $0x28] sm:$0xff] %v3417_v58  ;;  %4476 = vrcp.f32 %v3383_v13 }
 0x5ee   : > { %v4471_v26 = vpop.eup %4470 }
 0x5ef   : > { %v3418_v5 = vmul.f32 %v4471_v26, %v6570_v15 }
 0x5f0   : > { %v3385_v11 = vpop.xlane.xlu1 %3384 }
 0x5f1   : > { %3434 = vst [vmem:[%s6645_s25 + $0x30] sm:$0xff] %v3418_v5  ;;  %4478 = vrcp.f32 %v3385_v11 }
 0x5f2   : > { %v4473_v63 = vpop.eup %4472 }
 0x5f3   : > { %v3419_v56 = vmul.f32 %v4473_v63, %v6574_v32 }
 0x5f4   : > { %v3387_v39 = vpop.xlane.xlu0 %3386 }
 0x5f5   : > { %3435 = vst [vmem:[%s6645_s25 + $0x38] sm:$0xff] %v3419_v56  ;;  %4480 = vrcp.f32 %v3387_v39 }
 0x5f6   : > { %v4475_v31 = vpop.eup %4474 }
 0x5f7   : > { %v3420_v24 = vmul.f32 %v4475_v31, %v6578_v10 }
 0x5f8   : > { %v3389_v41 = vpop.xlane.xlu1 %3388 }
 0x5f9   : > { %3436 = vst [vmem:[%s6645_s25 + $0x40] sm:$0xff] %v3420_v24  ;;  %4482 = vrcp.f32 %v3389_v41 }
 0x5fa   : > { %v4477_v14 = vpop.eup %4476 }
 0x5fb   : > { %v3421_v51 = vmul.f32 %v4477_v14, %v6582_v59 }
 0x5fc   : > { %v3391_v0 = vpop.xlane.xlu0 %3390 }
 0x5fd   : > { %3437 = vst [vmem:[%s6645_s25 + $0x48] sm:$0xff] %v3421_v51  ;;  %4484 = vrcp.f32 %v3391_v0 }
 0x5fe   : > { %v4479_v28 = vpop.eup %4478 }
 0x5ff   : > { %v3422_v57 = vmul.f32 %v4479_v28, %v6586_v25 }
 0x600   : > { %v3393_v4 = vpop.xlane.xlu1 %3392 }
 0x601   : > { %3438 = vst [vmem:[%s6645_s25 + $0x50] sm:$0xff] %v3422_v57  ;;  %4486 = vrcp.f32 %v3393_v4 }
 0x602   : > { %v4481_v42 = vpop.eup %4480 }
 0x603   : > { %v3423_v15 = vmul.f32 %v4481_v42, %v6590_v61 }
 0x604   : > { %v3395_v49 = vpop.xlane.xlu0 %3394 }
 0x605   : > { %3439 = vst [vmem:[%s6645_s25 + $0x58] sm:$0xff] %v3423_v15  ;;  %4488 = vrcp.f32 %v3395_v49 }
 0x606   : > { %v4483_v17 = vpop.eup %4482 }
 0x607   : > { %v3424_v3 = vmul.f32 %v4483_v17, %v6593_v34 }
 0x609   : > { %3440 = vst [vmem:[%s6645_s25 + $0x60] sm:$0xff] %v3424_v3 }
 0x60a   : > { %v4485_v32 = vpop.eup %4484 }
 0x60b   : > { %v3425_v1 = vmul.f32 %v4485_v32, %v6596_v38 }
 0x60d   : > { %3441 = vst [vmem:[%s6645_s25 + $0x68] sm:$0xff] %v3425_v1 }
 0x60e   : > { %v4487_v46 = vpop.eup %4486 }
 0x60f   : > { %v3426_v27 = vmul.f32 %v4487_v46, %v6599_v22 }
 0x611   : > { %3442 = vst [vmem:[%s6645_s25 + $0x70] sm:$0xff] %v3426_v27 }
 0x612   : > { %v4489_v10 = vpop.eup %4488 }
 0x613   : > { %v3427_v7 = vmul.f32 %v4489_v10, %v6602_v62 }
 0x615   : > { %3443 = vst [vmem:[%s6645_s25 + $0x78] sm:$0xff] %v3427_v7 }
 0x616   : > { %4532 = shalt.err (!%p4529_p7)
}
 0x617   : > { %s4533_s25 = scalar_lea.hbm %s6683_s24, 2048  ;;  %s4537_s10 = scalar_lea.hbm %s6737_s8, 4096 }
 0x618   : > { %p4534_p8 = scmp.ne.s32.totalorder %s6683_s24, %s4533_s25  ;;  %p4538_p11 = scmp.lt.s32.totalorder %s6683_s24, %s6737_s8 }
 0x619   : > { %p4539_p12 = scmp.lt.s32.totalorder %s4537_s10, %s4533_s25 }
 0x61a   : > { %p4535_p9 = pnand %p4534_p8, %p4681_p5 }
 0x61b   : > { %p4540_p13 = por %p4539_p12, %p4538_p11 }
 0x61c   : > { %p4536_p10 = pneg %p4535_p9 }
 0x61e   : > { %p4541_p0 = pnand %p4540_p13, %p4536_p10 }
 0x620   : > { %4544 = shalt.err (!%p4541_p0)
}
 0x621   : > { %4195 = dma.vmem_to_hbm [thread:$0]  (%p4681_p5), %s6685_s17, 2048, %s6683_s24, %s3450_s26, %s4595_s12, %s4595_s12, %s4596_s19  }
 0x622 PF: > { %p4205_p1 = scmp.ge.s32.totalorder %s4583_s30, 2  ;;  %s3494_s18 = sand.u32 1, %s4571_s27  }
 0x623   : > { %s3495_s23 = scalar_lea.sflag [#allocation3], %s3494_s18 }
 0x624   : > { %p4199_p2 = pnand %p4205_p1, %p4685_p6 }
 0x626   : > { %p4200_p3 = pneg %p4199_p2 }
 0x628   : > { %4562 = dma.done.wait (%p4200_p3), %s3495_s23, 2048  }
 0x629   : > { %4564 = vsyncadd (%p4200_p3), %s3495_s23, 4294965248  ;;  %s3504_s9 = scalar_lea.sflag [#allocation5], %s3494_s18 }
 0x62a   : > { %4566 = dma.done.wait (%p4200_p3), %s3504_s9, 2048  }
 0x62b   : > { %4568 = vsyncadd (%p4200_p3), %s3504_s9, 4294965248  ;;  %p22_p5 = scmp.ge.s32.totalorder %s4668_s11, 4   ;;  %s6815_s27 = smov %s4575_s28 }
 0x62c   : > { %s6816_s28 = smov %s4579_s29  ;;  %s6817_s29 = smov %s4679_s14 }
 0x62d   : > { %s6818_s30 = smov %s4668_s11  ;;  %24 = sbr.rel (!%p22_p5) target bundleno = 5 (0x5), region = 103 }
 0x632   :  { %3509 = vsyncpa [#allocation3], 1 }
 0x633   :  { %3511 = vsyncpa [#allocation3 + $0x1], 1 }
 0x634   :  { %3512 = vsyncpa [#allocation5], 1 }
 0x635   :  { %3514 = vsyncpa [#allocation5 + $0x1], 1 }

</bundles_post_ra>
